<compile_context>
chip_gen: v7x
topology: tpu7x:2x2x1
jax: 0.10.0
libtpu: 0.0.40
codegen_flags: <defaults>
</compile_context>

<pallas_src>
import jax
import jax.numpy as jnp
from jax.experimental import pallas as pl
from jax.experimental.pallas import tpu as pltpu

# ---- scaled-down config (mirrors ClinicalRoberta / hfl-chinese-roberta structure) ----
B, S           = 2, 8          # batch, max_length (scaled from 16, 32)
VOCAB, MAXPOS  = 100, 32
D, H, DH       = 64, 4, 16     # hidden (scaled from 768), heads, head dim
FFN            = 128           # intermediate size (scaled from 3072)
LAYERS         = 2             # encoder layers (scaled from 12)
P1, PDIM       = 48, 32        # projection hidden / projection_dim (scaled from 512/256)
NCLS           = 10            # num_classes
ENC_EPS        = 1e-12         # HF BERT LayerNorm eps
HEAD_EPS       = 1e-5          # torch.nn.LayerNorm default eps

BS    = B * S                  # flattened token axis for the residual stream
OUT_W = 128                    # lane-dense packed output width (proj | logits | pad)


# ------------------------------ in-kernel helpers ------------------------------------
def _ln(x, g, b, eps):
    mu = jnp.mean(x, axis=-1, keepdims=True)
    var = jnp.mean(jnp.square(x - mu), axis=-1, keepdims=True)
    return (x - mu) * jax.lax.rsqrt(var + eps) * g + b


def _gelu(x):
    # exact (erf-based) GELU, matching torch.nn.GELU() default
    return 0.5 * x * (1.0 + jax.lax.erf(x * (1.0 / jnp.sqrt(2.0).astype(x.dtype))))


# ------------------------------ fused Pallas kernel -----------------------------------
def fused_forward_kernel(emb_ref, mask_ref, wqkv_ref, w1_ref, w2_ref,
                         lvec_ref, hvec_ref, hw_ref, out_ref):
    hv = hvec_ref[...]                                            # (8, 128) f32

    # ---- embeddings LayerNorm; residual stream kept as lane-dense (BS, D) f32 slab ----
    x = _ln(emb_ref[...], hv[0, :D], hv[0, D:2 * D], ENC_EPS)     # (BS, D)
    amask = mask_ref[...].reshape(B, 1, S)                        # additive key mask

    for l in range(LAYERS):                                       # static unroll (LAYERS == 2)
        lv = lvec_ref[l]                                          # (6, 128) f32
        bq, bk  = lv[0, :D], lv[0, D:2 * D]
        bv, bo  = lv[1, :D], lv[1, D:2 * D]
        g1, be1 = lv[2, :D], lv[2, D:2 * D]
        g2, be2 = lv[3, :D], lv[3, D:2 * D]
        b1      = lv[4, :FFN]
        b2      = lv[5, :D]

        # --- Q/K/V projections: full (BS,D) x (D,D) bf16 MXU matmuls (scale pre-folded) ---
        xb = x.astype(jnp.bfloat16)
        q = jnp.dot(xb, wqkv_ref[l, 0], preferred_element_type=jnp.float32) + bq
        k = jnp.dot(xb, wqkv_ref[l, 1], preferred_element_type=jnp.float32) + bk
        v = jnp.dot(xb, wqkv_ref[l, 2], preferred_element_type=jnp.float32) + bv

        # --- per-head scores / softmax / context (inherently tiny at S=8, DH=16) ---
        ctx_heads = []
        for h in range(H):                                        # static unroll (H == 4)
            hs = slice(h * DH, (h + 1) * DH)
            qh = q[:, hs].reshape(B, S, DH)
            kh = k[:, hs].reshape(B, S, DH)
            vh = v[:, hs].reshape(B, S, DH)
            sc = jnp.einsum('bqd,bkd->bqk', qh, kh,
                            preferred_element_type=jnp.float32) + amask      # (B, S, S)
            m = jnp.max(sc, axis=-1, keepdims=True)
            e = jnp.exp(sc - m)
            p = e * pl.reciprocal(jnp.sum(e, axis=-1, keepdims=True), approx=True)
            ctxh = jnp.einsum('bqk,bkd->bqd', p, vh,
                              preferred_element_type=jnp.float32)             # (B, S, DH)
            ctx_heads.append(ctxh.reshape(BS, DH))
        ctx = jnp.concatenate(ctx_heads, axis=-1)                 # (BS, D) — head concat

        # --- output projection folded to one (BS,D) x (D,D) matmul ---
        attn = jnp.dot(ctx.astype(jnp.bfloat16), wqkv_ref[l, 3],
                       preferred_element_type=jnp.float32) + bo
        # TODO(synk): attention/hidden dropout treated as identity (inference-mode forward).
        x = _ln(x + attn, g1, be1, ENC_EPS)

        # --- feed-forward (bf16 MXU, f32 accumulate / elementwise) ---
        ff = _gelu(jnp.dot(x.astype(jnp.bfloat16), w1_ref[l],
                           preferred_element_type=jnp.float32) + b1)
        ff = jnp.dot(ff.astype(jnp.bfloat16), w2_ref[l],
                     preferred_element_type=jnp.float32) + b2
        x = _ln(x + ff, g2, be2, ENC_EPS)

    # ---- CLS pooling + projection head + classifier (all in the same kernel) ----
    pooled = x.reshape(B, S, D)[:, 0, :]                          # (B, D)
    hw = hw_ref[...]                                              # (3, 64, 128) bf16
    wp1 = hw[0, :D, :P1]
    wp2 = hw[1, :P1, :PDIM]
    wc  = hw[2, :PDIM, :NCLS]

    h1 = jnp.dot(pooled.astype(jnp.bfloat16), wp1,
                 preferred_element_type=jnp.float32) + hv[1, :P1]
    # TODO(synk): projection Dropout(p=0.2) is identity (inference-mode forward).
    h1 = _ln(_gelu(h1), hv[2, :P1], hv[3, :P1], HEAD_EPS)
    proj = jnp.dot(h1.astype(jnp.bfloat16), wp2,
                   preferred_element_type=jnp.float32) + hv[4, :PDIM]
    proj = _ln(proj, hv[5, :PDIM], hv[6, :PDIM], HEAD_EPS)
    logits = jnp.dot(proj.astype(jnp.bfloat16), wc,
                     preferred_element_type=jnp.float32) + hv[7, :NCLS]

    # lane-dense packed writeback into static slices (no concat / pad copy)
    out_ref[:, :PDIM] = proj
    out_ref[:, PDIM:PDIM + NCLS] = logits


# ------------------------------ wrapper-side weight prep -------------------------------
def _full_spec(a):
    nd = a.ndim
    return pl.BlockSpec(a.shape, (lambda n: (lambda i: (0,) * n))(nd))


def _row128(*parts):
    """Concatenate 1-D views and zero-pad to one 128-lane row."""
    v = jnp.concatenate([jnp.asarray(p).reshape(-1) for p in parts])
    return jnp.pad(v, (0, 128 - v.shape[0]))


def _pad2(w, rows=64, cols=128):
    return jnp.pad(w, ((0, rows - w.shape[0]), (0, cols - w.shape[1])))


def _prep_weights(params):
    """Pack weights for the kernel (done once, outside the kernel):
       - fold 1/sqrt(DH) into wq/bq,
       - stack attention/FFN weights per layer in bf16 (no per-head split, no batch dup),
       - pack all small vectors into two lane-dense f32 slabs,
       - pack the three head matrices into one padded bf16 slab."""
    scale = 1.0 / (DH ** 0.5)
    layers = params["layers"]

    wqkv = jnp.stack([jnp.stack([lp["wq"] * scale, lp["wk"], lp["wv"], lp["wo"]])
                      for lp in layers]).astype(jnp.bfloat16)          # (L, 4, D, D)
    w1 = jnp.stack([lp["w1"] for lp in layers]).astype(jnp.bfloat16)   # (L, D, FFN)
    w2 = jnp.stack([lp["w2"] for lp in layers]).astype(jnp.bfloat16)   # (L, FFN, D)

    lvec = jnp.stack([jnp.stack([
        _row128(lp["bq"] * scale, lp["bk"]),
        _row128(lp["bv"], lp["bo"]),
        _row128(lp["g1"], lp["be1"]),
        _row128(lp["g2"], lp["be2"]),
        _row128(lp["b1"]),
        _row128(lp["b2"]),
    ]) for lp in layers]).astype(jnp.float32)                          # (L, 6, 128)

    hp = params["head"]
    hvec = jnp.stack([
        _row128(params["emb_g"], params["emb_b"]),
        _row128(hp["bp1"]), _row128(hp["gA"]), _row128(hp["bA"]),
        _row128(hp["bp2"]), _row128(hp["gB"]), _row128(hp["bB"]),
        _row128(hp["bc"]),
    ]).astype(jnp.float32)                                             # (8, 128)

    hw = jnp.stack([_pad2(hp["wp1"]), _pad2(hp["wp2"]), _pad2(hp["wc"])]
                   ).astype(jnp.bfloat16)                              # (3, 64, 128)

    return wqkv, w1, w2, lvec, hvec, hw


# ------------------------------ parameter init (deterministic) ------------------------
def init_params():
    keys = iter(jax.random.split(jax.random.PRNGKey(0), 512))

    def rnd(shape, scale=0.02):
        return (scale * jax.random.normal(next(keys), shape)).astype(jnp.float32)

    params = {
        "word_emb": rnd((VOCAB, D)),
        "pos_emb": rnd((MAXPOS, D)),
        "type_emb": rnd((2, D)),
        "emb_g": jnp.ones((1, D), jnp.float32),
        "emb_b": jnp.zeros((1, D), jnp.float32),
        "layers": [],
    }
    for _ in range(LAYERS):
        params["layers"].append({
            "wq": rnd((D, D)), "bq": jnp.zeros((1, D), jnp.float32),
            "wk": rnd((D, D)), "bk": jnp.zeros((1, D), jnp.float32),
            "wv": rnd((D, D)), "bv": jnp.zeros((1, D), jnp.float32),
            "wo": rnd((D, D)), "bo": jnp.zeros((1, D), jnp.float32),
            "g1": jnp.ones((1, D), jnp.float32), "be1": jnp.zeros((1, D), jnp.float32),
            "w1": rnd((D, FFN)), "b1": jnp.zeros((1, FFN), jnp.float32),
            "w2": rnd((FFN, D)), "b2": jnp.zeros((1, D), jnp.float32),
            "g2": jnp.ones((1, D), jnp.float32), "be2": jnp.zeros((1, D), jnp.float32),
        })
    params["head"] = {
        "wp1": rnd((D, P1)),    "bp1": jnp.zeros((1, P1), jnp.float32),
        "gA": jnp.ones((1, P1), jnp.float32), "bA": jnp.zeros((1, P1), jnp.float32),
        "wp2": rnd((P1, PDIM)), "bp2": jnp.zeros((1, PDIM), jnp.float32),
        "gB": jnp.ones((1, PDIM), jnp.float32), "bB": jnp.zeros((1, PDIM), jnp.float32),
        "wc": rnd((PDIM, NCLS)), "bc": jnp.zeros((1, NCLS), jnp.float32),
    }
    return params


# ------------------------------ full forward -------------------------------------------
def clinical_roberta_forward(params, input_ids, attention_mask):
    # Embedding gathers stay in plain JAX (data-dependent gather is glue, not kernel work).
    # TODO(synk): token_type embedding hard-coded to index 0 (token_type_ids assumed zero).
    positions = jnp.arange(S, dtype=jnp.int32)
    emb = (params["word_emb"][input_ids]
           + params["pos_emb"][positions][None, :, :]
           + params["type_emb"][0][None, None, :])
    emb2d = emb.reshape(BS, D).astype(jnp.float32)

    # HF-style additive key mask (B, S); broadcast over heads happens in-kernel for free.
    mask_add = (1.0 - attention_mask.astype(jnp.float32)) * -1e9          # (B, S)

    wqkv, w1, w2, lvec, hvec, hw = _prep_weights(params)

    inputs = [emb2d, mask_add, wqkv, w1, w2, lvec, hvec, hw]

    packed = pl.pallas_call(
        fused_forward_kernel,
        out_shape=jax.ShapeDtypeStruct((B, OUT_W), jnp.float32),
        grid=(1,),
        in_specs=[_full_spec(a) for a in inputs],
        out_specs=pl.BlockSpec((B, OUT_W), lambda i: (0, 0)),
        compiler_params=pltpu.CompilerParams(dimension_semantics=("arbitrary",)),
    )(*inputs)

    projected = packed[:, :PDIM]
    logits = packed[:, PDIM:PDIM + NCLS]
    return projected, logits


if __name__ == "__main__":
    params = init_params()

    key = jax.random.PRNGKey(0)
    k_ids, _ = jax.random.split(key)
    input_ids = jax.random.randint(k_ids, (B, S), 0, VOCAB, dtype=jnp.int32)
    attention_mask = jnp.array([[1] * S,
                                [1] * (S - 2) + [0] * 2], dtype=jnp.int32)

    fwd = jax.jit(lambda ids, m: clinical_roberta_forward(params, ids, m))
    projected, logits = fwd(input_ids, attention_mask)
    jax.block_until_ready((projected, logits))

    assert projected.shape == (B, PDIM) and logits.shape == (B, NCLS)
    assert jnp.all(jnp.isfinite(projected)) and jnp.all(jnp.isfinite(logits))
    print("KERNEL_OK")
</pallas_src>

<mosaic_0001>
module attributes {stable_mosaic.version = 11 : i64} {
  func.func @fused_forward_kernel(%arg0: i32, %arg1: memref<16x64xf32, #tpu.memory_space<vmem>>, %arg2: memref<2x8xf32, #tpu.memory_space<vmem>>, %arg3: memref<2x4x64x64xbf16, #tpu.memory_space<vmem>>, %arg4: memref<2x64x128xbf16, #tpu.memory_space<vmem>>, %arg5: memref<2x128x64xbf16, #tpu.memory_space<vmem>>, %arg6: memref<2x6x128xf32, #tpu.memory_space<vmem>>, %arg7: memref<8x128xf32, #tpu.memory_space<vmem>>, %arg8: memref<3x64x128xbf16, #tpu.memory_space<vmem>>, %arg9: memref<2x128xf32, #tpu.memory_space<vmem>>) attributes {dimension_semantics = [#tpu.dimension_semantics<arbitrary>], iteration_bounds = array<i64: 1>, scalar_prefetch = 0 : i64, scratch_operands = 0 : i64, tpu.core_type = #tpu.core_type<tc>, window_params = [{pipeline_mode = #tpu.pipeline_mode<synchronous>, transform_indices = @transform_0, window_bounds = array<i64: 16, 64>}, {pipeline_mode = #tpu.pipeline_mode<synchronous>, transform_indices = @transform_1, window_bounds = array<i64: 2, 8>}, {pipeline_mode = #tpu.pipeline_mode<synchronous>, transform_indices = @transform_2, window_bounds = array<i64: 2, 4, 64, 64>}, {pipeline_mode = #tpu.pipeline_mode<synchronous>, transform_indices = @transform_3, window_bounds = array<i64: 2, 64, 128>}, {pipeline_mode = #tpu.pipeline_mode<synchronous>, transform_indices = @transform_4, window_bounds = array<i64: 2, 128, 64>}, {pipeline_mode = #tpu.pipeline_mode<synchronous>, transform_indices = @transform_5, window_bounds = array<i64: 2, 6, 128>}, {pipeline_mode = #tpu.pipeline_mode<synchronous>, transform_indices = @transform_6, window_bounds = array<i64: 8, 128>}, {pipeline_mode = #tpu.pipeline_mode<synchronous>, transform_indices = @transform_7, window_bounds = array<i64: 3, 64, 128>}, {pipeline_mode = #tpu.pipeline_mode<synchronous>, transform_indices = @transform_8, window_bounds = array<i64: 2, 128>}]} {
    %c0 = arith.constant 0 : index
    %c0_0 = arith.constant 0 : index
    %0 = vector.load %arg7[%c0, %c0_0] : memref<8x128xf32, #tpu.memory_space<vmem>>, vector<8x128xf32>
    %c0_1 = arith.constant 0 : index
    %c0_2 = arith.constant 0 : index
    %1 = vector.load %arg1[%c0_1, %c0_2] : memref<16x64xf32, #tpu.memory_space<vmem>>, vector<16x64xf32>
    %2 = vector.extract_strided_slice %0 {offsets = [0, 0], sizes = [1, 64], strides = [1, 1]} : vector<8x128xf32> to vector<1x64xf32>
    %3 = vector.shape_cast %2 : vector<1x64xf32> to vector<64xf32>
    %4 = vector.extract_strided_slice %0 {offsets = [0, 64], sizes = [1, 64], strides = [1, 1]} : vector<8x128xf32> to vector<1x64xf32>
    %5 = vector.shape_cast %4 : vector<1x64xf32> to vector<64xf32>
    %cst = arith.constant dense<0.000000e+00> : vector<16xf32>
    %6 = vector.multi_reduction <add>, %1, %cst [1] : vector<16x64xf32> to vector<16xf32>
    %7 = vector.shape_cast %6 : vector<16xf32> to vector<16x1xf32>
    %cst_3 = arith.constant 6.400000e+01 : f32
    %8 = vector.broadcast %cst_3 : f32 to vector<16x1xf32>
    %9 = arith.divf %7, %8 : vector<16x1xf32>
    %10 = vector.broadcast %9 : vector<16x1xf32> to vector<16x64xf32>
    %11 = arith.subf %1, %10 : vector<16x64xf32>
    %12 = arith.mulf %11, %11 : vector<16x64xf32>
    %cst_4 = arith.constant dense<0.000000e+00> : vector<16xf32>
    %13 = vector.multi_reduction <add>, %12, %cst_4 [1] : vector<16x64xf32> to vector<16xf32>
    %14 = vector.shape_cast %13 : vector<16xf32> to vector<16x1xf32>
    %cst_5 = arith.constant 6.400000e+01 : f32
    %15 = vector.broadcast %cst_5 : f32 to vector<16x1xf32>
    %16 = arith.divf %14, %15 : vector<16x1xf32>
    %17 = vector.broadcast %9 : vector<16x1xf32> to vector<16x64xf32>
    %18 = arith.subf %1, %17 : vector<16x64xf32>
    %cst_6 = arith.constant 9.99999996E-13 : f32
    %19 = vector.broadcast %cst_6 : f32 to vector<16x1xf32>
    %20 = arith.addf %16, %19 : vector<16x1xf32>
    %21 = math.rsqrt %20 : vector<16x1xf32>
    %22 = vector.broadcast %21 : vector<16x1xf32> to vector<16x64xf32>
    %23 = arith.mulf %18, %22 : vector<16x64xf32>
    %24 = vector.shape_cast %3 : vector<64xf32> to vector<1x64xf32>
    %25 = vector.broadcast %24 : vector<1x64xf32> to vector<16x64xf32>
    %26 = arith.mulf %23, %25 : vector<16x64xf32>
    %27 = vector.shape_cast %5 : vector<64xf32> to vector<1x64xf32>
    %28 = vector.broadcast %27 : vector<1x64xf32> to vector<16x64xf32>
    %29 = arith.addf %26, %28 : vector<16x64xf32>
    %c0_7 = arith.constant 0 : index
    %c0_8 = arith.constant 0 : index
    %30 = vector.load %arg2[%c0_7, %c0_8] : memref<2x8xf32, #tpu.memory_space<vmem>>, vector<2x8xf32>
    %31 = vector.shape_cast %30 : vector<2x8xf32> to vector<2x1x8xf32>
    %c0_9 = arith.constant 0 : index
    %c0_10 = arith.constant 0 : index
    %c0_11 = arith.constant 0 : index
    %32 = vector.load %arg6[%c0_9, %c0_10, %c0_11] : memref<2x6x128xf32, #tpu.memory_space<vmem>>, vector<1x6x128xf32>
    %33 = vector.shape_cast %32 : vector<1x6x128xf32> to vector<6x128xf32>
    %34 = vector.extract_strided_slice %33 {offsets = [0, 0], sizes = [1, 64], strides = [1, 1]} : vector<6x128xf32> to vector<1x64xf32>
    %35 = vector.shape_cast %34 : vector<1x64xf32> to vector<64xf32>
    %36 = vector.extract_strided_slice %33 {offsets = [0, 64], sizes = [1, 64], strides = [1, 1]} : vector<6x128xf32> to vector<1x64xf32>
    %37 = vector.shape_cast %36 : vector<1x64xf32> to vector<64xf32>
    %38 = vector.extract_strided_slice %33 {offsets = [1, 0], sizes = [1, 64], strides = [1, 1]} : vector<6x128xf32> to vector<1x64xf32>
    %39 = vector.shape_cast %38 : vector<1x64xf32> to vector<64xf32>
    %40 = vector.extract_strided_slice %33 {offsets = [1, 64], sizes = [1, 64], strides = [1, 1]} : vector<6x128xf32> to vector<1x64xf32>
    %41 = vector.shape_cast %40 : vector<1x64xf32> to vector<64xf32>
    %42 = vector.extract_strided_slice %33 {offsets = [2, 0], sizes = [1, 64], strides = [1, 1]} : vector<6x128xf32> to vector<1x64xf32>
    %43 = vector.shape_cast %42 : vector<1x64xf32> to vector<64xf32>
    %44 = vector.extract_strided_slice %33 {offsets = [2, 64], sizes = [1, 64], strides = [1, 1]} : vector<6x128xf32> to vector<1x64xf32>
    %45 = vector.shape_cast %44 : vector<1x64xf32> to vector<64xf32>
    %46 = vector.extract_strided_slice %33 {offsets = [3, 0], sizes = [1, 64], strides = [1, 1]} : vector<6x128xf32> to vector<1x64xf32>
    %47 = vector.shape_cast %46 : vector<1x64xf32> to vector<64xf32>
    %48 = vector.extract_strided_slice %33 {offsets = [3, 64], sizes = [1, 64], strides = [1, 1]} : vector<6x128xf32> to vector<1x64xf32>
    %49 = vector.shape_cast %48 : vector<1x64xf32> to vector<64xf32>
    %50 = vector.extract_strided_slice %33 {offsets = [4, 0], sizes = [1, 128], strides = [1, 1]} : vector<6x128xf32> to vector<1x128xf32>
    %51 = vector.shape_cast %50 : vector<1x128xf32> to vector<128xf32>
    %52 = vector.extract_strided_slice %33 {offsets = [5, 0], sizes = [1, 64], strides = [1, 1]} : vector<6x128xf32> to vector<1x64xf32>
    %53 = vector.shape_cast %52 : vector<1x64xf32> to vector<64xf32>
    %54 = arith.truncf %29 : vector<16x64xf32> to vector<16x64xbf16>
    %c0_12 = arith.constant 0 : index
    %c0_13 = arith.constant 0 : index
    %c0_14 = arith.constant 0 : index
    %c0_15 = arith.constant 0 : index
    %55 = vector.load %arg3[%c0_12, %c0_13, %c0_14, %c0_15] : memref<2x4x64x64xbf16, #tpu.memory_space<vmem>>, vector<1x1x64x64xbf16>
    %56 = vector.shape_cast %55 : vector<1x1x64x64xbf16> to vector<64x64xbf16>
    %cst_16 = arith.constant dense<0.000000e+00> : vector<16x64xf32>
    %57 = tpu.matmul %54, %56, %cst_16 {dimension_numbers = #tpu.dot_dimension_numbers<[1], [0], [0], [1], [0, 0, 1, 1], [], []>} : vector<16x64xbf16>, vector<64x64xbf16>, vector<16x64xf32> -> vector<16x64xf32>
    %58 = vector.shape_cast %35 : vector<64xf32> to vector<1x64xf32>
    %59 = vector.broadcast %58 : vector<1x64xf32> to vector<16x64xf32>
    %60 = arith.addf %57, %59 : vector<16x64xf32>
    %c0_17 = arith.constant 0 : index
    %c1 = arith.constant 1 : index
    %c0_18 = arith.constant 0 : index
    %c0_19 = arith.constant 0 : index
    %61 = vector.load %arg3[%c0_17, %c1, %c0_18, %c0_19] : memref<2x4x64x64xbf16, #tpu.memory_space<vmem>>, vector<1x1x64x64xbf16>
    %62 = vector.shape_cast %61 : vector<1x1x64x64xbf16> to vector<64x64xbf16>
    %cst_20 = arith.constant dense<0.000000e+00> : vector<16x64xf32>
    %63 = tpu.matmul %54, %62, %cst_20 {dimension_numbers = #tpu.dot_dimension_numbers<[1], [0], [0], [1], [0, 0, 1, 1], [], []>} : vector<16x64xbf16>, vector<64x64xbf16>, vector<16x64xf32> -> vector<16x64xf32>
    %64 = vector.shape_cast %37 : vector<64xf32> to vector<1x64xf32>
    %65 = vector.broadcast %64 : vector<1x64xf32> to vector<16x64xf32>
    %66 = arith.addf %63, %65 : vector<16x64xf32>
    %c0_21 = arith.constant 0 : index
    %c2 = arith.constant 2 : index
    %c0_22 = arith.constant 0 : index
    %c0_23 = arith.constant 0 : index
    %67 = vector.load %arg3[%c0_21, %c2, %c0_22, %c0_23] : memref<2x4x64x64xbf16, #tpu.memory_space<vmem>>, vector<1x1x64x64xbf16>
    %68 = vector.shape_cast %67 : vector<1x1x64x64xbf16> to vector<64x64xbf16>
    %cst_24 = arith.constant dense<0.000000e+00> : vector<16x64xf32>
    %69 = tpu.matmul %54, %68, %cst_24 {dimension_numbers = #tpu.dot_dimension_numbers<[1], [0], [0], [1], [0, 0, 1, 1], [], []>} : vector<16x64xbf16>, vector<64x64xbf16>, vector<16x64xf32> -> vector<16x64xf32>
    %70 = vector.shape_cast %39 : vector<64xf32> to vector<1x64xf32>
    %71 = vector.broadcast %70 : vector<1x64xf32> to vector<16x64xf32>
    %72 = arith.addf %69, %71 : vector<16x64xf32>
    %73 = vector.extract_strided_slice %60 {offsets = [0, 0], sizes = [16, 16], strides = [1, 1]} : vector<16x64xf32> to vector<16x16xf32>
    %74 = vector.shape_cast %73 : vector<16x16xf32> to vector<2x8x16xf32>
    %75 = vector.extract_strided_slice %66 {offsets = [0, 0], sizes = [16, 16], strides = [1, 1]} : vector<16x64xf32> to vector<16x16xf32>
    %76 = vector.shape_cast %75 : vector<16x16xf32> to vector<2x8x16xf32>
    %77 = vector.extract_strided_slice %72 {offsets = [0, 0], sizes = [16, 16], strides = [1, 1]} : vector<16x64xf32> to vector<16x16xf32>
    %78 = vector.shape_cast %77 : vector<16x16xf32> to vector<2x8x16xf32>
    "tpu.trace_start"() <{level = 10 : i32, message = "bqd,bkd->bqk"}> : () -> ()
    %cst_25 = arith.constant dense<0.000000e+00> : vector<2x8x8xf32>
    %79 = tpu.matmul %74, %76, %cst_25 {dimension_numbers = #tpu.dot_dimension_numbers<[2], [2], [1], [1], [0, 0, 0, 1, 1, 1], [0], [0]>} : vector<2x8x16xf32>, vector<2x8x16xf32>, vector<2x8x8xf32> -> vector<2x8x8xf32>
    "tpu.trace_stop"() : () -> ()
    %80 = vector.broadcast %31 : vector<2x1x8xf32> to vector<2x8x8xf32>
    %81 = arith.addf %79, %80 : vector<2x8x8xf32>
    %cst_26 = arith.constant dense<0xFF800000> : vector<2x8xf32>
    %82 = vector.multi_reduction <maximumf>, %81, %cst_26 [2] : vector<2x8x8xf32> to vector<2x8xf32>
    %83 = vector.shape_cast %82 : vector<2x8xf32> to vector<2x8x1xf32>
    %84 = vector.broadcast %83 : vector<2x8x1xf32> to vector<2x8x8xf32>
    %85 = arith.subf %81, %84 : vector<2x8x8xf32>
    %86 = math.exp %85 : vector<2x8x8xf32>
    %cst_27 = arith.constant dense<0.000000e+00> : vector<2x8xf32>
    %87 = vector.multi_reduction <add>, %86, %cst_27 [2] : vector<2x8x8xf32> to vector<2x8xf32>
    %88 = vector.shape_cast %87 : vector<2x8xf32> to vector<2x8x1xf32>
    %89 = tpu.reciprocal %88 {approx = true} : vector<2x8x1xf32> -> vector<2x8x1xf32>
    %90 = vector.broadcast %89 : vector<2x8x1xf32> to vector<2x8x8xf32>
    %91 = arith.mulf %86, %90 : vector<2x8x8xf32>
    "tpu.trace_start"() <{level = 10 : i32, message = "bqk,bkd->bqd"}> : () -> ()
    %cst_28 = arith.constant dense<0.000000e+00> : vector<2x8x16xf32>
    %92 = tpu.matmul %91, %78, %cst_28 {dimension_numbers = #tpu.dot_dimension_numbers<[2], [1], [1], [2], [0, 0, 0, 1, 1, 2], [0], [0]>} : vector<2x8x8xf32>, vector<2x8x16xf32>, vector<2x8x16xf32> -> vector<2x8x16xf32>
    "tpu.trace_stop"() : () -> ()
    %93 = vector.shape_cast %92 : vector<2x8x16xf32> to vector<16x16xf32>
    %94 = vector.extract_strided_slice %60 {offsets = [0, 16], sizes = [16, 16], strides = [1, 1]} : vector<16x64xf32> to vector<16x16xf32>
    %95 = vector.shape_cast %94 : vector<16x16xf32> to vector<2x8x16xf32>
    %96 = vector.extract_strided_slice %66 {offsets = [0, 16], sizes = [16, 16], strides = [1, 1]} : vector<16x64xf32> to vector<16x16xf32>
    %97 = vector.shape_cast %96 : vector<16x16xf32> to vector<2x8x16xf32>
    %98 = vector.extract_strided_slice %72 {offsets = [0, 16], sizes = [16, 16], strides = [1, 1]} : vector<16x64xf32> to vector<16x16xf32>
    %99 = vector.shape_cast %98 : vector<16x16xf32> to vector<2x8x16xf32>
    "tpu.trace_start"() <{level = 10 : i32, message = "bqd,bkd->bqk"}> : () -> ()
    %cst_29 = arith.constant dense<0.000000e+00> : vector<2x8x8xf32>
    %100 = tpu.matmul %95, %97, %cst_29 {dimension_numbers = #tpu.dot_dimension_numbers<[2], [2], [1], [1], [0, 0, 0, 1, 1, 1], [0], [0]>} : vector<2x8x16xf32>, vector<2x8x16xf32>, vector<2x8x8xf32> -> vector<2x8x8xf32>
    "tpu.trace_stop"() : () -> ()
    %101 = vector.broadcast %31 : vector<2x1x8xf32> to vector<2x8x8xf32>
    %102 = arith.addf %100, %101 : vector<2x8x8xf32>
    %cst_30 = arith.constant dense<0xFF800000> : vector<2x8xf32>
    %103 = vector.multi_reduction <maximumf>, %102, %cst_30 [2] : vector<2x8x8xf32> to vector<2x8xf32>
    %104 = vector.shape_cast %103 : vector<2x8xf32> to vector<2x8x1xf32>
    %105 = vector.broadcast %104 : vector<2x8x1xf32> to vector<2x8x8xf32>
    %106 = arith.subf %102, %105 : vector<2x8x8xf32>
    %107 = math.exp %106 : vector<2x8x8xf32>
    %cst_31 = arith.constant dense<0.000000e+00> : vector<2x8xf32>
    %108 = vector.multi_reduction <add>, %107, %cst_31 [2] : vector<2x8x8xf32> to vector<2x8xf32>
    %109 = vector.shape_cast %108 : vector<2x8xf32> to vector<2x8x1xf32>
    %110 = tpu.reciprocal %109 {approx = true} : vector<2x8x1xf32> -> vector<2x8x1xf32>
    %111 = vector.broadcast %110 : vector<2x8x1xf32> to vector<2x8x8xf32>
    %112 = arith.mulf %107, %111 : vector<2x8x8xf32>
    "tpu.trace_start"() <{level = 10 : i32, message = "bqk,bkd->bqd"}> : () -> ()
    %cst_32 = arith.constant dense<0.000000e+00> : vector<2x8x16xf32>
    %113 = tpu.matmul %112, %99, %cst_32 {dimension_numbers = #tpu.dot_dimension_numbers<[2], [1], [1], [2], [0, 0, 0, 1, 1, 2], [0], [0]>} : vector<2x8x8xf32>, vector<2x8x16xf32>, vector<2x8x16xf32> -> vector<2x8x16xf32>
    "tpu.trace_stop"() : () -> ()
    %114 = vector.shape_cast %113 : vector<2x8x16xf32> to vector<16x16xf32>
    %115 = vector.extract_strided_slice %60 {offsets = [0, 32], sizes = [16, 16], strides = [1, 1]} : vector<16x64xf32> to vector<16x16xf32>
    %116 = vector.shape_cast %115 : vector<16x16xf32> to vector<2x8x16xf32>
    %117 = vector.extract_strided_slice %66 {offsets = [0, 32], sizes = [16, 16], strides = [1, 1]} : vector<16x64xf32> to vector<16x16xf32>
    %118 = vector.shape_cast %117 : vector<16x16xf32> to vector<2x8x16xf32>
    %119 = vector.extract_strided_slice %72 {offsets = [0, 32], sizes = [16, 16], strides = [1, 1]} : vector<16x64xf32> to vector<16x16xf32>
    %120 = vector.shape_cast %119 : vector<16x16xf32> to vector<2x8x16xf32>
    "tpu.trace_start"() <{level = 10 : i32, message = "bqd,bkd->bqk"}> : () -> ()
    %cst_33 = arith.constant dense<0.000000e+00> : vector<2x8x8xf32>
    %121 = tpu.matmul %116, %118, %cst_33 {dimension_numbers = #tpu.dot_dimension_numbers<[2], [2], [1], [1], [0, 0, 0, 1, 1, 1], [0], [0]>} : vector<2x8x16xf32>, vector<2x8x16xf32>, vector<2x8x8xf32> -> vector<2x8x8xf32>
    "tpu.trace_stop"() : () -> ()
    %122 = vector.broadcast %31 : vector<2x1x8xf32> to vector<2x8x8xf32>
    %123 = arith.addf %121, %122 : vector<2x8x8xf32>
    %cst_34 = arith.constant dense<0xFF800000> : vector<2x8xf32>
    %124 = vector.multi_reduction <maximumf>, %123, %cst_34 [2] : vector<2x8x8xf32> to vector<2x8xf32>
    %125 = vector.shape_cast %124 : vector<2x8xf32> to vector<2x8x1xf32>
    %126 = vector.broadcast %125 : vector<2x8x1xf32> to vector<2x8x8xf32>
    %127 = arith.subf %123, %126 : vector<2x8x8xf32>
    %128 = math.exp %127 : vector<2x8x8xf32>
    %cst_35 = arith.constant dense<0.000000e+00> : vector<2x8xf32>
    %129 = vector.multi_reduction <add>, %128, %cst_35 [2] : vector<2x8x8xf32> to vector<2x8xf32>
    %130 = vector.shape_cast %129 : vector<2x8xf32> to vector<2x8x1xf32>
    %131 = tpu.reciprocal %130 {approx = true} : vector<2x8x1xf32> -> vector<2x8x1xf32>
    %132 = vector.broadcast %131 : vector<2x8x1xf32> to vector<2x8x8xf32>
    %133 = arith.mulf %128, %132 : vector<2x8x8xf32>
    "tpu.trace_start"() <{level = 10 : i32, message = "bqk,bkd->bqd"}> : () -> ()
    %cst_36 = arith.constant dense<0.000000e+00> : vector<2x8x16xf32>
    %134 = tpu.matmul %133, %120, %cst_36 {dimension_numbers = #tpu.dot_dimension_numbers<[2], [1], [1], [2], [0, 0, 0, 1, 1, 2], [0], [0]>} : vector<2x8x8xf32>, vector<2x8x16xf32>, vector<2x8x16xf32> -> vector<2x8x16xf32>
    "tpu.trace_stop"() : () -> ()
    %135 = vector.shape_cast %134 : vector<2x8x16xf32> to vector<16x16xf32>
    %136 = vector.extract_strided_slice %60 {offsets = [0, 48], sizes = [16, 16], strides = [1, 1]} : vector<16x64xf32> to vector<16x16xf32>
    %137 = vector.shape_cast %136 : vector<16x16xf32> to vector<2x8x16xf32>
    %138 = vector.extract_strided_slice %66 {offsets = [0, 48], sizes = [16, 16], strides = [1, 1]} : vector<16x64xf32> to vector<16x16xf32>
    %139 = vector.shape_cast %138 : vector<16x16xf32> to vector<2x8x16xf32>
    %140 = vector.extract_strided_slice %72 {offsets = [0, 48], sizes = [16, 16], strides = [1, 1]} : vector<16x64xf32> to vector<16x16xf32>
    %141 = vector.shape_cast %140 : vector<16x16xf32> to vector<2x8x16xf32>
    "tpu.trace_start"() <{level = 10 : i32, message = "bqd,bkd->bqk"}> : () -> ()
    %cst_37 = arith.constant dense<0.000000e+00> : vector<2x8x8xf32>
    %142 = tpu.matmul %137, %139, %cst_37 {dimension_numbers = #tpu.dot_dimension_numbers<[2], [2], [1], [1], [0, 0, 0, 1, 1, 1], [0], [0]>} : vector<2x8x16xf32>, vector<2x8x16xf32>, vector<2x8x8xf32> -> vector<2x8x8xf32>
    "tpu.trace_stop"() : () -> ()
    %143 = vector.broadcast %31 : vector<2x1x8xf32> to vector<2x8x8xf32>
    %144 = arith.addf %142, %143 : vector<2x8x8xf32>
    %cst_38 = arith.constant dense<0xFF800000> : vector<2x8xf32>
    %145 = vector.multi_reduction <maximumf>, %144, %cst_38 [2] : vector<2x8x8xf32> to vector<2x8xf32>
    %146 = vector.shape_cast %145 : vector<2x8xf32> to vector<2x8x1xf32>
    %147 = vector.broadcast %146 : vector<2x8x1xf32> to vector<2x8x8xf32>
    %148 = arith.subf %144, %147 : vector<2x8x8xf32>
    %149 = math.exp %148 : vector<2x8x8xf32>
    %cst_39 = arith.constant dense<0.000000e+00> : vector<2x8xf32>
    %150 = vector.multi_reduction <add>, %149, %cst_39 [2] : vector<2x8x8xf32> to vector<2x8xf32>
    %151 = vector.shape_cast %150 : vector<2x8xf32> to vector<2x8x1xf32>
    %152 = tpu.reciprocal %151 {approx = true} : vector<2x8x1xf32> -> vector<2x8x1xf32>
    %153 = vector.broadcast %152 : vector<2x8x1xf32> to vector<2x8x8xf32>
    %154 = arith.mulf %149, %153 : vector<2x8x8xf32>
    "tpu.trace_start"() <{level = 10 : i32, message = "bqk,bkd->bqd"}> : () -> ()
    %cst_40 = arith.constant dense<0.000000e+00> : vector<2x8x16xf32>
    %155 = tpu.matmul %154, %141, %cst_40 {dimension_numbers = #tpu.dot_dimension_numbers<[2], [1], [1], [2], [0, 0, 0, 1, 1, 2], [0], [0]>} : vector<2x8x8xf32>, vector<2x8x16xf32>, vector<2x8x16xf32> -> vector<2x8x16xf32>
    "tpu.trace_stop"() : () -> ()
    %156 = vector.shape_cast %155 : vector<2x8x16xf32> to vector<16x16xf32>
    %157 = tpu.concatenate %93, %114, %135, %156 in 1 : vector<16x16xf32>, vector<16x16xf32>, vector<16x16xf32>, vector<16x16xf32> -> vector<16x64xf32>
    %158 = arith.truncf %157 : vector<16x64xf32> to vector<16x64xbf16>
    %c0_41 = arith.constant 0 : index
    %c3 = arith.constant 3 : index
    %c0_42 = arith.constant 0 : index
    %c0_43 = arith.constant 0 : index
    %159 = vector.load %arg3[%c0_41, %c3, %c0_42, %c0_43] : memref<2x4x64x64xbf16, #tpu.memory_space<vmem>>, vector<1x1x64x64xbf16>
    %160 = vector.shape_cast %159 : vector<1x1x64x64xbf16> to vector<64x64xbf16>
    %cst_44 = arith.constant dense<0.000000e+00> : vector<16x64xf32>
    %161 = tpu.matmul %158, %160, %cst_44 {dimension_numbers = #tpu.dot_dimension_numbers<[1], [0], [0], [1], [0, 0, 1, 1], [], []>} : vector<16x64xbf16>, vector<64x64xbf16>, vector<16x64xf32> -> vector<16x64xf32>
    %162 = vector.shape_cast %41 : vector<64xf32> to vector<1x64xf32>
    %163 = vector.broadcast %162 : vector<1x64xf32> to vector<16x64xf32>
    %164 = arith.addf %161, %163 : vector<16x64xf32>
    %165 = arith.addf %29, %164 : vector<16x64xf32>
    %cst_45 = arith.constant dense<0.000000e+00> : vector<16xf32>
    %166 = vector.multi_reduction <add>, %165, %cst_45 [1] : vector<16x64xf32> to vector<16xf32>
    %167 = vector.shape_cast %166 : vector<16xf32> to vector<16x1xf32>
    %cst_46 = arith.constant 6.400000e+01 : f32
    %168 = vector.broadcast %cst_46 : f32 to vector<16x1xf32>
    %169 = arith.divf %167, %168 : vector<16x1xf32>
    %170 = vector.broadcast %169 : vector<16x1xf32> to vector<16x64xf32>
    %171 = arith.subf %165, %170 : vector<16x64xf32>
    %172 = arith.mulf %171, %171 : vector<16x64xf32>
    %cst_47 = arith.constant dense<0.000000e+00> : vector<16xf32>
    %173 = vector.multi_reduction <add>, %172, %cst_47 [1] : vector<16x64xf32> to vector<16xf32>
    %174 = vector.shape_cast %173 : vector<16xf32> to vector<16x1xf32>
    %cst_48 = arith.constant 6.400000e+01 : f32
    %175 = vector.broadcast %cst_48 : f32 to vector<16x1xf32>
    %176 = arith.divf %174, %175 : vector<16x1xf32>
    %177 = vector.broadcast %169 : vector<16x1xf32> to vector<16x64xf32>
    %178 = arith.subf %165, %177 : vector<16x64xf32>
    %cst_49 = arith.constant 9.99999996E-13 : f32
    %179 = vector.broadcast %cst_49 : f32 to vector<16x1xf32>
    %180 = arith.addf %176, %179 : vector<16x1xf32>
    %181 = math.rsqrt %180 : vector<16x1xf32>
    %182 = vector.broadcast %181 : vector<16x1xf32> to vector<16x64xf32>
    %183 = arith.mulf %178, %182 : vector<16x64xf32>
    %184 = vector.shape_cast %43 : vector<64xf32> to vector<1x64xf32>
    %185 = vector.broadcast %184 : vector<1x64xf32> to vector<16x64xf32>
    %186 = arith.mulf %183, %185 : vector<16x64xf32>
    %187 = vector.shape_cast %45 : vector<64xf32> to vector<1x64xf32>
    %188 = vector.broadcast %187 : vector<1x64xf32> to vector<16x64xf32>
    %189 = arith.addf %186, %188 : vector<16x64xf32>
    %190 = arith.truncf %189 : vector<16x64xf32> to vector<16x64xbf16>
    %c0_50 = arith.constant 0 : index
    %c0_51 = arith.constant 0 : index
    %c0_52 = arith.constant 0 : index
    %191 = vector.load %arg4[%c0_50, %c0_51, %c0_52] : memref<2x64x128xbf16, #tpu.memory_space<vmem>>, vector<1x64x128xbf16>
    %192 = vector.shape_cast %191 : vector<1x64x128xbf16> to vector<64x128xbf16>
    %cst_53 = arith.constant dense<0.000000e+00> : vector<16x128xf32>
    %193 = tpu.matmul %190, %192, %cst_53 {dimension_numbers = #tpu.dot_dimension_numbers<[1], [0], [0], [1], [0, 0, 1, 1], [], []>} : vector<16x64xbf16>, vector<64x128xbf16>, vector<16x128xf32> -> vector<16x128xf32>
    %194 = vector.shape_cast %51 : vector<128xf32> to vector<1x128xf32>
    %195 = vector.broadcast %194 : vector<1x128xf32> to vector<16x128xf32>
    %196 = arith.addf %193, %195 : vector<16x128xf32>
    %cst_54 = arith.constant 5.000000e-01 : f32
    %197 = vector.broadcast %cst_54 : f32 to vector<16x128xf32>
    %198 = arith.mulf %197, %196 : vector<16x128xf32>
    %cst_55 = arith.constant 2.000000e+00 : f32
    %199 = math.sqrt %cst_55 : f32
    %cst_56 = arith.constant 1.000000e+00 : f32
    %200 = arith.divf %cst_56, %199 : f32
    %201 = vector.broadcast %200 : f32 to vector<16x128xf32>
    %202 = arith.mulf %196, %201 : vector<16x128xf32>
    %203 = math.erf %202 : vector<16x128xf32>
    %cst_57 = arith.constant 1.000000e+00 : f32
    %204 = vector.broadcast %cst_57 : f32 to vector<16x128xf32>
    %205 = arith.addf %204, %203 : vector<16x128xf32>
    %206 = arith.mulf %198, %205 : vector<16x128xf32>
    %207 = arith.truncf %206 : vector<16x128xf32> to vector<16x128xbf16>
    %c0_58 = arith.constant 0 : index
    %c0_59 = arith.constant 0 : index
    %c0_60 = arith.constant 0 : index
    %208 = vector.load %arg5[%c0_58, %c0_59, %c0_60] : memref<2x128x64xbf16, #tpu.memory_space<vmem>>, vector<1x128x64xbf16>
    %209 = vector.shape_cast %208 : vector<1x128x64xbf16> to vector<128x64xbf16>
    %cst_61 = arith.constant dense<0.000000e+00> : vector<16x64xf32>
    %210 = tpu.matmul %207, %209, %cst_61 {dimension_numbers = #tpu.dot_dimension_numbers<[1], [0], [0], [1], [0, 0, 1, 1], [], []>} : vector<16x128xbf16>, vector<128x64xbf16>, vector<16x64xf32> -> vector<16x64xf32>
    %211 = vector.shape_cast %53 : vector<64xf32> to vector<1x64xf32>
    %212 = vector.broadcast %211 : vector<1x64xf32> to vector<16x64xf32>
    %213 = arith.addf %210, %212 : vector<16x64xf32>
    %214 = arith.addf %189, %213 : vector<16x64xf32>
    %cst_62 = arith.constant dense<0.000000e+00> : vector<16xf32>
    %215 = vector.multi_reduction <add>, %214, %cst_62 [1] : vector<16x64xf32> to vector<16xf32>
    %216 = vector.shape_cast %215 : vector<16xf32> to vector<16x1xf32>
    %cst_63 = arith.constant 6.400000e+01 : f32
    %217 = vector.broadcast %cst_63 : f32 to vector<16x1xf32>
    %218 = arith.divf %216, %217 : vector<16x1xf32>
    %219 = vector.broadcast %218 : vector<16x1xf32> to vector<16x64xf32>
    %220 = arith.subf %214, %219 : vector<16x64xf32>
    %221 = arith.mulf %220, %220 : vector<16x64xf32>
    %cst_64 = arith.constant dense<0.000000e+00> : vector<16xf32>
    %222 = vector.multi_reduction <add>, %221, %cst_64 [1] : vector<16x64xf32> to vector<16xf32>
    %223 = vector.shape_cast %222 : vector<16xf32> to vector<16x1xf32>
    %cst_65 = arith.constant 6.400000e+01 : f32
    %224 = vector.broadcast %cst_65 : f32 to vector<16x1xf32>
    %225 = arith.divf %223, %224 : vector<16x1xf32>
    %226 = vector.broadcast %218 : vector<16x1xf32> to vector<16x64xf32>
    %227 = arith.subf %214, %226 : vector<16x64xf32>
    %cst_66 = arith.constant 9.99999996E-13 : f32
    %228 = vector.broadcast %cst_66 : f32 to vector<16x1xf32>
    %229 = arith.addf %225, %228 : vector<16x1xf32>
    %230 = math.rsqrt %229 : vector<16x1xf32>
    %231 = vector.broadcast %230 : vector<16x1xf32> to vector<16x64xf32>
    %232 = arith.mulf %227, %231 : vector<16x64xf32>
    %233 = vector.shape_cast %47 : vector<64xf32> to vector<1x64xf32>
    %234 = vector.broadcast %233 : vector<1x64xf32> to vector<16x64xf32>
    %235 = arith.mulf %232, %234 : vector<16x64xf32>
    %236 = vector.shape_cast %49 : vector<64xf32> to vector<1x64xf32>
    %237 = vector.broadcast %236 : vector<1x64xf32> to vector<16x64xf32>
    %238 = arith.addf %235, %237 : vector<16x64xf32>
    %c1_67 = arith.constant 1 : index
    %c0_68 = arith.constant 0 : index
    %c0_69 = arith.constant 0 : index
    %239 = vector.load %arg6[%c1_67, %c0_68, %c0_69] : memref<2x6x128xf32, #tpu.memory_space<vmem>>, vector<1x6x128xf32>
    %240 = vector.shape_cast %239 : vector<1x6x128xf32> to vector<6x128xf32>
    %241 = vector.extract_strided_slice %240 {offsets = [0, 0], sizes = [1, 64], strides = [1, 1]} : vector<6x128xf32> to vector<1x64xf32>
    %242 = vector.shape_cast %241 : vector<1x64xf32> to vector<64xf32>
    %243 = vector.extract_strided_slice %240 {offsets = [0, 64], sizes = [1, 64], strides = [1, 1]} : vector<6x128xf32> to vector<1x64xf32>
    %244 = vector.shape_cast %243 : vector<1x64xf32> to vector<64xf32>
    %245 = vector.extract_strided_slice %240 {offsets = [1, 0], sizes = [1, 64], strides = [1, 1]} : vector<6x128xf32> to vector<1x64xf32>
    %246 = vector.shape_cast %245 : vector<1x64xf32> to vector<64xf32>
    %247 = vector.extract_strided_slice %240 {offsets = [1, 64], sizes = [1, 64], strides = [1, 1]} : vector<6x128xf32> to vector<1x64xf32>
    %248 = vector.shape_cast %247 : vector<1x64xf32> to vector<64xf32>
    %249 = vector.extract_strided_slice %240 {offsets = [2, 0], sizes = [1, 64], strides = [1, 1]} : vector<6x128xf32> to vector<1x64xf32>
    %250 = vector.shape_cast %249 : vector<1x64xf32> to vector<64xf32>
    %251 = vector.extract_strided_slice %240 {offsets = [2, 64], sizes = [1, 64], strides = [1, 1]} : vector<6x128xf32> to vector<1x64xf32>
    %252 = vector.shape_cast %251 : vector<1x64xf32> to vector<64xf32>
    %253 = vector.extract_strided_slice %240 {offsets = [3, 0], sizes = [1, 64], strides = [1, 1]} : vector<6x128xf32> to vector<1x64xf32>
    %254 = vector.shape_cast %253 : vector<1x64xf32> to vector<64xf32>
    %255 = vector.extract_strided_slice %240 {offsets = [3, 64], sizes = [1, 64], strides = [1, 1]} : vector<6x128xf32> to vector<1x64xf32>
    %256 = vector.shape_cast %255 : vector<1x64xf32> to vector<64xf32>
    %257 = vector.extract_strided_slice %240 {offsets = [4, 0], sizes = [1, 128], strides = [1, 1]} : vector<6x128xf32> to vector<1x128xf32>
    %258 = vector.shape_cast %257 : vector<1x128xf32> to vector<128xf32>
    %259 = vector.extract_strided_slice %240 {offsets = [5, 0], sizes = [1, 64], strides = [1, 1]} : vector<6x128xf32> to vector<1x64xf32>
    %260 = vector.shape_cast %259 : vector<1x64xf32> to vector<64xf32>
    %261 = arith.truncf %238 : vector<16x64xf32> to vector<16x64xbf16>
    %c1_70 = arith.constant 1 : index
    %c0_71 = arith.constant 0 : index
    %c0_72 = arith.constant 0 : index
    %c0_73 = arith.constant 0 : index
    %262 = vector.load %arg3[%c1_70, %c0_71, %c0_72, %c0_73] : memref<2x4x64x64xbf16, #tpu.memory_space<vmem>>, vector<1x1x64x64xbf16>
    %263 = vector.shape_cast %262 : vector<1x1x64x64xbf16> to vector<64x64xbf16>
    %cst_74 = arith.constant dense<0.000000e+00> : vector<16x64xf32>
    %264 = tpu.matmul %261, %263, %cst_74 {dimension_numbers = #tpu.dot_dimension_numbers<[1], [0], [0], [1], [0, 0, 1, 1], [], []>} : vector<16x64xbf16>, vector<64x64xbf16>, vector<16x64xf32> -> vector<16x64xf32>
    %265 = vector.shape_cast %242 : vector<64xf32> to vector<1x64xf32>
    %266 = vector.broadcast %265 : vector<1x64xf32> to vector<16x64xf32>
    %267 = arith.addf %264, %266 : vector<16x64xf32>
    %c1_75 = arith.constant 1 : index
    %c1_76 = arith.constant 1 : index
    %c0_77 = arith.constant 0 : index
    %c0_78 = arith.constant 0 : index
    %268 = vector.load %arg3[%c1_75, %c1_76, %c0_77, %c0_78] : memref<2x4x64x64xbf16, #tpu.memory_space<vmem>>, vector<1x1x64x64xbf16>
    %269 = vector.shape_cast %268 : vector<1x1x64x64xbf16> to vector<64x64xbf16>
    %cst_79 = arith.constant dense<0.000000e+00> : vector<16x64xf32>
    %270 = tpu.matmul %261, %269, %cst_79 {dimension_numbers = #tpu.dot_dimension_numbers<[1], [0], [0], [1], [0, 0, 1, 1], [], []>} : vector<16x64xbf16>, vector<64x64xbf16>, vector<16x64xf32> -> vector<16x64xf32>
    %271 = vector.shape_cast %244 : vector<64xf32> to vector<1x64xf32>
    %272 = vector.broadcast %271 : vector<1x64xf32> to vector<16x64xf32>
    %273 = arith.addf %270, %272 : vector<16x64xf32>
    %c1_80 = arith.constant 1 : index
    %c2_81 = arith.constant 2 : index
    %c0_82 = arith.constant 0 : index
    %c0_83 = arith.constant 0 : index
    %274 = vector.load %arg3[%c1_80, %c2_81, %c0_82, %c0_83] : memref<2x4x64x64xbf16, #tpu.memory_space<vmem>>, vector<1x1x64x64xbf16>
    %275 = vector.shape_cast %274 : vector<1x1x64x64xbf16> to vector<64x64xbf16>
    %cst_84 = arith.constant dense<0.000000e+00> : vector<16x64xf32>
    %276 = tpu.matmul %261, %275, %cst_84 {dimension_numbers = #tpu.dot_dimension_numbers<[1], [0], [0], [1], [0, 0, 1, 1], [], []>} : vector<16x64xbf16>, vector<64x64xbf16>, vector<16x64xf32> -> vector<16x64xf32>
    %277 = vector.shape_cast %246 : vector<64xf32> to vector<1x64xf32>
    %278 = vector.broadcast %277 : vector<1x64xf32> to vector<16x64xf32>
    %279 = arith.addf %276, %278 : vector<16x64xf32>
    %280 = vector.extract_strided_slice %267 {offsets = [0, 0], sizes = [16, 16], strides = [1, 1]} : vector<16x64xf32> to vector<16x16xf32>
    %281 = vector.shape_cast %280 : vector<16x16xf32> to vector<2x8x16xf32>
    %282 = vector.extract_strided_slice %273 {offsets = [0, 0], sizes = [16, 16], strides = [1, 1]} : vector<16x64xf32> to vector<16x16xf32>
    %283 = vector.shape_cast %282 : vector<16x16xf32> to vector<2x8x16xf32>
    %284 = vector.extract_strided_slice %279 {offsets = [0, 0], sizes = [16, 16], strides = [1, 1]} : vector<16x64xf32> to vector<16x16xf32>
    %285 = vector.shape_cast %284 : vector<16x16xf32> to vector<2x8x16xf32>
    "tpu.trace_start"() <{level = 10 : i32, message = "bqd,bkd->bqk"}> : () -> ()
    %cst_85 = arith.constant dense<0.000000e+00> : vector<2x8x8xf32>
    %286 = tpu.matmul %281, %283, %cst_85 {dimension_numbers = #tpu.dot_dimension_numbers<[2], [2], [1], [1], [0, 0, 0, 1, 1, 1], [0], [0]>} : vector<2x8x16xf32>, vector<2x8x16xf32>, vector<2x8x8xf32> -> vector<2x8x8xf32>
    "tpu.trace_stop"() : () -> ()
    %287 = vector.broadcast %31 : vector<2x1x8xf32> to vector<2x8x8xf32>
    %288 = arith.addf %286, %287 : vector<2x8x8xf32>
    %cst_86 = arith.constant dense<0xFF800000> : vector<2x8xf32>
    %289 = vector.multi_reduction <maximumf>, %288, %cst_86 [2] : vector<2x8x8xf32> to vector<2x8xf32>
    %290 = vector.shape_cast %289 : vector<2x8xf32> to vector<2x8x1xf32>
    %291 = vector.broadcast %290 : vector<2x8x1xf32> to vector<2x8x8xf32>
    %292 = arith.subf %288, %291 : vector<2x8x8xf32>
    %293 = math.exp %292 : vector<2x8x8xf32>
    %cst_87 = arith.constant dense<0.000000e+00> : vector<2x8xf32>
    %294 = vector.multi_reduction <add>, %293, %cst_87 [2] : vector<2x8x8xf32> to vector<2x8xf32>
    %295 = vector.shape_cast %294 : vector<2x8xf32> to vector<2x8x1xf32>
    %296 = tpu.reciprocal %295 {approx = true} : vector<2x8x1xf32> -> vector<2x8x1xf32>
    %297 = vector.broadcast %296 : vector<2x8x1xf32> to vector<2x8x8xf32>
    %298 = arith.mulf %293, %297 : vector<2x8x8xf32>
    "tpu.trace_start"() <{level = 10 : i32, message = "bqk,bkd->bqd"}> : () -> ()
    %cst_88 = arith.constant dense<0.000000e+00> : vector<2x8x16xf32>
    %299 = tpu.matmul %298, %285, %cst_88 {dimension_numbers = #tpu.dot_dimension_numbers<[2], [1], [1], [2], [0, 0, 0, 1, 1, 2], [0], [0]>} : vector<2x8x8xf32>, vector<2x8x16xf32>, vector<2x8x16xf32> -> vector<2x8x16xf32>
    "tpu.trace_stop"() : () -> ()
    %300 = vector.shape_cast %299 : vector<2x8x16xf32> to vector<16x16xf32>
    %301 = vector.extract_strided_slice %267 {offsets = [0, 16], sizes = [16, 16], strides = [1, 1]} : vector<16x64xf32> to vector<16x16xf32>
    %302 = vector.shape_cast %301 : vector<16x16xf32> to vector<2x8x16xf32>
    %303 = vector.extract_strided_slice %273 {offsets = [0, 16], sizes = [16, 16], strides = [1, 1]} : vector<16x64xf32> to vector<16x16xf32>
    %304 = vector.shape_cast %303 : vector<16x16xf32> to vector<2x8x16xf32>
    %305 = vector.extract_strided_slice %279 {offsets = [0, 16], sizes = [16, 16], strides = [1, 1]} : vector<16x64xf32> to vector<16x16xf32>
    %306 = vector.shape_cast %305 : vector<16x16xf32> to vector<2x8x16xf32>
    "tpu.trace_start"() <{level = 10 : i32, message = "bqd,bkd->bqk"}> : () -> ()
    %cst_89 = arith.constant dense<0.000000e+00> : vector<2x8x8xf32>
    %307 = tpu.matmul %302, %304, %cst_89 {dimension_numbers = #tpu.dot_dimension_numbers<[2], [2], [1], [1], [0, 0, 0, 1, 1, 1], [0], [0]>} : vector<2x8x16xf32>, vector<2x8x16xf32>, vector<2x8x8xf32> -> vector<2x8x8xf32>
    "tpu.trace_stop"() : () -> ()
    %308 = vector.broadcast %31 : vector<2x1x8xf32> to vector<2x8x8xf32>
    %309 = arith.addf %307, %308 : vector<2x8x8xf32>
    %cst_90 = arith.constant dense<0xFF800000> : vector<2x8xf32>
    %310 = vector.multi_reduction <maximumf>, %309, %cst_90 [2] : vector<2x8x8xf32> to vector<2x8xf32>
    %311 = vector.shape_cast %310 : vector<2x8xf32> to vector<2x8x1xf32>
    %312 = vector.broadcast %311 : vector<2x8x1xf32> to vector<2x8x8xf32>
    %313 = arith.subf %309, %312 : vector<2x8x8xf32>
    %314 = math.exp %313 : vector<2x8x8xf32>
    %cst_91 = arith.constant dense<0.000000e+00> : vector<2x8xf32>
    %315 = vector.multi_reduction <add>, %314, %cst_91 [2] : vector<2x8x8xf32> to vector<2x8xf32>
    %316 = vector.shape_cast %315 : vector<2x8xf32> to vector<2x8x1xf32>
    %317 = tpu.reciprocal %316 {approx = true} : vector<2x8x1xf32> -> vector<2x8x1xf32>
    %318 = vector.broadcast %317 : vector<2x8x1xf32> to vector<2x8x8xf32>
    %319 = arith.mulf %314, %318 : vector<2x8x8xf32>
    "tpu.trace_start"() <{level = 10 : i32, message = "bqk,bkd->bqd"}> : () -> ()
    %cst_92 = arith.constant dense<0.000000e+00> : vector<2x8x16xf32>
    %320 = tpu.matmul %319, %306, %cst_92 {dimension_numbers = #tpu.dot_dimension_numbers<[2], [1], [1], [2], [0, 0, 0, 1, 1, 2], [0], [0]>} : vector<2x8x8xf32>, vector<2x8x16xf32>, vector<2x8x16xf32> -> vector<2x8x16xf32>
    "tpu.trace_stop"() : () -> ()
    %321 = vector.shape_cast %320 : vector<2x8x16xf32> to vector<16x16xf32>
    %322 = vector.extract_strided_slice %267 {offsets = [0, 32], sizes = [16, 16], strides = [1, 1]} : vector<16x64xf32> to vector<16x16xf32>
    %323 = vector.shape_cast %322 : vector<16x16xf32> to vector<2x8x16xf32>
    %324 = vector.extract_strided_slice %273 {offsets = [0, 32], sizes = [16, 16], strides = [1, 1]} : vector<16x64xf32> to vector<16x16xf32>
    %325 = vector.shape_cast %324 : vector<16x16xf32> to vector<2x8x16xf32>
    %326 = vector.extract_strided_slice %279 {offsets = [0, 32], sizes = [16, 16], strides = [1, 1]} : vector<16x64xf32> to vector<16x16xf32>
    %327 = vector.shape_cast %326 : vector<16x16xf32> to vector<2x8x16xf32>
    "tpu.trace_start"() <{level = 10 : i32, message = "bqd,bkd->bqk"}> : () -> ()
    %cst_93 = arith.constant dense<0.000000e+00> : vector<2x8x8xf32>
    %328 = tpu.matmul %323, %325, %cst_93 {dimension_numbers = #tpu.dot_dimension_numbers<[2], [2], [1], [1], [0, 0, 0, 1, 1, 1], [0], [0]>} : vector<2x8x16xf32>, vector<2x8x16xf32>, vector<2x8x8xf32> -> vector<2x8x8xf32>
    "tpu.trace_stop"() : () -> ()
    %329 = vector.broadcast %31 : vector<2x1x8xf32> to vector<2x8x8xf32>
    %330 = arith.addf %328, %329 : vector<2x8x8xf32>
    %cst_94 = arith.constant dense<0xFF800000> : vector<2x8xf32>
    %331 = vector.multi_reduction <maximumf>, %330, %cst_94 [2] : vector<2x8x8xf32> to vector<2x8xf32>
    %332 = vector.shape_cast %331 : vector<2x8xf32> to vector<2x8x1xf32>
    %333 = vector.broadcast %332 : vector<2x8x1xf32> to vector<2x8x8xf32>
    %334 = arith.subf %330, %333 : vector<2x8x8xf32>
    %335 = math.exp %334 : vector<2x8x8xf32>
    %cst_95 = arith.constant dense<0.000000e+00> : vector<2x8xf32>
    %336 = vector.multi_reduction <add>, %335, %cst_95 [2] : vector<2x8x8xf32> to vector<2x8xf32>
    %337 = vector.shape_cast %336 : vector<2x8xf32> to vector<2x8x1xf32>
    %338 = tpu.reciprocal %337 {approx = true} : vector<2x8x1xf32> -> vector<2x8x1xf32>
    %339 = vector.broadcast %338 : vector<2x8x1xf32> to vector<2x8x8xf32>
    %340 = arith.mulf %335, %339 : vector<2x8x8xf32>
    "tpu.trace_start"() <{level = 10 : i32, message = "bqk,bkd->bqd"}> : () -> ()
    %cst_96 = arith.constant dense<0.000000e+00> : vector<2x8x16xf32>
    %341 = tpu.matmul %340, %327, %cst_96 {dimension_numbers = #tpu.dot_dimension_numbers<[2], [1], [1], [2], [0, 0, 0, 1, 1, 2], [0], [0]>} : vector<2x8x8xf32>, vector<2x8x16xf32>, vector<2x8x16xf32> -> vector<2x8x16xf32>
    "tpu.trace_stop"() : () -> ()
    %342 = vector.shape_cast %341 : vector<2x8x16xf32> to vector<16x16xf32>
    %343 = vector.extract_strided_slice %267 {offsets = [0, 48], sizes = [16, 16], strides = [1, 1]} : vector<16x64xf32> to vector<16x16xf32>
    %344 = vector.shape_cast %343 : vector<16x16xf32> to vector<2x8x16xf32>
    %345 = vector.extract_strided_slice %273 {offsets = [0, 48], sizes = [16, 16], strides = [1, 1]} : vector<16x64xf32> to vector<16x16xf32>
    %346 = vector.shape_cast %345 : vector<16x16xf32> to vector<2x8x16xf32>
    %347 = vector.extract_strided_slice %279 {offsets = [0, 48], sizes = [16, 16], strides = [1, 1]} : vector<16x64xf32> to vector<16x16xf32>
    %348 = vector.shape_cast %347 : vector<16x16xf32> to vector<2x8x16xf32>
    "tpu.trace_start"() <{level = 10 : i32, message = "bqd,bkd->bqk"}> : () -> ()
    %cst_97 = arith.constant dense<0.000000e+00> : vector<2x8x8xf32>
    %349 = tpu.matmul %344, %346, %cst_97 {dimension_numbers = #tpu.dot_dimension_numbers<[2], [2], [1], [1], [0, 0, 0, 1, 1, 1], [0], [0]>} : vector<2x8x16xf32>, vector<2x8x16xf32>, vector<2x8x8xf32> -> vector<2x8x8xf32>
    "tpu.trace_stop"() : () -> ()
    %350 = vector.broadcast %31 : vector<2x1x8xf32> to vector<2x8x8xf32>
    %351 = arith.addf %349, %350 : vector<2x8x8xf32>
    %cst_98 = arith.constant dense<0xFF800000> : vector<2x8xf32>
    %352 = vector.multi_reduction <maximumf>, %351, %cst_98 [2] : vector<2x8x8xf32> to vector<2x8xf32>
    %353 = vector.shape_cast %352 : vector<2x8xf32> to vector<2x8x1xf32>
    %354 = vector.broadcast %353 : vector<2x8x1xf32> to vector<2x8x8xf32>
    %355 = arith.subf %351, %354 : vector<2x8x8xf32>
    %356 = math.exp %355 : vector<2x8x8xf32>
    %cst_99 = arith.constant dense<0.000000e+00> : vector<2x8xf32>
    %357 = vector.multi_reduction <add>, %356, %cst_99 [2] : vector<2x8x8xf32> to vector<2x8xf32>
    %358 = vector.shape_cast %357 : vector<2x8xf32> to vector<2x8x1xf32>
    %359 = tpu.reciprocal %358 {approx = true} : vector<2x8x1xf32> -> vector<2x8x1xf32>
    %360 = vector.broadcast %359 : vector<2x8x1xf32> to vector<2x8x8xf32>
    %361 = arith.mulf %356, %360 : vector<2x8x8xf32>
    "tpu.trace_start"() <{level = 10 : i32, message = "bqk,bkd->bqd"}> : () -> ()
    %cst_100 = arith.constant dense<0.000000e+00> : vector<2x8x16xf32>
    %362 = tpu.matmul %361, %348, %cst_100 {dimension_numbers = #tpu.dot_dimension_numbers<[2], [1], [1], [2], [0, 0, 0, 1, 1, 2], [0], [0]>} : vector<2x8x8xf32>, vector<2x8x16xf32>, vector<2x8x16xf32> -> vector<2x8x16xf32>
    "tpu.trace_stop"() : () -> ()
    %363 = vector.shape_cast %362 : vector<2x8x16xf32> to vector<16x16xf32>
    %364 = tpu.concatenate %300, %321, %342, %363 in 1 : vector<16x16xf32>, vector<16x16xf32>, vector<16x16xf32>, vector<16x16xf32> -> vector<16x64xf32>
    %365 = arith.truncf %364 : vector<16x64xf32> to vector<16x64xbf16>
    %c1_101 = arith.constant 1 : index
    %c3_102 = arith.constant 3 : index
    %c0_103 = arith.constant 0 : index
    %c0_104 = arith.constant 0 : index
    %366 = vector.load %arg3[%c1_101, %c3_102, %c0_103, %c0_104] : memref<2x4x64x64xbf16, #tpu.memory_space<vmem>>, vector<1x1x64x64xbf16>
    %367 = vector.shape_cast %366 : vector<1x1x64x64xbf16> to vector<64x64xbf16>
    %cst_105 = arith.constant dense<0.000000e+00> : vector<16x64xf32>
    %368 = tpu.matmul %365, %367, %cst_105 {dimension_numbers = #tpu.dot_dimension_numbers<[1], [0], [0], [1], [0, 0, 1, 1], [], []>} : vector<16x64xbf16>, vector<64x64xbf16>, vector<16x64xf32> -> vector<16x64xf32>
    %369 = vector.shape_cast %248 : vector<64xf32> to vector<1x64xf32>
    %370 = vector.broadcast %369 : vector<1x64xf32> to vector<16x64xf32>
    %371 = arith.addf %368, %370 : vector<16x64xf32>
    %372 = arith.addf %238, %371 : vector<16x64xf32>
    %cst_106 = arith.constant dense<0.000000e+00> : vector<16xf32>
    %373 = vector.multi_reduction <add>, %372, %cst_106 [1] : vector<16x64xf32> to vector<16xf32>
    %374 = vector.shape_cast %373 : vector<16xf32> to vector<16x1xf32>
    %cst_107 = arith.constant 6.400000e+01 : f32
    %375 = vector.broadcast %cst_107 : f32 to vector<16x1xf32>
    %376 = arith.divf %374, %375 : vector<16x1xf32>
    %377 = vector.broadcast %376 : vector<16x1xf32> to vector<16x64xf32>
    %378 = arith.subf %372, %377 : vector<16x64xf32>
    %379 = arith.mulf %378, %378 : vector<16x64xf32>
    %cst_108 = arith.constant dense<0.000000e+00> : vector<16xf32>
    %380 = vector.multi_reduction <add>, %379, %cst_108 [1] : vector<16x64xf32> to vector<16xf32>
    %381 = vector.shape_cast %380 : vector<16xf32> to vector<16x1xf32>
    %cst_109 = arith.constant 6.400000e+01 : f32
    %382 = vector.broadcast %cst_109 : f32 to vector<16x1xf32>
    %383 = arith.divf %381, %382 : vector<16x1xf32>
    %384 = vector.broadcast %376 : vector<16x1xf32> to vector<16x64xf32>
    %385 = arith.subf %372, %384 : vector<16x64xf32>
    %cst_110 = arith.constant 9.99999996E-13 : f32
    %386 = vector.broadcast %cst_110 : f32 to vector<16x1xf32>
    %387 = arith.addf %383, %386 : vector<16x1xf32>
    %388 = math.rsqrt %387 : vector<16x1xf32>
    %389 = vector.broadcast %388 : vector<16x1xf32> to vector<16x64xf32>
    %390 = arith.mulf %385, %389 : vector<16x64xf32>
    %391 = vector.shape_cast %250 : vector<64xf32> to vector<1x64xf32>
    %392 = vector.broadcast %391 : vector<1x64xf32> to vector<16x64xf32>
    %393 = arith.mulf %390, %392 : vector<16x64xf32>
    %394 = vector.shape_cast %252 : vector<64xf32> to vector<1x64xf32>
    %395 = vector.broadcast %394 : vector<1x64xf32> to vector<16x64xf32>
    %396 = arith.addf %393, %395 : vector<16x64xf32>
    %397 = arith.truncf %396 : vector<16x64xf32> to vector<16x64xbf16>
    %c1_111 = arith.constant 1 : index
    %c0_112 = arith.constant 0 : index
    %c0_113 = arith.constant 0 : index
    %398 = vector.load %arg4[%c1_111, %c0_112, %c0_113] : memref<2x64x128xbf16, #tpu.memory_space<vmem>>, vector<1x64x128xbf16>
    %399 = vector.shape_cast %398 : vector<1x64x128xbf16> to vector<64x128xbf16>
    %cst_114 = arith.constant dense<0.000000e+00> : vector<16x128xf32>
    %400 = tpu.matmul %397, %399, %cst_114 {dimension_numbers = #tpu.dot_dimension_numbers<[1], [0], [0], [1], [0, 0, 1, 1], [], []>} : vector<16x64xbf16>, vector<64x128xbf16>, vector<16x128xf32> -> vector<16x128xf32>
    %401 = vector.shape_cast %258 : vector<128xf32> to vector<1x128xf32>
    %402 = vector.broadcast %401 : vector<1x128xf32> to vector<16x128xf32>
    %403 = arith.addf %400, %402 : vector<16x128xf32>
    %cst_115 = arith.constant 5.000000e-01 : f32
    %404 = vector.broadcast %cst_115 : f32 to vector<16x128xf32>
    %405 = arith.mulf %404, %403 : vector<16x128xf32>
    %cst_116 = arith.constant 2.000000e+00 : f32
    %406 = math.sqrt %cst_116 : f32
    %cst_117 = arith.constant 1.000000e+00 : f32
    %407 = arith.divf %cst_117, %406 : f32
    %408 = vector.broadcast %407 : f32 to vector<16x128xf32>
    %409 = arith.mulf %403, %408 : vector<16x128xf32>
    %410 = math.erf %409 : vector<16x128xf32>
    %cst_118 = arith.constant 1.000000e+00 : f32
    %411 = vector.broadcast %cst_118 : f32 to vector<16x128xf32>
    %412 = arith.addf %411, %410 : vector<16x128xf32>
    %413 = arith.mulf %405, %412 : vector<16x128xf32>
    %414 = arith.truncf %413 : vector<16x128xf32> to vector<16x128xbf16>
    %c1_119 = arith.constant 1 : index
    %c0_120 = arith.constant 0 : index
    %c0_121 = arith.constant 0 : index
    %415 = vector.load %arg5[%c1_119, %c0_120, %c0_121] : memref<2x128x64xbf16, #tpu.memory_space<vmem>>, vector<1x128x64xbf16>
    %416 = vector.shape_cast %415 : vector<1x128x64xbf16> to vector<128x64xbf16>
    %cst_122 = arith.constant dense<0.000000e+00> : vector<16x64xf32>
    %417 = tpu.matmul %414, %416, %cst_122 {dimension_numbers = #tpu.dot_dimension_numbers<[1], [0], [0], [1], [0, 0, 1, 1], [], []>} : vector<16x128xbf16>, vector<128x64xbf16>, vector<16x64xf32> -> vector<16x64xf32>
    %418 = vector.shape_cast %260 : vector<64xf32> to vector<1x64xf32>
    %419 = vector.broadcast %418 : vector<1x64xf32> to vector<16x64xf32>
    %420 = arith.addf %417, %419 : vector<16x64xf32>
    %421 = arith.addf %396, %420 : vector<16x64xf32>
    %cst_123 = arith.constant dense<0.000000e+00> : vector<16xf32>
    %422 = vector.multi_reduction <add>, %421, %cst_123 [1] : vector<16x64xf32> to vector<16xf32>
    %423 = vector.shape_cast %422 : vector<16xf32> to vector<16x1xf32>
    %cst_124 = arith.constant 6.400000e+01 : f32
    %424 = vector.broadcast %cst_124 : f32 to vector<16x1xf32>
    %425 = arith.divf %423, %424 : vector<16x1xf32>
    %426 = vector.broadcast %425 : vector<16x1xf32> to vector<16x64xf32>
    %427 = arith.subf %421, %426 : vector<16x64xf32>
    %428 = arith.mulf %427, %427 : vector<16x64xf32>
    %cst_125 = arith.constant dense<0.000000e+00> : vector<16xf32>
    %429 = vector.multi_reduction <add>, %428, %cst_125 [1] : vector<16x64xf32> to vector<16xf32>
    %430 = vector.shape_cast %429 : vector<16xf32> to vector<16x1xf32>
    %cst_126 = arith.constant 6.400000e+01 : f32
    %431 = vector.broadcast %cst_126 : f32 to vector<16x1xf32>
    %432 = arith.divf %430, %431 : vector<16x1xf32>
    %433 = vector.broadcast %425 : vector<16x1xf32> to vector<16x64xf32>
    %434 = arith.subf %421, %433 : vector<16x64xf32>
    %cst_127 = arith.constant 9.99999996E-13 : f32
    %435 = vector.broadcast %cst_127 : f32 to vector<16x1xf32>
    %436 = arith.addf %432, %435 : vector<16x1xf32>
    %437 = math.rsqrt %436 : vector<16x1xf32>
    %438 = vector.broadcast %437 : vector<16x1xf32> to vector<16x64xf32>
    %439 = arith.mulf %434, %438 : vector<16x64xf32>
    %440 = vector.shape_cast %254 : vector<64xf32> to vector<1x64xf32>
    %441 = vector.broadcast %440 : vector<1x64xf32> to vector<16x64xf32>
    %442 = arith.mulf %439, %441 : vector<16x64xf32>
    %443 = vector.shape_cast %256 : vector<64xf32> to vector<1x64xf32>
    %444 = vector.broadcast %443 : vector<1x64xf32> to vector<16x64xf32>
    %445 = arith.addf %442, %444 : vector<16x64xf32>
    %446 = vector.shape_cast %445 : vector<16x64xf32> to vector<2x8x64xf32>
    %447 = vector.extract_strided_slice %446 {offsets = [0, 0, 0], sizes = [2, 1, 64], strides = [1, 1, 1]} : vector<2x8x64xf32> to vector<2x1x64xf32>
    %448 = vector.shape_cast %447 : vector<2x1x64xf32> to vector<2x64xf32>
    %c0_128 = arith.constant 0 : index
    %c0_129 = arith.constant 0 : index
    %c0_130 = arith.constant 0 : index
    %449 = vector.load %arg8[%c0_128, %c0_129, %c0_130] : memref<3x64x128xbf16, #tpu.memory_space<vmem>>, vector<3x64x128xbf16>
    %450 = vector.extract_strided_slice %449 {offsets = [0, 0, 0], sizes = [1, 64, 48], strides = [1, 1, 1]} : vector<3x64x128xbf16> to vector<1x64x48xbf16>
    %451 = vector.shape_cast %450 : vector<1x64x48xbf16> to vector<64x48xbf16>
    %452 = vector.extract_strided_slice %449 {offsets = [1, 0, 0], sizes = [1, 48, 32], strides = [1, 1, 1]} : vector<3x64x128xbf16> to vector<1x48x32xbf16>
    %453 = vector.shape_cast %452 : vector<1x48x32xbf16> to vector<48x32xbf16>
    %454 = vector.extract_strided_slice %449 {offsets = [2, 0, 0], sizes = [1, 32, 10], strides = [1, 1, 1]} : vector<3x64x128xbf16> to vector<1x32x10xbf16>
    %455 = vector.shape_cast %454 : vector<1x32x10xbf16> to vector<32x10xbf16>
    %456 = arith.truncf %448 : vector<2x64xf32> to vector<2x64xbf16>
    %cst_131 = arith.constant dense<0.000000e+00> : vector<2x48xf32>
    %457 = tpu.matmul %456, %451, %cst_131 {dimension_numbers = #tpu.dot_dimension_numbers<[1], [0], [0], [1], [0, 0, 1, 1], [], []>} : vector<2x64xbf16>, vector<64x48xbf16>, vector<2x48xf32> -> vector<2x48xf32>
    %458 = vector.extract_strided_slice %0 {offsets = [1, 0], sizes = [1, 48], strides = [1, 1]} : vector<8x128xf32> to vector<1x48xf32>
    %459 = vector.shape_cast %458 : vector<1x48xf32> to vector<48xf32>
    %460 = vector.shape_cast %459 : vector<48xf32> to vector<1x48xf32>
    %461 = vector.broadcast %460 : vector<1x48xf32> to vector<2x48xf32>
    %462 = arith.addf %457, %461 : vector<2x48xf32>
    %cst_132 = arith.constant 5.000000e-01 : f32
    %463 = vector.broadcast %cst_132 : f32 to vector<2x48xf32>
    %464 = arith.mulf %463, %462 : vector<2x48xf32>
    %cst_133 = arith.constant 2.000000e+00 : f32
    %465 = math.sqrt %cst_133 : f32
    %cst_134 = arith.constant 1.000000e+00 : f32
    %466 = arith.divf %cst_134, %465 : f32
    %467 = vector.broadcast %466 : f32 to vector<2x48xf32>
    %468 = arith.mulf %462, %467 : vector<2x48xf32>
    %469 = math.erf %468 : vector<2x48xf32>
    %cst_135 = arith.constant 1.000000e+00 : f32
    %470 = vector.broadcast %cst_135 : f32 to vector<2x48xf32>
    %471 = arith.addf %470, %469 : vector<2x48xf32>
    %472 = arith.mulf %464, %471 : vector<2x48xf32>
    %473 = vector.extract_strided_slice %0 {offsets = [2, 0], sizes = [1, 48], strides = [1, 1]} : vector<8x128xf32> to vector<1x48xf32>
    %474 = vector.shape_cast %473 : vector<1x48xf32> to vector<48xf32>
    %475 = vector.extract_strided_slice %0 {offsets = [3, 0], sizes = [1, 48], strides = [1, 1]} : vector<8x128xf32> to vector<1x48xf32>
    %476 = vector.shape_cast %475 : vector<1x48xf32> to vector<48xf32>
    %cst_136 = arith.constant dense<0.000000e+00> : vector<2xf32>
    %477 = vector.multi_reduction <add>, %472, %cst_136 [1] : vector<2x48xf32> to vector<2xf32>
    %478 = vector.shape_cast %477 : vector<2xf32> to vector<2x1xf32>
    %cst_137 = arith.constant 4.800000e+01 : f32
    %479 = vector.broadcast %cst_137 : f32 to vector<2x1xf32>
    %480 = arith.divf %478, %479 : vector<2x1xf32>
    %481 = vector.broadcast %480 : vector<2x1xf32> to vector<2x48xf32>
    %482 = arith.subf %472, %481 : vector<2x48xf32>
    %483 = arith.mulf %482, %482 : vector<2x48xf32>
    %cst_138 = arith.constant dense<0.000000e+00> : vector<2xf32>
    %484 = vector.multi_reduction <add>, %483, %cst_138 [1] : vector<2x48xf32> to vector<2xf32>
    %485 = vector.shape_cast %484 : vector<2xf32> to vector<2x1xf32>
    %cst_139 = arith.constant 4.800000e+01 : f32
    %486 = vector.broadcast %cst_139 : f32 to vector<2x1xf32>
    %487 = arith.divf %485, %486 : vector<2x1xf32>
    %488 = vector.broadcast %480 : vector<2x1xf32> to vector<2x48xf32>
    %489 = arith.subf %472, %488 : vector<2x48xf32>
    %cst_140 = arith.constant 9.99999974E-6 : f32
    %490 = vector.broadcast %cst_140 : f32 to vector<2x1xf32>
    %491 = arith.addf %487, %490 : vector<2x1xf32>
    %492 = math.rsqrt %491 : vector<2x1xf32>
    %493 = vector.broadcast %492 : vector<2x1xf32> to vector<2x48xf32>
    %494 = arith.mulf %489, %493 : vector<2x48xf32>
    %495 = vector.shape_cast %474 : vector<48xf32> to vector<1x48xf32>
    %496 = vector.broadcast %495 : vector<1x48xf32> to vector<2x48xf32>
    %497 = arith.mulf %494, %496 : vector<2x48xf32>
    %498 = vector.shape_cast %476 : vector<48xf32> to vector<1x48xf32>
    %499 = vector.broadcast %498 : vector<1x48xf32> to vector<2x48xf32>
    %500 = arith.addf %497, %499 : vector<2x48xf32>
    %501 = arith.truncf %500 : vector<2x48xf32> to vector<2x48xbf16>
    %cst_141 = arith.constant dense<0.000000e+00> : vector<2x32xf32>
    %502 = tpu.matmul %501, %453, %cst_141 {dimension_numbers = #tpu.dot_dimension_numbers<[1], [0], [0], [1], [0, 0, 1, 1], [], []>} : vector<2x48xbf16>, vector<48x32xbf16>, vector<2x32xf32> -> vector<2x32xf32>
    %503 = vector.extract_strided_slice %0 {offsets = [4, 0], sizes = [1, 32], strides = [1, 1]} : vector<8x128xf32> to vector<1x32xf32>
    %504 = vector.shape_cast %503 : vector<1x32xf32> to vector<32xf32>
    %505 = vector.shape_cast %504 : vector<32xf32> to vector<1x32xf32>
    %506 = vector.broadcast %505 : vector<1x32xf32> to vector<2x32xf32>
    %507 = arith.addf %502, %506 : vector<2x32xf32>
    %508 = vector.extract_strided_slice %0 {offsets = [5, 0], sizes = [1, 32], strides = [1, 1]} : vector<8x128xf32> to vector<1x32xf32>
    %509 = vector.shape_cast %508 : vector<1x32xf32> to vector<32xf32>
    %510 = vector.extract_strided_slice %0 {offsets = [6, 0], sizes = [1, 32], strides = [1, 1]} : vector<8x128xf32> to vector<1x32xf32>
    %511 = vector.shape_cast %510 : vector<1x32xf32> to vector<32xf32>
    %cst_142 = arith.constant dense<0.000000e+00> : vector<2xf32>
    %512 = vector.multi_reduction <add>, %507, %cst_142 [1] : vector<2x32xf32> to vector<2xf32>
    %513 = vector.shape_cast %512 : vector<2xf32> to vector<2x1xf32>
    %cst_143 = arith.constant 3.200000e+01 : f32
    %514 = vector.broadcast %cst_143 : f32 to vector<2x1xf32>
    %515 = arith.divf %513, %514 : vector<2x1xf32>
    %516 = vector.broadcast %515 : vector<2x1xf32> to vector<2x32xf32>
    %517 = arith.subf %507, %516 : vector<2x32xf32>
    %518 = arith.mulf %517, %517 : vector<2x32xf32>
    %cst_144 = arith.constant dense<0.000000e+00> : vector<2xf32>
    %519 = vector.multi_reduction <add>, %518, %cst_144 [1] : vector<2x32xf32> to vector<2xf32>
    %520 = vector.shape_cast %519 : vector<2xf32> to vector<2x1xf32>
    %cst_145 = arith.constant 3.200000e+01 : f32
    %521 = vector.broadcast %cst_145 : f32 to vector<2x1xf32>
    %522 = arith.divf %520, %521 : vector<2x1xf32>
    %523 = vector.broadcast %515 : vector<2x1xf32> to vector<2x32xf32>
    %524 = arith.subf %507, %523 : vector<2x32xf32>
    %cst_146 = arith.constant 9.99999974E-6 : f32
    %525 = vector.broadcast %cst_146 : f32 to vector<2x1xf32>
    %526 = arith.addf %522, %525 : vector<2x1xf32>
    %527 = math.rsqrt %526 : vector<2x1xf32>
    %528 = vector.broadcast %527 : vector<2x1xf32> to vector<2x32xf32>
    %529 = arith.mulf %524, %528 : vector<2x32xf32>
    %530 = vector.shape_cast %509 : vector<32xf32> to vector<1x32xf32>
    %531 = vector.broadcast %530 : vector<1x32xf32> to vector<2x32xf32>
    %532 = arith.mulf %529, %531 : vector<2x32xf32>
    %533 = vector.shape_cast %511 : vector<32xf32> to vector<1x32xf32>
    %534 = vector.broadcast %533 : vector<1x32xf32> to vector<2x32xf32>
    %535 = arith.addf %532, %534 : vector<2x32xf32>
    %536 = arith.truncf %535 : vector<2x32xf32> to vector<2x32xbf16>
    %cst_147 = arith.constant dense<0.000000e+00> : vector<2x10xf32>
    %537 = tpu.matmul %536, %455, %cst_147 {dimension_numbers = #tpu.dot_dimension_numbers<[1], [0], [0], [1], [0, 0, 1, 1], [], []>} : vector<2x32xbf16>, vector<32x10xbf16>, vector<2x10xf32> -> vector<2x10xf32>
    %538 = vector.extract_strided_slice %0 {offsets = [7, 0], sizes = [1, 10], strides = [1, 1]} : vector<8x128xf32> to vector<1x10xf32>
    %539 = vector.shape_cast %538 : vector<1x10xf32> to vector<10xf32>
    %540 = vector.shape_cast %539 : vector<10xf32> to vector<1x10xf32>
    %541 = vector.broadcast %540 : vector<1x10xf32> to vector<2x10xf32>
    %542 = arith.addf %537, %541 : vector<2x10xf32>
    %c0_148 = arith.constant 0 : index
    %c0_149 = arith.constant 0 : index
    %543 = vector.load %arg9[%c0_148, %c0_149] : memref<2x128xf32, #tpu.memory_space<vmem>>, vector<2x32xf32>
    tpu.vector_store %arg9[%c0_148, %c0_149], %535 {strides = array<i32>} : memref<2x128xf32, #tpu.memory_space<vmem>>, vector<2x32xf32>,
    %c0_150 = arith.constant 0 : index
    %c32 = arith.constant 32 : index
    %544 = vector.load %arg9[%c0_150, %c32] : memref<2x128xf32, #tpu.memory_space<vmem>>, vector<2x10xf32>
    tpu.vector_store %arg9[%c0_150, %c32], %542 {strides = array<i32>} : memref<2x128xf32, #tpu.memory_space<vmem>>, vector<2x10xf32>,
    return
  }
  func.func @transform_0(%arg0: i32) -> (i32, i32) {
    %c0_i32 = arith.constant 0 : i32
    %c0_i32_0 = arith.constant 0 : i32
    %c0_i32_1 = arith.constant 0 : i32
    return %c0_i32, %c0_i32_0 : i32, i32
  }
  func.func @transform_1(%arg0: i32) -> (i32, i32) {
    %c0_i32 = arith.constant 0 : i32
    %c0_i32_0 = arith.constant 0 : i32
    %c0_i32_1 = arith.constant 0 : i32
    return %c0_i32, %c0_i32_0 : i32, i32
  }
  func.func @transform_2(%arg0: i32) -> (i32, i32, i32, i32) {
    %c0_i32 = arith.constant 0 : i32
    %c0_i32_0 = arith.constant 0 : i32
    %c0_i32_1 = arith.constant 0 : i32
    %c0_i32_2 = arith.constant 0 : i32
    %c0_i32_3 = arith.constant 0 : i32
    return %c0_i32, %c0_i32_0, %c0_i32_1, %c0_i32_2 : i32, i32, i32, i32
  }
  func.func @transform_3(%arg0: i32) -> (i32, i32, i32) {
    %c0_i32 = arith.constant 0 : i32
    %c0_i32_0 = arith.constant 0 : i32
    %c0_i32_1 = arith.constant 0 : i32
    %c0_i32_2 = arith.constant 0 : i32
    return %c0_i32, %c0_i32_0, %c0_i32_1 : i32, i32, i32
  }
  func.func @transform_4(%arg0: i32) -> (i32, i32, i32) {
    %c0_i32 = arith.constant 0 : i32
    %c0_i32_0 = arith.constant 0 : i32
    %c0_i32_1 = arith.constant 0 : i32
    %c0_i32_2 = arith.constant 0 : i32
    return %c0_i32, %c0_i32_0, %c0_i32_1 : i32, i32, i32
  }
  func.func @transform_5(%arg0: i32) -> (i32, i32, i32) {
    %c0_i32 = arith.constant 0 : i32
    %c0_i32_0 = arith.constant 0 : i32
    %c0_i32_1 = arith.constant 0 : i32
    %c0_i32_2 = arith.constant 0 : i32
    return %c0_i32, %c0_i32_0, %c0_i32_1 : i32, i32, i32
  }
  func.func @transform_6(%arg0: i32) -> (i32, i32) {
    %c0_i32 = arith.constant 0 : i32
    %c0_i32_0 = arith.constant 0 : i32
    %c0_i32_1 = arith.constant 0 : i32
    return %c0_i32, %c0_i32_0 : i32, i32
  }
  func.func @transform_7(%arg0: i32) -> (i32, i32, i32) {
    %c0_i32 = arith.constant 0 : i32
    %c0_i32_0 = arith.constant 0 : i32
    %c0_i32_1 = arith.constant 0 : i32
    %c0_i32_2 = arith.constant 0 : i32
    return %c0_i32, %c0_i32_0, %c0_i32_1 : i32, i32, i32
  }
  func.func @transform_8(%arg0: i32) -> (i32, i32) {
    %c0_i32 = arith.constant 0 : i32
    %c0_i32_0 = arith.constant 0 : i32
    %c0_i32_1 = arith.constant 0 : i32
    return %c0_i32, %c0_i32_0 : i32, i32
  }
}

</mosaic_0001>

<bundles_post_ra>
// kernel: _lambda_.1
= control target key start
LH: loop header
LB: loop body
LE: loop exit
PB: predicated region body
PF: predicated region fallthrough
CT: control target
= control target key end

     0   :  { %13 = vsyncpa [#allocation3], 0  ;;  %s6075_s0 = inlined_call_operand.vmem [shape: f32[16,64], index: 0, kind: input, shape index: {}]   ;;  %s6076_s1 = inlined_call_operand.vmem [shape: f32[2,8], index: 1, kind: input, shape index: {}]   ;;  %s6077_s2 = inlined_call_operand.vmem [shape: bf16[2,4,64,64], index: 2, kind: input, shape index: {}]   ;;  %s6078_s3 = inlined_call_operand.hbm [shape: bf16[2,64,128], index: 3, kind: input, shape index: {}]   ;;  %s6079_s4 = inlined_call_operand.hbm [shape: bf16[2,128,64], index: 4, kind: input, shape index: {}]   ;;  %s6080_s5 = inlined_call_operand.vmem [shape: f32[2,6,128], index: 5, kind: input, shape index: {}]   ;;  %s6081_s6 = inlined_call_operand.vmem [shape: f32[8,128], index: 6, kind: input, shape index: {}]   ;;  %s6082_s7 = inlined_call_operand.vmem [shape: bf16[3,64,128], index: 7, kind: input, shape index: {}]   ;;  %s6083_s8 = inlined_call_operand.vmem [shape: f32[2,128], index: 8, kind: output, shape index: {}]  }
   0x1   :  { %14 = vsyncpa [#allocation5], 0  ;;  %s5255_s27 = smov [#allocation2]   ;;  %s5207_s9 = scalar_lea.hbm %s6078_s3, 1024 }
   0x2   :  { %s26_s28 = sshll.u32 %s5255_s27, 4  ;;  %p5208_p0 = scmp.ne.s32.totalorder %s6078_s3, %s5207_s9  ;;  %s27_s28 = int_to_ptr.vmem [resolvable:$true] %s26_s28 }
   0x3   :  { %p5211_p1 = scmp.lt.u32.totalorder %s5207_s9, %s6078_s3 }
   0x5   :  { %p5213_p2 = pnand %p5211_p1, %p5208_p0 }
   0x7   :  { %5216 = shalt.err (!%p5213_p2)
}
   0x8   :  { %s5217_s14 = scalar_lea.vmem %s27_s28, 1024  ;;  %p5222_p4 = scmp.lt.s32.totalorder %s27_s28, %s27_s28 }
   0x9   :  { %p5218_p3 = scmp.ne.s32.totalorder %s27_s28, %s5217_s14  ;;  %p5223_p5 = scmp.lt.s32.totalorder %s5217_s14, %s5217_s14 }
   0xb   :  { %p5224_p6 = por %p5223_p5, %p5222_p4 }
   0xd   :  { %p5225_p7 = pnand %p5224_p6, %p5218_p3 }
   0xf   :  { %5228 = shalt.err (!%p5225_p7)
}
  0x10   :  { %s5256_s15 = smov 64   ;;  %s5257_s16 = smov 4  }
  0x11   :  { %32 = dma.hbm_to_vmem [thread:$0]  %s6078_s3, 1024, %s27_s28, [#allocation3], %s5256_s15, %s5256_s15, %s5257_s16  }
  0x12   :  { %s5258_s19 = smov [#allocation4]   ;;  %s5229_s23 = scalar_lea.hbm %s6079_s4, 2048 }
  0x13   :  { %s38_s20 = sshll.u32 %s5258_s19, 4  ;;  %p5230_p8 = scmp.ne.s32.totalorder %s6079_s4, %s5229_s23  ;;  %s39_s20 = int_to_ptr.vmem [resolvable:$true] %s38_s20 }
  0x14   :  { %p5233_p9 = scmp.lt.u32.totalorder %s5229_s23, %s6079_s4 }
  0x16   :  { %p5235_p10 = pnand %p5233_p9, %p5230_p8 }
  0x18   :  { %5238 = shalt.err (!%p5235_p10)
}
  0x19   :  { %s5239_s29 = scalar_lea.vmem %s39_s20, 2048  ;;  %p5244_p12 = scmp.lt.s32.totalorder %s39_s20, %s39_s20 }
  0x1a   :  { %p5240_p11 = scmp.ne.s32.totalorder %s39_s20, %s5239_s29  ;;  %p5245_p13 = scmp.lt.s32.totalorder %s5239_s29, %s5239_s29 }
  0x1c   :  { %p5246_p0 = por %p5245_p13, %p5244_p12 }
  0x1e   :  { %p5247_p1 = pnand %p5246_p0, %p5240_p11 }
  0x20   :  { %5250 = shalt.err (!%p5247_p1)
}
  0x21   :  { %44 = dma.hbm_to_vmem [thread:$0]  %s6079_s4, 2048, %s39_s20, [#allocation5], %s5256_s15, %s5256_s15, %s5257_s16  }
  0x22   :  { %5251 = dma.done.wait [#allocation3], 1024  }
  0x23   :  { %5252 = vsyncadd [#allocation3], 4294966272 }
  0x24   :  { %5253 = dma.done.wait [#allocation5], 2048  }
  0x25   :  { %5254 = vsyncadd [#allocation5], 4294965248  ;;  %vm61_vm0 = vcmask 523264   ;;  %v59_v0 = vld [vmem:[%s6075_s0] sm:$0xff]  ;;  %v60_v1 = vld [vmem:[%s6075_s0 + $0x8] sm:$0xff]  ;;  %v89_v4 = vlaneseq  ;;  %v5259_v21 = vmov 0.0  }
  0x26   :  { %v62_v2 = vsel %vm61_vm0, %v59_v0, 0.0  ;;  %v65_v3 = vsel %vm61_vm0, %v60_v1, 0.0  ;;  %v58_v5 = vld [vmem:[%s6081_s6] sm:$0xff]  ;;  %4650 = vmatprep.subr.bf16.mxu0 %v5259_v21  ;;  %4662 = vmatprep.subr.bf16.mxu1 %v5259_v21  ;;  %v5045_v22 = vld [vmem:[%s6077_s2 + $0x8] sm:$0xff]   ;;  %v5047_v24 = vld [vmem:[%s6077_s2 + $0x10] sm:$0xff]   ;;  %vm5260_vm1 = vmmov 0  }
  0x27   :  { %63 = vadd.xlane.f32.xlu0 %v62_v2  ;;  %v5352_v6 = vshrl.u32 %v89_v4, 7  ;;  %v5043_v19 = vld [vmem:[%s6077_s2] sm:$0xff]   ;;  %v5046_v23 = vld [vmem:[%s6077_s2 + $0x28] sm:$0xff]   ;;  %v5048_v25 = vld [vmem:[%s6077_s2 + $0x30] sm:$0xff]   ;;  %4658 = vmatprep.mubr.msk.bf16.mxu0 %vm5260_vm1, %v5259_v21  ;;  %vm373_vm2 = vcmask 130048   ;;  %vm526_vm3 = vcmask 64512  }
  0x28   :  { %v5044_v20 = vld [vmem:[%s6077_s2 + $0x20] sm:$0xff]   ;;  %4651 = vmatpush3.bf16.msra.mxu0 %v5043_v19  ;;  %v5049_v26 = vld [vmem:[%s6077_s2 + $0x18] sm:$0xff]   ;;  %4670 = vmatprep.mubr.msk.bf16.mxu1 %vm5260_vm1, %v5259_v21  ;;  %v5052_v47 = vld [vmem:[%s6077_s2 + $0x48] sm:$0xff]   ;;  %s5263_s17 = smov 96   ;;  %s5264_s18 = smov 80   ;;  %vm1713_vm4 = vcmask 261120  }
  0x29   :  { %v5355_v7 = vsub.s32 0, %v5352_v6  ;;  %4663 = vmatpush3.bf16.msra.mxu1 %v5044_v20  ;;  %4652 = vmatprep.subr.bf16.mxu0 %v5259_v21  ;;  %v5050_v27 = vld [vmem:[%s6077_s2 + $0x38] sm:$0xff]   ;;  %v5402_v28 = vld [vmem:[%s6080_s5] sm:$0x3f]  ;;  %v5053_v48 = vld [vmem:[%s6077_s2 + $0x50] sm:$0xff]   ;;  %v5457_v63 = vsub.s32 1, %v5352_v6 }
  0x2a   :  { %4664 = vmatprep.subr.bf16.mxu1 %v5259_v21  ;;  %v5051_v45 = vld [vmem:[%s6077_s2 + $0x40] sm:$0xff]   ;;  %v5054_v49 = vld [vmem:[%s6077_s2 + $0x58] sm:$0xff]   ;;  %s5265_s19 = smov 16   ;;  %s5266_s20 = smov 32   ;;  %vm1716_vm5 = vcmask 392192   ;;  %vm4058_vm6 = vcmask 1041409  }
  0x2b   :  { %66 = vadd.xlane.f32.xlu0 %v65_v3  ;;  %v92_v8 = vrot.slane %v58_v5, %v5355_v7  ;;  %v138_v29 = vrot.slane %v5402_v28, %v5355_v7  ;;  %s5267_s3 = smov 48   ;;  %vm4133_vm7 = vcmask 386048   ;;  %vm4224_vm8 = vcmask 254976  }
  0x2c   :  { %4653 = vmatpush3.bf16.msra.mxu0 %v5045_v22  ;;  %vm4314_vm9 = vcmask 337152  }
  0x2d   :  { %4665 = vmatpush3.bf16.msra.mxu1 %v5046_v23  ;;  %4654 = vmatprep.subr.bf16.mxu0 %v5259_v21 }
  0x2e   :  { %4666 = vmatprep.subr.bf16.mxu1 %v5259_v21 }
  0x30   :  { %4655 = vmatpush3.bf16.msra.mxu0 %v5047_v24 }
  0x31   :  { %4667 = vmatpush3.bf16.msra.mxu1 %v5048_v25  ;;  %4656 = vmatprep.subr.bf16.mxu0 %v5259_v21 }
  0x32   :  { %4668 = vmatprep.subr.bf16.mxu1 %v5259_v21 }
  0x34   :  { %4657 = vmatpush3.bf16.msra.mxu0 %v5049_v26 }
  0x35   :  { %4669 = vmatpush3.bf16.msra.mxu1 %v5050_v27  ;;  %4674 = vmatprep.subr.bf16.mxu0 %v5259_v21 }
  0x36   :  { %4686 = vmatprep.subr.mxu1 %v5259_v21 }
  0x41   :  { %96 = vrot.lane.b32.xlu0 %v92_v8, %s5256_s15 }
  0xb4   :  { %v64_v9 = vpop.xlane.xlu0 %63 }
  0xb5   :  { %v69_v10 = vmul.f32 0.015625, %v64_v9 }
  0xb7   :  { %v71_v11 = vsub.f32 %v59_v0, %v69_v10  ;;  %v5465_v0 = vrot.slane %v5402_v28, %v5457_v63 }
  0xb8   :  { %v67_v12 = vpop.xlane.xlu0 %66 }
  0xb9   :  { %v70_v13 = vmul.f32 0.015625, %v67_v12  ;;  %v73_v14 = vmul.f32 %v71_v11, %v71_v11  ;;  %v4322_v12 = vld.sshfl [vmem:[%s6076_s1] sm:$0x11 pattern:$0x75316420]  ;;  %s5262_s1 = smov 112  }
  0xbb   :  { %v72_v15 = vsub.f32 %v60_v1, %v70_v13  ;;  %v75_v16 = vsel %vm61_vm0, %v73_v14, 0.0  ;;  %v110_v13 = vcombine.high %v4322_v12, %v4322_v12 }
  0xbc   :  { %76 = vadd.xlane.f32.xlu1 %v75_v16  ;;  %v97_v41 = vpop.permute.xlu0 %96 }
  0xbd   :  { %v74_v17 = vmul.f32 %v72_v15, %v72_v15 }
  0xbf   :  { %v78_v18 = vsel %vm61_vm0, %v74_v17, 0.0 }
  0xc0   :  { %79 = vadd.xlane.f32.xlu1 %v78_v18 }
  0xd1   :  { %241 = vrot.lane.b32.xlu1 %v138_v29, %s5256_s15 }
 0x149   :  { %v77_v30 = vpop.xlane.xlu1 %76 }
 0x14a   :  { %v81_v31 = vmul.f32 0.015625, %v77_v30 }
 0x14c   :  { %v83_v32 = vadd.f32 1e-12, %v81_v31 }
 0x14d   :  { %v80_v33 = vpop.xlane.xlu1 %79 }
 0x14e   :  { %5108 = vrsqrt.f32 %v83_v32  ;;  %v82_v34 = vmul.f32 0.015625, %v80_v33 }
 0x150   :  { %v84_v35 = vadd.f32 1e-12, %v82_v34 }
 0x151   :  { %v242_v50 = vpop.permute.xlu1 %241 }
 0x152   :  { %5110 = vrsqrt.f32 %v84_v35 }
 0x158   :  { %v5109_v36 = vpop.eup %5108 }
 0x159   :  { %v87_v37 = vmul.f32 %v5109_v36, %v71_v11 }
 0x15b   :  { %v93_v40 = vmul.f32 %v92_v8, %v87_v37 }
 0x15c   :  { %v5111_v38 = vpop.eup %5110 }
 0x15d   :  { %v88_v39 = vmul.f32 %v5111_v38, %v72_v15  ;;  %v5407_v43 = vadd.f32 %v97_v41, %v93_v40 }
 0x15f   :  { %v94_v42 = vmul.f32 %v92_v8, %v88_v39  ;;  %v5261_v8 = vmov 1966171168  }
 0x160   :  { %v112_v9 = vunpack.c.l.s4 %v5261_v8 }
 0x161   :  { %v5409_v44 = vadd.f32 %v97_v41, %v94_v42 }
 0x162   :  { %v113_v10 = vunpack.c.0.s8 %v112_v9 }
 0x163   :  { %v126_v46 = vpack.c.bf16 %v5409_v44, %v5407_v43 }
 0x164   :  { %v116_v11 = vsub.s32 %v113_v10, %v5352_v6 }
 0x165   :  { %4659 = vmatmul.mubr.msk.bf16.vlgmr.msra.gmra.mrb[0].mxu0 %vm61_vm0, %v126_v46  ;;  %4671 = vmatmul.mubr.msk.bf16.vlgmr.msra.gmra.mrb[0].mxu1 %vm61_vm0, %v126_v46 }
 0x166   :  { %4675 = vmatpush3.bf16.msra.mxu0 %v5051_v45  ;;  %4682 = vmatprep.mubr.msk.bf16.mxu0 %vm5260_vm1, %v5259_v21  ;;  %v117_v14 = vrot.slane %v4322_v12, %v116_v11  ;;  %v124_v15 = vrot.slane %v110_v13, %v116_v11 }
 0x167   :  { %4676 = vmatprep.subr.bf16.mxu0 %v5259_v21  ;;  %4688 = vmatprep.mubr.msk.f32.mxu1 %vm5260_vm1, %v5259_v21 }
 0x168   :  { %v5477_v16 = vrot.slane %v117_v14, %v5355_v7  ;;  %v5480_v18 = vrot.slane %v124_v15, %v5355_v7 }
 0x16a   :  { %4677 = vmatpush3.bf16.msra.mxu0 %v5052_v47 }
 0x16b   :  { %4678 = vmatprep.subr.bf16.mxu0 %v5259_v21 }
 0x16e   :  { %4679 = vmatpush3.bf16.msra.mxu0 %v5053_v48 }
 0x16f   :  { %4680 = vmatprep.subr.bf16.mxu0 %v5259_v21 }
 0x172   :  { %4681 = vmatpush3.bf16.msra.mxu0 %v5054_v49 }
 0x173   :  { %4706 = vmatprep.subr.mxu0 %v5259_v21 }
 0x175   :  { %4683 = vmatmul.mubr.msk.bf16.vlgmr.msra.gmra.mrb[4].mxu0 %vm61_vm0, %v126_v46 }
 0x176   :  { %4708 = vmatprep.mubr.msk.f32.mxu0 %vm5260_vm1, %v5259_v21 }
 0x238   :  { %v200_v51 = vpop.f32.mrb[0].mxu0  ;;  %v278_v52 = vpop.f32.mrb[0].mxu1 }
 0x239   :  { %v5438_v53 = vadd.f32 %v278_v52, %v242_v50  ;;  %v4660_v54 = vpop.f32.mrb[1].mxu0  ;;  %v4672_v55 = vpop.f32.mrb[1].mxu1  ;;  %v5442_v60 = vadd.f32 %v200_v51, %v138_v29 }
 0x23a   :  { %v203_v56 = vpop.f32.mrb[2].mxu0  ;;  %v281_v57 = vpop.f32.mrb[2].mxu1 }
 0x23b   :  { %v4661_v58 = vpop.f32.mrb[3].mxu0  ;;  %v4673_v59 = vpop.f32.mrb[3].mxu1  ;;  %4687 = vmatpush3.xpose.msk.msra.mxu1 %vm373_vm2, %v5438_v53  ;;  %v5445_v61 = vadd.f32 %v281_v57, %v242_v50  ;;  %v5453_v62 = vadd.f32 %v203_v56, %v138_v29 }
 0x23c   :  { %4691 = vmatprep.subr.mxu1 %v5259_v21 }
 0x23e   :  { %4689 = vmatmul.mubr.msk.f32.vlgmr.msra.gmra.mrb[4].mxu1 %vm373_vm2, %v5442_v60 }
 0x23f   :  { %4692 = vmatpush3.xpose.msk.msra.mxu1 %vm373_vm2, %v5445_v61  ;;  %4693 = vmatprep.mubr.msk.f32.mxu1 %vm5260_vm1, %v5259_v21 }
 0x240   :  { %4696 = vmatprep.subr.mxu1 %v5259_v21 }
 0x242   :  { %4694 = vmatmul.mubr.msk.f32.vlgmr.msra.gmra.mrb[6].mxu1 %vm373_vm2, %v5453_v62 }
 0x243   :  { %4698 = vmatprep.mubr.msk.f32.mxu1 %vm5260_vm1, %v5259_v21 }
 0x248   :  { %v356_v1 = vpop.f32.mrb[4].mxu0 }
 0x249   :  { %v5468_v2 = vadd.f32 %v356_v1, %v5465_v0  ;;  %v4684_v3 = vpop.f32.mrb[5].mxu0 }
 0x24a   :  { %v359_v4 = vpop.f32.mrb[6].mxu0 }
 0x24b   :  { %v4685_v5 = vpop.f32.mrb[7].mxu0  ;;  %4697 = vmatpush3.msra.mxu1 %v5468_v2  ;;  %v5502_v47 = vadd.f32 %v359_v4, %v5465_v0 }
 0x24c   :  { %4701 = vmatprep.subr.mxu1 %v5259_v21 }
 0x311   :  { %v446_v17 = vpop.f32.mrb[4].mxu1 }
 0x312   :  { %v447_v19 = vadd.f32 %v446_v17, %v5477_v16  ;;  %v4690_v20 = vpop.f32.mrb[5].mxu1 }
 0x314   :  { %v527_v22 = vsel %vm526_vm3, %v447_v19, -inf }
 0x315   :  { %528 = vmax.xlane.f32.xlu1 %v527_v22  ;;  %v522_v23 = vpop.f32.mrb[6].mxu1 }
 0x316   :  { %v523_v24 = vadd.f32 %v522_v23, %v5480_v18  ;;  %v4695_v25 = vpop.f32.mrb[7].mxu1 }
 0x318   :  { %v530_v26 = vsel %vm526_vm3, %v523_v24, -inf }
 0x319   :  { %531 = vmax.xlane.f32.xlu0 %v530_v26 }
 0x326   :  { %775 = vrot.lane.b32.xlu1 %v5445_v61, %s5262_s1 }
 0x32a   :  { %695 = vrot.lane.b32.xlu1 %v5442_v60, %s5262_s1 }
 0x3a2   :  { %v529_v27 = vpop.xlane.xlu1 %528 }
 0x3a3   :  { %v533_v29 = vsub.f32 %v447_v19, %v529_v27 }
 0x3a5   :  { %v535_v30 = vmul.f32 1.442695, %v533_v29 }
 0x3a6   :  { %v532_v31 = vpop.xlane.xlu0 %531  ;;  %v776_v38 = vpop.permute.xlu1 %775 }
 0x3a7   :  { %5112 = vpow2.f32 %v535_v30  ;;  %v534_v32 = vsub.f32 %v523_v24, %v532_v31 }
 0x3a9   :  { %v537_v33 = vmul.f32 1.442695, %v534_v32 }
 0x3aa   :  { %v696_v39 = vpop.permute.xlu1 %695 }
 0x3ab   :  { %5114 = vpow2.f32 %v537_v33 }
 0x3b1   :  { %v5113_v34 = vpop.eup %5112 }
 0x3b2   :  { %v539_v35 = vsel %vm526_vm3, %v5113_v34, 0.0 }
 0x3b3   :  { %540 = vadd.xlane.f32.xlu0 %v539_v35 }
 0x3b5   :  { %v5115_v36 = vpop.eup %5114 }
 0x3b6   :  { %v542_v37 = vsel %vm526_vm3, %v5115_v36, 0.0 }
 0x3b7   :  { %543 = vadd.xlane.f32.xlu1 %v542_v37 }
 0x3c8   :  { %773 = vrot.lane.b32.xlu1 %v5453_v62, %s5262_s1 }
 0x3c9   :  { %697 = vrot.lane.b32.xlu0 %v5438_v53, %s5262_s1 }
 0x440   :  { %v541_v40 = vpop.xlane.xlu0 %540 }
 0x441   :  { %5116 = vrcp.f32 %v541_v40 }
 0x444   :  { %v544_v41 = vpop.xlane.xlu1 %543  ;;  %v698_v42 = vpop.permute.xlu0 %697 }
 0x445   :  { %5118 = vrcp.f32 %v544_v41  ;;  %4707 = vmatpush3.xpose.msk.msra.mxu0 %vm373_vm2, %v698_v42 }
 0x446   :  { %4716 = vmatprep.subr.mxu0 %v5259_v21 }
 0x448   :  { %4709 = vmatmul.mubr.msk.f32.vlgmr.msra.gmra.mrb[8].mxu0 %vm373_vm2, %v696_v39  ;;  %v774_v50 = vpop.permute.xlu1 %773 }
 0x449   :  { %4718 = vmatprep.mubr.msk.f32.mxu0 %vm5260_vm1, %v5259_v21 }
 0x44b   :  { %v5117_v45 = vpop.eup %5116 }
 0x44c   :  { %v547_v46 = vmul.f32 %v5117_v45, %v5113_v34 }
 0x44e   :  { %4699 = vmatmul.mubr.msk.f32.vlgmr.msra.gmra.mrb[8].mxu1 %vm526_vm3, %v547_v46 }
 0x44f   :  { %v5119_v48 = vpop.eup %5118  ;;  %4702 = vmatpush3.msra.mxu1 %v5502_v47  ;;  %4703 = vmatprep.mubr.msk.f32.mxu1 %vm5260_vm1, %v5259_v21 }
 0x450   :  { %v548_v49 = vmul.f32 %v5119_v48, %v5115_v36  ;;  %4711 = vmatprep.subr.mxu1 %v5259_v21 }
 0x452   :  { %4704 = vmatmul.mubr.msk.f32.vlgmr.msra.gmra.mrb[10].mxu1 %vm526_vm3, %v548_v49 }
 0x453   :  { %4713 = vmatprep.mubr.msk.f32.mxu1 %vm5260_vm1, %v5259_v21 }
 0x456   :  { %4712 = vmatpush3.xpose.msk.msra.mxu1 %vm373_vm2, %v776_v38 }
 0x457   :  { %4721 = vmatprep.subr.mxu1 %v5259_v21 }
 0x459   :  { %4714 = vmatmul.mubr.msk.f32.vlgmr.msra.gmra.mrb[12].mxu1 %vm373_vm2, %v774_v50 }
 0x45a   :  { %4723 = vmatprep.mubr.msk.f32.mxu1 %vm5260_vm1, %v5259_v21 }
 0x51b   :  { %v769_v51 = vpop.f32.mrb[8].mxu0 }
 0x51c   :  { %v770_v52 = vadd.f32 %v769_v51, %v5477_v16  ;;  %v4710_v54 = vpop.f32.mrb[9].mxu0 }
 0x51e   :  { %v851_v55 = vsel %vm526_vm3, %v770_v52, -inf }
 0x51f   :  { %852 = vmax.xlane.f32.xlu0 %v851_v55 }
 0x521   :  { %v5519_v56 = vpop.f32.mrb[8].mxu1 }
 0x522   :  { %v4700_v57 = vpop.f32.mrb[9].mxu1 }
 0x525   :  { %v5521_v58 = vpop.f32.mrb[10].mxu1 }
 0x526   :  { %v4705_v59 = vpop.f32.mrb[11].mxu1 }
 0x52c   :  { %v847_v1 = vpop.f32.mrb[12].mxu1 }
 0x52d   :  { %v848_v3 = vadd.f32 %v847_v1, %v5480_v18  ;;  %v4715_v4 = vpop.f32.mrb[13].mxu1 }
 0x52f   :  { %v854_v5 = vsel %vm526_vm3, %v848_v3, -inf }
 0x530   :  { %855 = vmax.xlane.f32.xlu1 %v854_v5 }
 0x541   :  { %951 = vrot.lane.b32.xlu1 %v5502_v47, %s5262_s1 }
 0x545   :  { %1029 = vrot.lane.b32.xlu1 %v5438_v53, %s5263_s17 }
 0x549   :  { %1107 = vrot.lane.b32.xlu1 %v5445_v61, %s5263_s17 }
 0x54d   :  { %1105 = vrot.lane.b32.xlu1 %v5453_v62, %s5263_s17 }
 0x5ac   :  { %v853_v8 = vpop.xlane.xlu0 %852 }
 0x5ad   :  { %v857_v9 = vsub.f32 %v770_v52, %v853_v8 }
 0x5af   :  { %v859_v10 = vmul.f32 1.442695, %v857_v9 }
 0x5b1   :  { %5120 = vpow2.f32 %v859_v10 }
 0x5bb   :  { %v5121_v11 = vpop.eup %5120 }
 0x5bc   :  { %v863_v12 = vsel %vm526_vm3, %v5121_v11, 0.0 }
 0x5bd   :  { %v856_v13 = vpop.xlane.xlu1 %855  ;;  %864 = vadd.xlane.f32.xlu0 %v863_v12 }
 0x5be   :  { %v858_v15 = vsub.f32 %v848_v3, %v856_v13 }
 0x5c0   :  { %v861_v17 = vmul.f32 1.442695, %v858_v15 }
 0x5c1   :  { %v952_v14 = vpop.permute.xlu1 %951 }
 0x5c2   :  { %4722 = vmatpush3.msra.mxu1 %v952_v14  ;;  %5122 = vpow2.f32 %v861_v17 }
 0x5c3   :  { %4731 = vmatprep.subr.mxu1 %v5259_v21 }
 0x5c5   :  { %v1030_v26 = vpop.permute.xlu1 %1029 }
 0x5c9   :  { %v1108_v31 = vpop.permute.xlu1 %1107 }
 0x5cc   :  { %v5123_v19 = vpop.eup %5122 }
 0x5cd   :  { %v866_v20 = vsel %vm526_vm3, %v5123_v19, 0.0  ;;  %v1106_v33 = vpop.permute.xlu1 %1105 }
 0x5d3   :  { %874 = vrot.lane.b32.xlu0 %v5468_v2, %s5262_s1 }
 0x5f2   :  { %867 = vadd.xlane.f32.xlu0 %v866_v20 }
 0x608   :  { %1027 = vrot.lane.b32.xlu0 %v5442_v60, %s5263_s17 }
 0x64a   :  { %v865_v22 = vpop.xlane.xlu0 %864 }
 0x64b   :  { %5124 = vrcp.f32 %v865_v22 }
 0x64e   :  { %v875_v23 = vpop.permute.xlu0 %874 }
 0x64f   :  { %4717 = vmatpush3.msra.mxu0 %v875_v23 }
 0x650   :  { %4726 = vmatprep.subr.mxu0 %v5259_v21 }
 0x655   :  { %v5125_v24 = vpop.eup %5124 }
 0x656   :  { %v871_v25 = vmul.f32 %v5125_v24, %v5121_v11 }
 0x658   :  { %4719 = vmatmul.mubr.msk.f32.vlgmr.msra.gmra.mrb[10].mxu0 %vm526_vm3, %v871_v25 }
 0x659   :  { %4727 = vmatpush3.xpose.msk.msra.mxu0 %vm373_vm2, %v1030_v26  ;;  %4728 = vmatprep.mubr.msk.f32.mxu0 %vm5260_vm1, %v5259_v21 }
 0x65a   :  { %4736 = vmatprep.subr.mxu0 %v5259_v21 }
 0x67f   :  { %v868_v27 = vpop.xlane.xlu0 %867 }
 0x680   :  { %5126 = vrcp.f32 %v868_v27 }
 0x683   :  { %v1028_v29 = vpop.permute.xlu0 %1027 }
 0x684   :  { %4729 = vmatmul.mubr.msk.f32.vlgmr.msra.gmra.mrb[12].mxu0 %vm373_vm2, %v1028_v29 }
 0x685   :  { %4738 = vmatprep.mubr.msk.f32.mxu0 %vm5260_vm1, %v5259_v21 }
 0x68a   :  { %v5127_v30 = vpop.eup %5126 }
 0x68b   :  { %v872_v32 = vmul.f32 %v5127_v30, %v5123_v19 }
 0x68d   :  { %4724 = vmatmul.mubr.msk.f32.vlgmr.msra.gmra.mrb[14].mxu1 %vm526_vm3, %v872_v32 }
 0x68e   :  { %4732 = vmatpush3.xpose.msk.msra.mxu1 %vm373_vm2, %v1108_v31  ;;  %4733 = vmatprep.mubr.msk.f32.mxu1 %vm5260_vm1, %v5259_v21 }
 0x68f   :  { %4741 = vmatprep.subr.mxu1 %v5259_v21 }
 0x691   :  { %4734 = vmatmul.mubr.msk.f32.vlgmr.msra.gmra.mrb[16].mxu1 %vm373_vm2, %v1106_v33 }
 0x692   :  { %4743 = vmatprep.mubr.msk.f32.mxu1 %vm5260_vm1, %v5259_v21 }
 0x72b   :  { %v5557_v34 = vpop.f32.mrb[10].mxu0 }
 0x72c   :  { %v4720_v35 = vpop.f32.mrb[11].mxu0 }
 0x757   :  { %v1101_v36 = vpop.f32.mrb[12].mxu0 }
 0x758   :  { %v1102_v37 = vadd.f32 %v1101_v36, %v5477_v16  ;;  %v4730_v38 = vpop.f32.mrb[13].mxu0 }
 0x75a   :  { %v1183_v39 = vsel %vm526_vm3, %v1102_v37, -inf }
 0x75b   :  { %1184 = vmax.xlane.f32.xlu0 %v1183_v39 }
 0x760   :  { %v5561_v40 = vpop.f32.mrb[14].mxu1 }
 0x761   :  { %v5013_v41 = vpack.i.bf16 %v5561_v40, %v5557_v34  ;;  %v4725_v42 = vpop.f32.mrb[15].mxu1 }
 0x764   :  { %v1179_v45 = vpop.f32.mrb[16].mxu1 }
 0x765   :  { %v1180_v46 = vadd.f32 %v1179_v45, %v5480_v18  ;;  %v4735_v48 = vpop.f32.mrb[17].mxu1 }
 0x767   :  { %v1186_v49 = vsel %vm526_vm3, %v1180_v46, -inf }
 0x768   :  { %1187 = vmax.xlane.f32.xlu1 %v1186_v49 }
 0x779   :  { %1281 = vrot.lane.b32.xlu1 %v5502_v47, %s5263_s17 }
 0x77d   :  { %1359 = vrot.lane.b32.xlu1 %v5438_v53, %s5264_s18 }
 0x781   :  { %1437 = vrot.lane.b32.xlu1 %v5445_v61, %s5264_s18 }
 0x785   :  { %1435 = vrot.lane.b32.xlu1 %v5453_v62, %s5264_s18 }
 0x7e8   :  { %v1185_v50 = vpop.xlane.xlu0 %1184 }
 0x7e9   :  { %v1189_v51 = vsub.f32 %v1102_v37, %v1185_v50 }
 0x7eb   :  { %v1191_v52 = vmul.f32 1.442695, %v1189_v51  ;;  %v5056_v51 = vld [vmem:[%s6077_s2 + $0x68] sm:$0xff]  }
 0x7ed   :  { %5128 = vpow2.f32 %v1191_v52  ;;  %v5057_v52 = vld [vmem:[%s6077_s2 + $0x70] sm:$0xff]  }
 0x7f5   :  { %v1188_v54 = vpop.xlane.xlu1 %1187 }
 0x7f6   :  { %v1190_v53 = vsub.f32 %v1180_v46, %v1188_v54  ;;  %v5058_v54 = vld [vmem:[%s6077_s2 + $0x78] sm:$0xff]  }
 0x7f7   :  { %v5129_v55 = vpop.eup %5128 }
 0x7f8   :  { %v1195_v57 = vsel %vm526_vm3, %v5129_v55, 0.0  ;;  %v1193_v61 = vmul.f32 1.442695, %v1190_v53 }
 0x7f9   :  { %v1282_v59 = vpop.permute.xlu1 %1281  ;;  %1196 = vadd.xlane.f32.xlu0 %v1195_v57 }
 0x7fa   :  { %4742 = vmatpush3.msra.mxu1 %v1282_v59  ;;  %5130 = vpow2.f32 %v1193_v61 }
 0x7fb   :  { %4751 = vmatprep.subr.mxu1 %v5259_v21 }
 0x7fd   :  { %v1360_v9 = vpop.permute.xlu1 %1359 }
 0x801   :  { %v1438_v12 = vpop.permute.xlu1 %1437 }
 0x804   :  { %v5131_v62 = vpop.eup %5130 }
 0x805   :  { %v1198_v1 = vsel %vm526_vm3, %v5131_v62, 0.0  ;;  %v1436_v14 = vpop.permute.xlu1 %1435 }
 0x80f   :  { %1205 = vrot.lane.b32.xlu0 %v5468_v2, %s5263_s17 }
 0x82e   :  { %1199 = vadd.xlane.f32.xlu0 %v1198_v1 }
 0x844   :  { %1357 = vrot.lane.b32.xlu0 %v5442_v60, %s5264_s18 }
 0x886   :  { %v1197_v3 = vpop.xlane.xlu0 %1196 }
 0x887   :  { %5132 = vrcp.f32 %v1197_v3 }
 0x88a   :  { %v1206_v4 = vpop.permute.xlu0 %1205 }
 0x88b   :  { %4737 = vmatpush3.msra.mxu0 %v1206_v4 }
 0x88c   :  { %4746 = vmatprep.subr.mxu0 %v5259_v21 }
 0x891   :  { %v5133_v5 = vpop.eup %5132 }
 0x892   :  { %v1203_v8 = vmul.f32 %v5133_v5, %v5129_v55 }
 0x894   :  { %4739 = vmatmul.mubr.msk.f32.vlgmr.msra.gmra.mrb[14].mxu0 %vm526_vm3, %v1203_v8 }
 0x895   :  { %4747 = vmatpush3.xpose.msk.msra.mxu0 %vm373_vm2, %v1360_v9  ;;  %4748 = vmatprep.mubr.msk.f32.mxu0 %vm5260_vm1, %v5259_v21 }
 0x896   :  { %4756 = vmatprep.subr.mxu0 %v5259_v21 }
 0x8bb   :  { %v1200_v10 = vpop.xlane.xlu0 %1199 }
 0x8bc   :  { %5134 = vrcp.f32 %v1200_v10 }
 0x8bf   :  { %v1358_v60 = vpop.permute.xlu0 %1357 }
 0x8c0   :  { %4749 = vmatmul.mubr.msk.f32.vlgmr.msra.gmra.mrb[16].mxu0 %vm373_vm2, %v1358_v60 }
 0x8c1   :  { %4758 = vmatprep.mubr.msk.f32.mxu0 %vm5260_vm1, %v5259_v21 }
 0x8c6   :  { %v5135_v11 = vpop.eup %5134 }
 0x8c7   :  { %v1204_v13 = vmul.f32 %v5135_v11, %v5131_v62 }
 0x8c9   :  { %4744 = vmatmul.mubr.msk.f32.vlgmr.msra.gmra.mrb[18].mxu1 %vm526_vm3, %v1204_v13 }
 0x8ca   :  { %4752 = vmatpush3.xpose.msk.msra.mxu1 %vm373_vm2, %v1438_v12  ;;  %4753 = vmatprep.mubr.msk.f32.mxu1 %vm5260_vm1, %v5259_v21 }
 0x8cb   :  { %4761 = vmatprep.subr.mxu1 %v5259_v21 }
 0x8cd   :  { %4754 = vmatmul.mubr.msk.f32.vlgmr.msra.gmra.mrb[20].mxu1 %vm373_vm2, %v1436_v14 }
 0x8ce   :  { %4763 = vmatprep.mubr.msk.f32.mxu1 %vm5260_vm1, %v5259_v21 }
 0x967   :  { %v1277_v15 = vpop.f32.mrb[14].mxu0 }
 0x968   :  { %v4740_v17 = vpop.f32.mrb[15].mxu0 }
 0x993   :  { %v1431_v19 = vpop.f32.mrb[16].mxu0 }
 0x994   :  { %v1432_v20 = vadd.f32 %v1431_v19, %v5477_v16  ;;  %v4750_v22 = vpop.f32.mrb[17].mxu0 }
 0x996   :  { %v1513_v23 = vsel %vm526_vm3, %v1432_v20, -inf }
 0x997   :  { %1514 = vmax.xlane.f32.xlu0 %v1513_v23 }
 0x99c   :  { %v1353_v24 = vpop.f32.mrb[18].mxu1 }
 0x99d   :  { %v5018_v25 = vpack.i.bf16 %v1353_v24, %v1277_v15  ;;  %v4745_v26 = vpop.f32.mrb[19].mxu1 }
 0x9a0   :  { %v1509_v27 = vpop.f32.mrb[20].mxu1 }
 0x9a1   :  { %v1510_v29 = vadd.f32 %v1509_v27, %v5480_v18  ;;  %v4755_v30 = vpop.f32.mrb[21].mxu1 }
 0x9a3   :  { %v1516_v31 = vsel %vm526_vm3, %v1510_v29, -inf }
 0x9a4   :  { %1517 = vmax.xlane.f32.xlu1 %v1516_v31 }
 0x9b5   :  { %1611 = vrot.lane.b32.xlu1 %v5502_v47, %s5264_s18 }
 0x9b9   :  { %5014 = vrot.lane.b32.xlu1 %v5013_v41, %s5265_s19 }
 0x9bd   :  { %5019 = vrot.lane.b32.xlu1 %v5018_v25, %s5266_s20 }
 0x9c1   :  { %1754 = vrot.lane.b32.xlu1 %v5465_v0, %s5256_s15 }
 0xa24   :  { %v1515_v32 = vpop.xlane.xlu0 %1514 }
 0xa25   :  { %v1519_v33 = vsub.f32 %v1432_v20, %v1515_v32 }
 0xa27   :  { %v1521_v35 = vmul.f32 1.442695, %v1519_v33 }
 0xa29   :  { %5136 = vpow2.f32 %v1521_v35 }
 0xa31   :  { %v1518_v36 = vpop.xlane.xlu1 %1517 }
 0xa32   :  { %v1520_v37 = vsub.f32 %v1510_v29, %v1518_v36 }
 0xa33   :  { %v5137_v38 = vpop.eup %5136 }
 0xa34   :  { %v1523_v47 = vmul.f32 1.442695, %v1520_v37  ;;  %v1525_v39 = vsel %vm526_vm3, %v5137_v38, 0.0 }
 0xa35   :  { %v1612_v42 = vpop.permute.xlu1 %1611  ;;  %1526 = vadd.xlane.f32.xlu0 %v1525_v39 }
 0xa36   :  { %5138 = vpow2.f32 %v1523_v47  ;;  %4762 = vmatpush3.msra.mxu1 %v1612_v42 }
 0xa37   :  { %4778 = vmatprep.subr.bf16.mxu1 %v5259_v21 }
 0xa39   :  { %v5015_v62 = vpop.permute.xlu1 %5014 }
 0xa3a   :  { %v5017_v3 = vunpack.i.h.bf16 %v5015_v62  ;;  %v5016_v4 = vunpack.i.l.bf16 %v5015_v62 }
 0xa3c   :  { %v1712_v10 = vsel %vm373_vm2, %v5521_v58, %v5017_v3  ;;  %v1711_v60 = vsel %vm373_vm2, %v5519_v56, %v5016_v4 }
 0xa3d   :  { %v5020_v1 = vpop.permute.xlu1 %5019 }
 0xa3e   :  { %v5022_v5 = vunpack.i.h.bf16 %v5020_v1  ;;  %v5021_v8 = vunpack.i.l.bf16 %v5020_v1 }
 0xa40   :  { %v5139_v34 = vpop.eup %5138  ;;  %v1715_v13 = vsel %vm1713_vm4, %v1712_v10, %v5022_v5  ;;  %v1714_v14 = vsel %vm1713_vm4, %v1711_v60, %v5021_v8  ;;  %v5065_v5 = vld [vmem:[#allocation4 + $0x10] sm:$0xff]   ;;  %v5066_v8 = vld [vmem:[#allocation4 + $0x18] sm:$0xff]   ;;  %v5068_v10 = vld [vmem:[#allocation4 + $0x28] sm:$0xff]  }
 0xa41   :  { %v1528_v40 = vsel %vm526_vm3, %v5139_v34, 0.0  ;;  %v1755_v58 = vpop.permute.xlu1 %1754  ;;  %v5069_v60 = vld [vmem:[#allocation4 + $0x30] sm:$0xff]  }
 0xa42   :  { %1529 = vadd.xlane.f32.xlu0 %v1528_v40  ;;  %v5060_v40 = vld [vmem:[#allocation2 + $0x8] sm:$0xff]  }
 0xa58   :  { %1535 = vrot.lane.b32.xlu0 %v5468_v2, %s5264_s18  ;;  %v5055_v2 = vld [vmem:[%s6077_s2 + $0x60] sm:$0xff]  }
 0xac2   :  { %v1527_v0 = vpop.xlane.xlu0 %1526 }
 0xac3   :  { %5140 = vrcp.f32 %v1527_v0  ;;  %v5061_v0 = vld [vmem:[#allocation2 + $0x10] sm:$0xff]  }
 0xacd   :  { %v5141_v45 = vpop.eup %5140 }
 0xace   :  { %v1533_v46 = vmul.f32 %v5141_v45, %v5137_v38  ;;  %v5063_v45 = vld [vmem:[#allocation4] sm:$0xff]  }
 0xacf   :  { %v1530_v41 = vpop.xlane.xlu0 %1529 }
 0xad0   :  { %5142 = vrcp.f32 %v1530_v41  ;;  %v5062_v41 = vld [vmem:[#allocation2 + $0x18] sm:$0xff]  }
 0xad3   :  { %v1536_v48 = vpop.permute.xlu0 %1535 }
 0xad4   :  { %4757 = vmatpush3.msra.mxu0 %v1536_v48 }
 0xad5   :  { %4759 = vmatmul.mubr.msk.f32.vlgmr.msra.gmra.mrb[18].mxu0 %vm526_vm3, %v1533_v46  ;;  %4766 = vmatprep.subr.bf16.mxu0 %v5259_v21  ;;  %v5064_v46 = vld [vmem:[#allocation4 + $0x8] sm:$0xff]  }
 0xad6   :  { %4774 = vmatprep.mubr.msk.bf16.mxu0 %vm5260_vm1, %v5259_v21  ;;  %4767 = vmatpush3.bf16.msra.mxu0 %v5055_v2 }
 0xad7   :  { %4768 = vmatprep.subr.bf16.mxu0 %v5259_v21 }
 0xada   :  { %v5143_v49 = vpop.eup %5142  ;;  %4769 = vmatpush3.bf16.msra.mxu0 %v5056_v51 }
 0xadb   :  { %v1534_v50 = vmul.f32 %v5143_v49, %v5139_v34  ;;  %4770 = vmatprep.subr.bf16.mxu0 %v5259_v21  ;;  %v5059_v34 = vld [vmem:[#allocation2] sm:$0xff]  }
 0xadd   :  { %4764 = vmatmul.mubr.msk.f32.vlgmr.msra.gmra.mrb[22].mxu1 %vm526_vm3, %v1534_v50 }
 0xade   :  { %4786 = vmatprep.mubr.msk.bf16.mxu1 %vm5260_vm1, %v5259_v21  ;;  %4771 = vmatpush3.bf16.msra.mxu0 %v5057_v52 }
 0xadf   :  { %4772 = vmatprep.subr.bf16.mxu0 %v5259_v21  ;;  %4779 = vmatpush3.bf16.msra.mxu1 %v5059_v34 }
 0xae0   :  { %4780 = vmatprep.subr.bf16.mxu1 %v5259_v21 }
 0xae2   :  { %4773 = vmatpush3.bf16.msra.mxu0 %v5058_v54 }
 0xae3   :  { %4790 = vmatprep.subr.bf16.mxu0 %v5259_v21  ;;  %4781 = vmatpush3.bf16.msra.mxu1 %v5060_v40 }
 0xae4   :  { %4782 = vmatprep.subr.bf16.mxu1 %v5259_v21 }
 0xae7   :  { %4783 = vmatpush3.bf16.msra.mxu1 %v5061_v0 }
 0xae8   :  { %4784 = vmatprep.subr.bf16.mxu1 %v5259_v21 }
 0xaeb   :  { %4785 = vmatpush3.bf16.msra.mxu1 %v5062_v41 }
 0xaec   :  { %4810 = vmatprep.subr.bf16.mxu1 %v5259_v21 }
 0xba8   :  { %v1607_v55 = vpop.f32.mrb[18].mxu0 }
 0xba9   :  { %v4760_v57 = vpop.f32.mrb[19].mxu0 }
 0xbb0   :  { %v1683_v59 = vpop.f32.mrb[22].mxu1 }
 0xbb1   :  { %v5023_v53 = vpack.i.bf16 %v1683_v59, %v1607_v55  ;;  %v4765_v61 = vpop.f32.mrb[23].mxu1 }
 0xbb3   :  { %5024 = vrot.lane.b32.xlu0 %v5023_v53, %s5267_s3 }
 0xc25   :  { %v5025_v9 = vpop.permute.xlu0 %5024 }
 0xc26   :  { %v5027_v11 = vunpack.i.h.bf16 %v5025_v9  ;;  %v5026_v12 = vunpack.i.l.bf16 %v5025_v9  ;;  %v5067_v9 = vld [vmem:[#allocation4 + $0x20] sm:$0xff]  }
 0xc28   :  { %v1718_v15 = vsel %vm1716_vm5, %v1715_v13, %v5027_v11  ;;  %v1717_v17 = vsel %vm1716_vm5, %v1714_v14, %v5026_v12  ;;  %v5070_v11 = vld [vmem:[#allocation4 + $0x38] sm:$0xff]   ;;  %v5680_v12 = vsub.s32 4, %v5352_v6 }
 0xc29   :  { %v1719_v19 = vpack.c.bf16 %v1718_v15, %v1717_v17 }
 0xc2a   :  { %v1853_v13 = vrot.slane %v5402_v28, %v5680_v12 }
 0xc2b   :  { %4775 = vmatmul.mubr.msk.bf16.vlgmr.msra.gmra.mrb[20].mxu0 %vm61_vm0, %v1719_v19 }
 0xc2c   :  { %4806 = vmatprep.mubr.msk.bf16.mxu0 %vm5260_vm1, %v5259_v21  ;;  %4791 = vmatpush3.bf16.msra.mxu0 %v5063_v45 }
 0xc2d   :  { %4792 = vmatprep.subr.bf16.mxu0 %v5259_v21 }
 0xc30   :  { %4793 = vmatpush3.bf16.msra.mxu0 %v5064_v46 }
 0xc31   :  { %4794 = vmatprep.subr.bf16.mxu0 %v5259_v21 }
 0xc34   :  { %4795 = vmatpush3.bf16.msra.mxu0 %v5065_v5  ;;  %v5736_v5 = vld [vmem:[%s6080_s5 + $0x8] sm:$0x3f] }
 0xc35   :  { %4796 = vmatprep.subr.bf16.mxu0 %v5259_v21 }
 0xc38   :  { %4797 = vmatpush3.bf16.msra.mxu0 %v5066_v8  ;;  %v2097_v8 = vrot.slane %v5736_v5, %v5355_v7 }
 0xc39   :  { %4798 = vmatprep.subr.bf16.mxu0 %v5259_v21 }
 0xc3c   :  { %4799 = vmatpush3.bf16.msra.mxu0 %v5067_v9 }
 0xc3d   :  { %4800 = vmatprep.subr.bf16.mxu0 %v5259_v21 }
 0xc40   :  { %4801 = vmatpush3.bf16.msra.mxu0 %v5068_v10 }
 0xc41   :  { %4802 = vmatprep.subr.bf16.mxu0 %v5259_v21 }
 0xc44   :  { %4803 = vmatpush3.bf16.msra.mxu0 %v5069_v60 }
 0xc45   :  { %4804 = vmatprep.subr.bf16.mxu0 %v5259_v21 }
 0xc48   :  { %4805 = vmatpush3.bf16.msra.mxu0 %v5070_v11 }
 0xc49   :  { %4834 = vmatprep.subr.bf16.mxu0 %v5259_v21 }
 0xcfe   :  { %v1794_v20 = vpop.f32.mrb[20].mxu0 }
 0xcff   :  { %v1795_v22 = vadd.f32 %v1794_v20, %v1755_v58  ;;  %v4776_v56 = vpop.f32.mrb[21].mxu0 }
 0xd00   :  { %v1797_v23 = vpop.f32.mrb[22].mxu0 }
 0xd01   :  { %v1798_v24 = vadd.f32 %v1797_v23, %v1755_v58  ;;  %v4777_v25 = vpop.f32.mrb[23].mxu0  ;;  %v1801_v26 = vadd.f32 %v1795_v22, %v5407_v43 }
 0xd03   :  { %v1803_v27 = vsel %vm61_vm0, %v1801_v26, 0.0  ;;  %v1802_v29 = vadd.f32 %v1798_v24, %v5409_v44  ;;  %v5659_v44 = vsub.s32 2, %v5352_v6 }
 0xd04   :  { %1804 = vadd.xlane.f32.xlu0 %v1803_v27 }
 0xd05   :  { %v1806_v30 = vsel %vm61_vm0, %v1802_v29, 0.0  ;;  %v1832_v42 = vrot.slane %v5402_v28, %v5659_v44 }
 0xd06   :  { %1807 = vadd.xlane.f32.xlu1 %v1806_v30 }
 0xd91   :  { %v1805_v31 = vpop.xlane.xlu0 %1804 }
 0xd92   :  { %v1809_v32 = vmul.f32 0.015625, %v1805_v31 }
 0xd93   :  { %v1808_v33 = vpop.xlane.xlu1 %1807 }
 0xd94   :  { %v1811_v35 = vsub.f32 %v1801_v26, %v1809_v32  ;;  %v1810_v36 = vmul.f32 0.015625, %v1808_v33  ;;  %v5687_v33 = vsub.s32 5, %v5352_v6 }
 0xd96   :  { %v1812_v37 = vsub.f32 %v1802_v29, %v1810_v36  ;;  %v1813_v38 = vmul.f32 %v1811_v35, %v1811_v35 }
 0xd98   :  { %v1815_v47 = vsel %vm61_vm0, %v1813_v38, 0.0  ;;  %v1814_v39 = vmul.f32 %v1812_v37, %v1812_v37 }
 0xd99   :  { %1816 = vadd.xlane.f32.xlu0 %v1815_v47 }
 0xd9a   :  { %v1818_v43 = vsel %vm61_vm0, %v1814_v39, 0.0 }
 0xd9d   :  { %1819 = vadd.xlane.f32.xlu0 %v1818_v43 }
 0xdb3   :  { %1836 = vrot.lane.b32.xlu0 %v1832_v42, %s5256_s15 }
 0xdb7   :  { %2200 = vrot.lane.b32.xlu0 %v2097_v8, %s5256_s15 }
 0xe26   :  { %v1817_v48 = vpop.xlane.xlu0 %1816 }
 0xe27   :  { %v1821_v49 = vmul.f32 0.015625, %v1817_v48 }
 0xe29   :  { %v1823_v50 = vadd.f32 1e-12, %v1821_v49 }
 0xe2a   :  { %v1820_v2 = vpop.xlane.xlu0 %1819 }
 0xe2b   :  { %5144 = vrsqrt.f32 %v1823_v50  ;;  %v1822_v51 = vmul.f32 0.015625, %v1820_v2 }
 0xe2d   :  { %v1824_v52 = vadd.f32 1e-12, %v1822_v51 }
 0xe2e   :  { %v1837_v61 = vpop.permute.xlu0 %1836 }
 0xe2f   :  { %5146 = vrsqrt.f32 %v1824_v52 }
 0xe35   :  { %v5145_v54 = vpop.eup %5144 }
 0xe36   :  { %v1827_v55 = vmul.f32 %v5145_v54, %v1811_v35  ;;  %v1952_v35 = vrot.slane %v5402_v28, %v5687_v33 }
 0xe38   :  { %v1833_v53 = vmul.f32 %v1832_v42, %v1827_v55  ;;  %v5696_v55 = vsub.s32 3, %v5352_v6 }
 0xe39   :  { %v5147_v57 = vpop.eup %5146 }
 0xe3a   :  { %v1828_v59 = vmul.f32 %v5147_v57, %v1812_v37  ;;  %v1839_v1 = vadd.f32 %v1837_v61, %v1833_v53  ;;  %v2073_v57 = vrot.slane %v5402_v28, %v5696_v55  ;;  %v5072_v53 = vld [vmem:[%s6077_s2 + $0xc0] sm:$0xff]   ;;  %v5074_v28 = vld [vmem:[%s6077_s2 + $0xc8] sm:$0xff]  }
 0xe3c   :  { %v1834_v62 = vmul.f32 %v1832_v42, %v1828_v59  ;;  %v5071_v59 = vld [vmem:[%s6077_s2 + $0x80] sm:$0xff]  }
 0xe3e   :  { %v1840_v3 = vadd.f32 %v1837_v61, %v1834_v62  ;;  %v5073_v61 = vld [vmem:[%s6077_s2 + $0x88] sm:$0xff]   ;;  %v5075_v62 = vld [vmem:[%s6077_s2 + $0x90] sm:$0xff]  }
 0xe40   :  { %v1841_v4 = vpack.c.bf16 %v1840_v3, %v1839_v1 }
 0xe42   :  { %4787 = vmatmul.mubr.msk.bf16.vlgmr.msra.gmra.mrb[24].mxu1 %vm61_vm0, %v1841_v4  ;;  %v5078_v4 = vld [vmem:[%s6077_s2 + $0xd8] sm:$0xff]  }
 0xe43   :  { %4818 = vmatprep.mubr.msk.bf16.mxu1 %vm5260_vm1, %v5259_v21  ;;  %4811 = vmatpush3.bf16.msra.mxu1 %v5071_v59 }
 0xe44   :  { %4812 = vmatprep.subr.bf16.mxu1 %v5259_v21 }
 0xe47   :  { %4813 = vmatpush3.bf16.msra.mxu1 %v5073_v61 }
 0xe48   :  { %4814 = vmatprep.subr.bf16.mxu1 %v5259_v21 }
 0xe4b   :  { %4815 = vmatpush3.bf16.msra.mxu1 %v5075_v62 }
 0xe4c   :  { %4816 = vmatprep.subr.bf16.mxu1 %v5259_v21 }
 0xf15   :  { %v1915_v14 = vpop.f32.mrb[24].mxu1 }
 0xf16   :  { %v1916_v15 = vadd.f32 %v1915_v14, %v1853_v13  ;;  %v4788_v17 = vpop.f32.mrb[25].mxu1 }
 0xf17   :  { %v1918_v19 = vpop.f32.mrb[26].mxu1 }
 0xf18   :  { %v1924_v58 = vmul.f32 0.70710677, %v1916_v15  ;;  %v1919_v20 = vadd.f32 %v1918_v19, %v1853_v13  ;;  %v4789_v22 = vpop.f32.mrb[27].mxu1  ;;  %v1922_v26 = vmul.f32 0.5, %v1916_v15 }
 0xf1a   :  { %5148 = verf.f32 %v1924_v58  ;;  %v1925_v56 = vmul.f32 0.70710677, %v1919_v20  ;;  %v1923_v27 = vmul.f32 0.5, %v1919_v20 }
 0xf1c   :  { %5150 = verf.f32 %v1925_v56 }
 0xf24   :  { %v5149_v23 = vpop.eup %5148 }
 0xf25   :  { %v1928_v24 = vadd.f32 1.0, %v5149_v23 }
 0xf26   :  { %v5151_v25 = vpop.eup %5150 }
 0xf27   :  { %v1929_v29 = vadd.f32 1.0, %v5151_v25  ;;  %v1930_v30 = vmul.f32 %v1928_v24, %v1922_v26  ;;  %v5079_v24 = vld [vmem:[%s6077_s2 + $0xa0] sm:$0xff]   ;;  %v5080_v26 = vld [vmem:[%s6077_s2 + $0xa8] sm:$0xff]  }
 0xf29   :  { %v1931_v31 = vmul.f32 %v1929_v29, %v1923_v27  ;;  %v5081_v27 = vld [vmem:[%s6077_s2 + $0xb0] sm:$0xff]   ;;  %v5082_v29 = vld [vmem:[%s6077_s2 + $0xb8] sm:$0xff]  }
 0xf2b   :  { %v1932_v32 = vpack.c.bf16 %v1931_v31, %v1930_v30 }
 0xf2d   :  { %4807 = vmatmul.mubr.bf16.vlgmr.msra.gmra.mrb[24].mxu0 %v1932_v32 }
 0xf2e   :  { %4842 = vmatprep.mubr.msk.bf16.mxu0 %vm5260_vm1, %v5259_v21  ;;  %4835 = vmatpush3.bf16.msra.mxu0 %v5072_v53 }
 0xf2f   :  { %4836 = vmatprep.subr.bf16.mxu0 %v5259_v21 }
 0xf32   :  { %4837 = vmatpush3.bf16.msra.mxu0 %v5074_v28 }
 0xf33   :  { %4838 = vmatprep.subr.bf16.mxu0 %v5259_v21 }
0x1000   :  { %v2035_v36 = vpop.f32.mrb[24].mxu0 }
0x1001   :  { %v2036_v37 = vadd.f32 %v2035_v36, %v1952_v35  ;;  %v4808_v38 = vpop.f32.mrb[25].mxu0 }
0x1002   :  { %v2038_v47 = vpop.f32.mrb[26].mxu0 }
0x1003   :  { %v2039_v39 = vadd.f32 %v2038_v47, %v1952_v35  ;;  %v4809_v43 = vpop.f32.mrb[27].mxu0  ;;  %v2042_v42 = vadd.f32 %v2036_v37, %v1839_v1  ;;  %v5076_v1 = vld [vmem:[%s6077_s2 + $0xd0] sm:$0xff]  }
0x1004   :  { %4839 = vmatpush3.bf16.msra.mxu0 %v5076_v1 }
0x1005   :  { %v2044_v34 = vsel %vm61_vm0, %v2042_v42, 0.0  ;;  %v2043_v40 = vadd.f32 %v2039_v39, %v1840_v3  ;;  %v5077_v3 = vld [vmem:[%s6077_s2 + $0x98] sm:$0xff]   ;;  %4840 = vmatprep.subr.bf16.mxu0 %v5259_v21  ;;  %v2201_v39 = vpop.permute.xlu0 %2200 }
0x1006   :  { %2045 = vadd.xlane.f32.xlu1 %v2044_v34  ;;  %4817 = vmatpush3.bf16.msra.mxu1 %v5077_v3 }
0x1007   :  { %v2047_v0 = vsel %vm61_vm0, %v2043_v40, 0.0  ;;  %4822 = vmatprep.subr.bf16.mxu1 %v5259_v21 }
0x1008   :  { %4841 = vmatpush3.bf16.msra.mxu0 %v5078_v4 }
0x1009   :  { %4866 = vmatprep.subr.mxu0 %v5259_v21 }
0x100a   :  { %2048 = vadd.xlane.f32.xlu1 %v2047_v0 }
0x1093   :  { %v2046_v41 = vpop.xlane.xlu1 %2045 }
0x1094   :  { %v2050_v45 = vmul.f32 0.015625, %v2046_v41 }
0x1096   :  { %v2052_v46 = vsub.f32 %v2042_v42, %v2050_v45  ;;  %v5783_v45 = vrot.slane %v5736_v5, %v5457_v63 }
0x1097   :  { %v2049_v48 = vpop.xlane.xlu1 %2048 }
0x1098   :  { %v2051_v49 = vmul.f32 0.015625, %v2049_v48  ;;  %v2054_v50 = vmul.f32 %v2052_v46, %v2052_v46 }
0x109a   :  { %v2053_v2 = vsub.f32 %v2043_v40, %v2051_v49  ;;  %v2056_v51 = vsel %vm61_vm0, %v2054_v50, 0.0 }
0x109b   :  { %2057 = vadd.xlane.f32.xlu1 %v2056_v51 }
0x109c   :  { %v2055_v52 = vmul.f32 %v2053_v2, %v2053_v2 }
0x109e   :  { %v2059_v54 = vsel %vm61_vm0, %v2055_v52, 0.0 }
0x109f   :  { %2060 = vadd.xlane.f32.xlu1 %v2059_v54 }
0x10b0   :  { %2077 = vrot.lane.b32.xlu1 %v2073_v57, %s5256_s15 }
0x1128   :  { %v2058_v9 = vpop.xlane.xlu1 %2057 }
0x1129   :  { %v2062_v10 = vmul.f32 0.015625, %v2058_v9 }
0x112b   :  { %v2064_v60 = vadd.f32 1e-12, %v2062_v10 }
0x112c   :  { %v2061_v11 = vpop.xlane.xlu1 %2060 }
0x112d   :  { %5152 = vrsqrt.f32 %v2064_v60  ;;  %v2063_v13 = vmul.f32 0.015625, %v2061_v11 }
0x112f   :  { %v2065_v14 = vadd.f32 1e-12, %v2063_v13 }
0x1130   :  { %v2078_v22 = vpop.permute.xlu1 %2077 }
0x1131   :  { %5154 = vrsqrt.f32 %v2065_v14 }
0x1137   :  { %v5153_v15 = vpop.eup %5152 }
0x1138   :  { %v2068_v17 = vmul.f32 %v5153_v15, %v2052_v46 }
0x113a   :  { %v2074_v20 = vmul.f32 %v2073_v57, %v2068_v17 }
0x113b   :  { %v5155_v19 = vpop.eup %5154 }
0x113c   :  { %v2069_v58 = vmul.f32 %v5155_v19, %v2053_v2  ;;  %v5741_v23 = vadd.f32 %v2078_v22, %v2074_v20 }
0x113e   :  { %v2075_v56 = vmul.f32 %v2073_v57, %v2069_v58 }
0x1140   :  { %v5743_v7 = vadd.f32 %v2078_v22, %v2075_v56 }
0x1142   :  { %v2084_v25 = vpack.c.bf16 %v5743_v7, %v5741_v23 }
0x1144   :  { %4819 = vmatmul.mubr.msk.bf16.vlgmr.msra.gmra.mrb[28].mxu1 %vm61_vm0, %v2084_v25  ;;  %4843 = vmatmul.mubr.msk.bf16.vlgmr.msra.gmra.mrb[28].mxu0 %vm61_vm0, %v2084_v25 }
0x1145   :  { %4823 = vmatpush3.bf16.msra.mxu1 %v5079_v24  ;;  %4830 = vmatprep.mubr.msk.bf16.mxu1 %vm5260_vm1, %v5259_v21 }
0x1146   :  { %4824 = vmatprep.subr.bf16.mxu1 %v5259_v21  ;;  %4868 = vmatprep.mubr.msk.f32.mxu0 %vm5260_vm1, %v5259_v21 }
0x1149   :  { %4825 = vmatpush3.bf16.msra.mxu1 %v5080_v26 }
0x114a   :  { %4826 = vmatprep.subr.bf16.mxu1 %v5259_v21 }
0x114d   :  { %4827 = vmatpush3.bf16.msra.mxu1 %v5081_v27 }
0x114e   :  { %4828 = vmatprep.subr.bf16.mxu1 %v5259_v21 }
0x1151   :  { %4829 = vmatpush3.bf16.msra.mxu1 %v5082_v29 }
0x1152   :  { %4846 = vmatprep.subr.mxu1 %v5259_v21 }
0x1154   :  { %4831 = vmatmul.mubr.msk.bf16.vlgmr.msra.gmra.mrb[32].mxu1 %vm61_vm0, %v2084_v25 }
0x1155   :  { %4848 = vmatprep.mubr.msk.f32.mxu1 %vm5260_vm1, %v5259_v21 }
0x1217   :  { %v2159_v30 = vpop.f32.mrb[28].mxu1  ;;  %v2315_v31 = vpop.f32.mrb[28].mxu0 }
0x1218   :  { %v4820_v32 = vpop.f32.mrb[29].mxu1  ;;  %v4844_v35 = vpop.f32.mrb[29].mxu0  ;;  %v5778_v41 = vadd.f32 %v2159_v30, %v2097_v8  ;;  %v5797_v49 = vadd.f32 %v2315_v31, %v5783_v45 }
0x1219   :  { %v2162_v36 = vpop.f32.mrb[30].mxu1  ;;  %v5772_v37 = vpop.f32.mrb[30].mxu0 }
0x121a   :  { %v4821_v38 = vpop.f32.mrb[31].mxu1  ;;  %v4845_v47 = vpop.f32.mrb[31].mxu0  ;;  %v5793_v48 = vadd.f32 %v2162_v36, %v2097_v8  ;;  %v5826_v58 = vadd.f32 %v5772_v37, %v5783_v45 }
0x1227   :  { %v2237_v43 = vpop.f32.mrb[32].mxu1 }
0x1228   :  { %v5774_v42 = vadd.f32 %v2237_v43, %v2201_v39  ;;  %v4832_v34 = vpop.f32.mrb[33].mxu1 }
0x1229   :  { %v2240_v40 = vpop.f32.mrb[34].mxu1 }
0x122a   :  { %v4833_v0 = vpop.f32.mrb[35].mxu1  ;;  %4847 = vmatpush3.xpose.msk.msra.mxu1 %vm373_vm2, %v5774_v42  ;;  %v5785_v46 = vadd.f32 %v2240_v40, %v2201_v39 }
0x122b   :  { %4851 = vmatprep.subr.mxu1 %v5259_v21 }
0x122d   :  { %4849 = vmatmul.mubr.msk.f32.vlgmr.msra.gmra.mrb[36].mxu1 %vm373_vm2, %v5778_v41 }
0x122e   :  { %4852 = vmatpush3.xpose.msk.msra.mxu1 %vm373_vm2, %v5785_v46  ;;  %4853 = vmatprep.mubr.msk.f32.mxu1 %vm5260_vm1, %v5259_v21 }
0x122f   :  { %4856 = vmatprep.subr.mxu1 %v5259_v21 }
0x1231   :  { %4854 = vmatmul.mubr.msk.f32.vlgmr.msra.gmra.mrb[38].mxu1 %vm373_vm2, %v5793_v48 }
0x1232   :  { %4857 = vmatpush3.msra.mxu1 %v5797_v49  ;;  %4858 = vmatprep.mubr.msk.f32.mxu1 %vm5260_vm1, %v5259_v21 }
0x1233   :  { %4861 = vmatprep.subr.mxu1 %v5259_v21 }
0x1300   :  { %v2394_v50 = vpop.f32.mrb[36].mxu1 }
0x1301   :  { %v2395_v2 = vadd.f32 %v2394_v50, %v5477_v16  ;;  %v4850_v51 = vpop.f32.mrb[37].mxu1 }
0x1303   :  { %v2474_v52 = vsel %vm526_vm3, %v2395_v2, -inf }
0x1304   :  { %2475 = vmax.xlane.f32.xlu0 %v2474_v52  ;;  %v2470_v54 = vpop.f32.mrb[38].mxu1 }
0x1305   :  { %v2471_v57 = vadd.f32 %v2470_v54, %v5480_v18  ;;  %v4855_v59 = vpop.f32.mrb[39].mxu1 }
0x1307   :  { %v2477_v53 = vsel %vm526_vm3, %v2471_v57, -inf }
0x1308   :  { %2478 = vmax.xlane.f32.xlu1 %v2477_v53 }
0x1319   :  { %2722 = vrot.lane.b32.xlu1 %v5785_v46, %s5262_s1 }
0x131d   :  { %2642 = vrot.lane.b32.xlu1 %v5778_v41, %s5262_s1 }
0x1391   :  { %v2476_v61 = vpop.xlane.xlu0 %2475 }
0x1392   :  { %v2480_v28 = vsub.f32 %v2395_v2, %v2476_v61 }
0x1394   :  { %v2482_v62 = vmul.f32 1.442695, %v2480_v28 }
0x1395   :  { %v2479_v4 = vpop.xlane.xlu1 %2478 }
0x1396   :  { %5156 = vpow2.f32 %v2482_v62  ;;  %v2481_v8 = vsub.f32 %v2471_v57, %v2479_v4 }
0x1398   :  { %v2484_v9 = vmul.f32 1.442695, %v2481_v8 }
0x1399   :  { %v2723_v13 = vpop.permute.xlu1 %2722 }
0x139a   :  { %5158 = vpow2.f32 %v2484_v9 }
0x139d   :  { %v2643_v15 = vpop.permute.xlu1 %2642 }
0x13a0   :  { %v5157_v1 = vpop.eup %5156 }
0x13a1   :  { %v2486_v3 = vsel %vm526_vm3, %v5157_v1, 0.0 }
0x13a2   :  { %2487 = vadd.xlane.f32.xlu0 %v2486_v3 }
0x13a4   :  { %v5159_v10 = vpop.eup %5158 }
0x13a5   :  { %v2489_v60 = vsel %vm526_vm3, %v5159_v10, 0.0 }
0x13b8   :  { %2644 = vrot.lane.b32.xlu0 %v5774_v42, %s5262_s1 }
0x13d7   :  { %2490 = vadd.xlane.f32.xlu0 %v2489_v60 }
0x13ed   :  { %2720 = vrot.lane.b32.xlu0 %v5793_v48, %s5262_s1 }
0x142f   :  { %v2488_v11 = vpop.xlane.xlu0 %2487 }
0x1430   :  { %5160 = vrcp.f32 %v2488_v11 }
0x1433   :  { %v2645_v14 = vpop.permute.xlu0 %2644 }
0x1434   :  { %4867 = vmatpush3.xpose.msk.msra.mxu0 %vm373_vm2, %v2645_v14 }
0x1435   :  { %4876 = vmatprep.subr.mxu0 %v5259_v21 }
0x1437   :  { %4869 = vmatmul.mubr.msk.f32.vlgmr.msra.gmra.mrb[32].mxu0 %vm373_vm2, %v2643_v15 }
0x1438   :  { %4878 = vmatprep.mubr.msk.f32.mxu0 %vm5260_vm1, %v5259_v21 }
0x143a   :  { %v5161_v17 = vpop.eup %5160 }
0x143b   :  { %v2494_v19 = vmul.f32 %v5161_v17, %v5157_v1 }
0x143d   :  { %4859 = vmatmul.mubr.msk.f32.vlgmr.msra.gmra.mrb[40].mxu1 %vm526_vm3, %v2494_v19 }
0x143e   :  { %4862 = vmatpush3.msra.mxu1 %v5826_v58  ;;  %4863 = vmatprep.mubr.msk.f32.mxu1 %vm5260_vm1, %v5259_v21 }
0x143f   :  { %4871 = vmatprep.subr.mxu1 %v5259_v21 }
0x1464   :  { %v2491_v20 = vpop.xlane.xlu0 %2490 }
0x1465   :  { %5162 = vrcp.f32 %v2491_v20 }
0x1468   :  { %v2721_v24 = vpop.permute.xlu0 %2720 }
0x146f   :  { %v5163_v22 = vpop.eup %5162 }
0x1470   :  { %v2495_v56 = vmul.f32 %v5163_v22, %v5159_v10 }
0x1472   :  { %4864 = vmatmul.mubr.msk.f32.vlgmr.msra.gmra.mrb[42].mxu1 %vm526_vm3, %v2495_v56 }
0x1473   :  { %4872 = vmatpush3.xpose.msk.msra.mxu1 %vm373_vm2, %v2723_v13  ;;  %4873 = vmatprep.mubr.msk.f32.mxu1 %vm5260_vm1, %v5259_v21 }
0x1474   :  { %4881 = vmatprep.subr.mxu1 %v5259_v21 }
0x1476   :  { %4874 = vmatmul.mubr.msk.f32.vlgmr.msra.gmra.mrb[44].mxu1 %vm373_vm2, %v2721_v24 }
0x1477   :  { %4883 = vmatprep.mubr.msk.f32.mxu1 %vm5260_vm1, %v5259_v21 }
0x150a   :  { %v2716_v25 = vpop.f32.mrb[32].mxu0 }
0x150b   :  { %v2717_v26 = vadd.f32 %v2716_v25, %v5477_v16  ;;  %v4870_v27 = vpop.f32.mrb[33].mxu0 }
0x150d   :  { %v2798_v29 = vsel %vm526_vm3, %v2717_v26, -inf }
0x150e   :  { %2799 = vmax.xlane.f32.xlu1 %v2798_v29 }
0x1510   :  { %v5843_v30 = vpop.f32.mrb[40].mxu1 }
0x1511   :  { %v4860_v31 = vpop.f32.mrb[41].mxu1 }
0x151f   :  { %2821 = vrot.lane.b32.xlu1 %v5797_v49, %s5262_s1 }
0x1523   :  { %2976 = vrot.lane.b32.xlu1 %v5774_v42, %s5263_s17 }
0x1527   :  { %3054 = vrot.lane.b32.xlu1 %v5785_v46, %s5263_s17 }
0x152b   :  { %2974 = vrot.lane.b32.xlu1 %v5778_v41, %s5263_s17 }
0x1545   :  { %v5853_v32 = vpop.f32.mrb[42].mxu1 }
0x1546   :  { %v4865_v35 = vpop.f32.mrb[43].mxu1 }
0x1549   :  { %v2794_v36 = vpop.f32.mrb[44].mxu1 }
0x154a   :  { %v2795_v37 = vadd.f32 %v2794_v36, %v5480_v18  ;;  %v4875_v38 = vpop.f32.mrb[45].mxu1 }
0x154c   :  { %v2801_v47 = vsel %vm526_vm3, %v2795_v37, -inf }
0x154d   :  { %2802 = vmax.xlane.f32.xlu0 %v2801_v47 }
0x159b   :  { %v2800_v39 = vpop.xlane.xlu1 %2799 }
0x159c   :  { %v2804_v43 = vsub.f32 %v2717_v26, %v2800_v39 }
0x159e   :  { %v2806_v34 = vmul.f32 1.442695, %v2804_v43 }
0x159f   :  { %v2822_v40 = vpop.permute.xlu1 %2821 }
0x15a0   :  { %5164 = vpow2.f32 %v2806_v34  ;;  %4877 = vmatpush3.msra.mxu0 %v2822_v40 }
0x15a1   :  { %4886 = vmatprep.subr.mxu0 %v5259_v21 }
0x15a3   :  { %v2977_v61 = vpop.permute.xlu1 %2976 }
0x15a7   :  { %v3055_v62 = vpop.permute.xlu1 %3054 }
0x15aa   :  { %v5165_v0 = vpop.eup %5164 }
0x15ab   :  { %v2810_v50 = vsel %vm526_vm3, %v5165_v0, 0.0  ;;  %v2975_v3 = vpop.permute.xlu1 %2974 }
0x15ac   :  { %2811 = vadd.xlane.f32.xlu0 %v2810_v50 }
0x15c2   :  { %2898 = vrot.lane.b32.xlu0 %v5826_v58, %s5262_s1 }
0x15da   :  { %v2803_v2 = vpop.xlane.xlu0 %2802 }
0x15db   :  { %v2805_v51 = vsub.f32 %v2795_v37, %v2803_v2 }
0x15dd   :  { %v2808_v52 = vmul.f32 1.442695, %v2805_v51 }
0x15df   :  { %5166 = vpow2.f32 %v2808_v52 }
0x15e9   :  { %v5167_v54 = vpop.eup %5166 }
0x15ea   :  { %v2813_v57 = vsel %vm526_vm3, %v5167_v54, 0.0 }
0x15eb   :  { %2814 = vadd.xlane.f32.xlu0 %v2813_v57 }
0x1601   :  { %3052 = vrot.lane.b32.xlu0 %v5793_v48, %s5263_s17 }
0x1639   :  { %v2812_v59 = vpop.xlane.xlu0 %2811 }
0x163a   :  { %5168 = vrcp.f32 %v2812_v59 }
0x163d   :  { %v2899_v53 = vpop.permute.xlu0 %2898 }
0x163e   :  { %4882 = vmatpush3.msra.mxu1 %v2899_v53 }
0x163f   :  { %4891 = vmatprep.subr.mxu1 %v5259_v21 }
0x1644   :  { %v5169_v28 = vpop.eup %5168 }
0x1645   :  { %v2818_v1 = vmul.f32 %v5169_v28, %v5165_v0 }
0x1647   :  { %4879 = vmatmul.mubr.msk.f32.vlgmr.msra.gmra.mrb[34].mxu0 %vm526_vm3, %v2818_v1 }
0x1648   :  { %4887 = vmatpush3.xpose.msk.msra.mxu0 %vm373_vm2, %v2977_v61  ;;  %4888 = vmatprep.mubr.msk.f32.mxu0 %vm5260_vm1, %v5259_v21 }
0x1649   :  { %4896 = vmatprep.subr.mxu0 %v5259_v21 }
0x164b   :  { %4889 = vmatmul.mubr.msk.f32.vlgmr.msra.gmra.mrb[36].mxu0 %vm373_vm2, %v2975_v3 }
0x164c   :  { %4898 = vmatprep.mubr.msk.f32.mxu0 %vm5260_vm1, %v5259_v21 }
0x1678   :  { %v2815_v4 = vpop.xlane.xlu0 %2814 }
0x1679   :  { %5170 = vrcp.f32 %v2815_v4 }
0x167c   :  { %v3053_v10 = vpop.permute.xlu0 %3052 }
0x1683   :  { %v5171_v8 = vpop.eup %5170 }
0x1684   :  { %v2819_v9 = vmul.f32 %v5171_v8, %v5167_v54 }
0x1686   :  { %4884 = vmatmul.mubr.msk.f32.vlgmr.msra.gmra.mrb[46].mxu1 %vm526_vm3, %v2819_v9 }
0x1687   :  { %4892 = vmatpush3.xpose.msk.msra.mxu1 %vm373_vm2, %v3055_v62  ;;  %4893 = vmatprep.mubr.msk.f32.mxu1 %vm5260_vm1, %v5259_v21 }
0x1688   :  { %4901 = vmatprep.subr.mxu1 %v5259_v21 }
0x168a   :  { %4894 = vmatmul.mubr.msk.f32.vlgmr.msra.gmra.mrb[48].mxu1 %vm373_vm2, %v3053_v10 }
0x168b   :  { %4903 = vmatprep.mubr.msk.f32.mxu1 %vm5260_vm1, %v5259_v21 }
0x171a   :  { %v5881_v60 = vpop.f32.mrb[34].mxu0 }
0x171b   :  { %v4880_v11 = vpop.f32.mrb[35].mxu0 }
0x171e   :  { %v3048_v13 = vpop.f32.mrb[36].mxu0 }
0x171f   :  { %v3049_v14 = vadd.f32 %v3048_v13, %v5477_v16  ;;  %v4890_v15 = vpop.f32.mrb[37].mxu0 }
0x1721   :  { %v3130_v17 = vsel %vm526_vm3, %v3049_v14, -inf }
0x1722   :  { %3131 = vmax.xlane.f32.xlu1 %v3130_v17 }
0x1733   :  { %3152 = vrot.lane.b32.xlu1 %v5797_v49, %s5263_s17 }
0x1737   :  { %3306 = vrot.lane.b32.xlu1 %v5774_v42, %s5264_s18 }
0x173b   :  { %3384 = vrot.lane.b32.xlu1 %v5785_v46, %s5264_s18 }
0x173f   :  { %3304 = vrot.lane.b32.xlu1 %v5778_v41, %s5264_s18 }
0x1759   :  { %v2970_v19 = vpop.f32.mrb[46].mxu1 }
0x175a   :  { %v5028_v20 = vpack.i.bf16 %v2970_v19, %v5881_v60  ;;  %v4885_v22 = vpop.f32.mrb[47].mxu1 }
0x175d   :  { %v3126_v56 = vpop.f32.mrb[48].mxu1 }
0x175e   :  { %v3127_v24 = vadd.f32 %v3126_v56, %v5480_v18  ;;  %v4895_v25 = vpop.f32.mrb[49].mxu1 }
0x1760   :  { %v3133_v26 = vsel %vm526_vm3, %v3127_v24, -inf }
0x1761   :  { %3134 = vmax.xlane.f32.xlu0 %v3133_v26 }
0x17af   :  { %v3132_v27 = vpop.xlane.xlu1 %3131 }
0x17b0   :  { %v3136_v29 = vsub.f32 %v3049_v14, %v3132_v27 }
0x17b2   :  { %v3138_v42 = vmul.f32 1.442695, %v3136_v29 }
0x17b3   :  { %v3153_v31 = vpop.permute.xlu1 %3152 }
0x17b4   :  { %5172 = vpow2.f32 %v3138_v42  ;;  %4897 = vmatpush3.msra.mxu0 %v3153_v31  ;;  %v5084_v42 = vld [vmem:[%s6077_s2 + $0xe8] sm:$0xff]   ;;  %v5085_v31 = vld [vmem:[%s6077_s2 + $0xf0] sm:$0xff]  }
0x17b5   :  { %4906 = vmatprep.subr.mxu0 %v5259_v21 }
0x17b7   :  { %v3307_v34 = vpop.permute.xlu1 %3306 }
0x17bb   :  { %v3385_v0 = vpop.permute.xlu1 %3384 }
0x17be   :  { %v5173_v41 = vpop.eup %5172 }
0x17bf   :  { %v3142_v46 = vsel %vm526_vm3, %v5173_v41, 0.0 }
0x17c0   :  { %3143 = vadd.xlane.f32.xlu0 %v3142_v46 }
0x17d6   :  { %3228 = vrot.lane.b32.xlu0 %v5826_v58, %s5263_s17 }
0x17ee   :  { %v3135_v35 = vpop.xlane.xlu0 %3134 }
0x17ef   :  { %v3137_v36 = vsub.f32 %v3127_v24, %v3135_v35  ;;  %v5086_v35 = vld [vmem:[%s6077_s2 + $0xf8] sm:$0xff]  }
0x17f1   :  { %v3140_v37 = vmul.f32 1.442695, %v3137_v36 }
0x17f3   :  { %5174 = vpow2.f32 %v3140_v37 }
0x17fd   :  { %v5175_v38 = vpop.eup %5174 }
0x17fe   :  { %v3145_v47 = vsel %vm526_vm3, %v5175_v38, 0.0 }
0x17ff   :  { %3146 = vadd.xlane.f32.xlu0 %v3145_v47 }
0x1815   :  { %3382 = vrot.lane.b32.xlu0 %v5793_v48, %s5264_s18  ;;  %v3305_v48 = vpop.permute.xlu1 %3304 }
0x184d   :  { %v3144_v39 = vpop.xlane.xlu0 %3143 }
0x184e   :  { %5176 = vrcp.f32 %v3144_v39 }
0x1851   :  { %v3229_v43 = vpop.permute.xlu0 %3228 }
0x1852   :  { %4902 = vmatpush3.msra.mxu1 %v3229_v43 }
0x1853   :  { %4911 = vmatprep.subr.mxu1 %v5259_v21 }
0x1858   :  { %v5177_v40 = vpop.eup %5176 }
0x1859   :  { %v3150_v50 = vmul.f32 %v5177_v40, %v5173_v41 }
0x185b   :  { %4899 = vmatmul.mubr.msk.f32.vlgmr.msra.gmra.mrb[38].mxu0 %vm526_vm3, %v3150_v50 }
0x185c   :  { %4907 = vmatpush3.xpose.msk.msra.mxu0 %vm373_vm2, %v3307_v34  ;;  %4908 = vmatprep.mubr.msk.f32.mxu0 %vm5260_vm1, %v5259_v21 }
0x185d   :  { %4916 = vmatprep.subr.mxu0 %v5259_v21 }
0x185f   :  { %4909 = vmatmul.mubr.msk.f32.vlgmr.msra.gmra.mrb[40].mxu0 %vm373_vm2, %v3305_v48 }
0x1860   :  { %4918 = vmatprep.mubr.msk.f32.mxu0 %vm5260_vm1, %v5259_v21 }
0x188c   :  { %v3147_v2 = vpop.xlane.xlu0 %3146 }
0x188d   :  { %5178 = vrcp.f32 %v3147_v2 }
0x1890   :  { %v3383_v54 = vpop.permute.xlu0 %3382 }
0x1897   :  { %v5179_v51 = vpop.eup %5178 }
0x1898   :  { %v3151_v52 = vmul.f32 %v5179_v51, %v5175_v38 }
0x189a   :  { %4904 = vmatmul.mubr.msk.f32.vlgmr.msra.gmra.mrb[50].mxu1 %vm526_vm3, %v3151_v52 }
0x189b   :  { %4912 = vmatpush3.xpose.msk.msra.mxu1 %vm373_vm2, %v3385_v0  ;;  %4913 = vmatprep.mubr.msk.f32.mxu1 %vm5260_vm1, %v5259_v21 }
0x189c   :  { %4921 = vmatprep.subr.mxu1 %v5259_v21 }
0x189e   :  { %4914 = vmatmul.mubr.msk.f32.vlgmr.msra.gmra.mrb[52].mxu1 %vm373_vm2, %v3383_v54 }
0x189f   :  { %4923 = vmatprep.mubr.msk.f32.mxu1 %vm5260_vm1, %v5259_v21 }
0x192e   :  { %v3224_v57 = vpop.f32.mrb[38].mxu0 }
0x192f   :  { %v4900_v59 = vpop.f32.mrb[39].mxu0 }
0x1932   :  { %v3378_v53 = vpop.f32.mrb[40].mxu0 }
0x1933   :  { %v3379_v61 = vadd.f32 %v3378_v53, %v5477_v16  ;;  %v4910_v28 = vpop.f32.mrb[41].mxu0 }
0x1935   :  { %v3460_v62 = vsel %vm526_vm3, %v3379_v61, -inf }
0x1936   :  { %3461 = vmax.xlane.f32.xlu1 %v3460_v62 }
0x1947   :  { %3482 = vrot.lane.b32.xlu1 %v5797_v49, %s5264_s18 }
0x194b   :  { %5029 = vrot.lane.b32.xlu1 %v5028_v20, %s5265_s19 }
0x196d   :  { %v3300_v1 = vpop.f32.mrb[50].mxu1 }
0x196e   :  { %v5033_v3 = vpack.i.bf16 %v3300_v1, %v3224_v57  ;;  %v4905_v4 = vpop.f32.mrb[51].mxu1 }
0x1970   :  { %5034 = vrot.lane.b32.xlu1 %v5033_v3, %s5266_s20 }
0x1971   :  { %v3456_v8 = vpop.f32.mrb[52].mxu1 }
0x1972   :  { %v3457_v9 = vadd.f32 %v3456_v8, %v5480_v18  ;;  %v4915_v10 = vpop.f32.mrb[53].mxu1 }
0x1974   :  { %v3463_v16 = vsel %vm526_vm3, %v3457_v9, -inf }
0x1975   :  { %3464 = vmax.xlane.f32.xlu0 %v3463_v16 }
0x19c3   :  { %v3462_v60 = vpop.xlane.xlu1 %3461 }
0x19c4   :  { %v3466_v11 = vsub.f32 %v3379_v61, %v3462_v60  ;;  %v3777_v60 = vrot.slane %v5736_v5, %v5659_v44 }
0x19c6   :  { %v3468_v13 = vmul.f32 1.442695, %v3466_v11 }
0x19c7   :  { %v3483_v14 = vpop.permute.xlu1 %3482 }
0x19c8   :  { %5180 = vpow2.f32 %v3468_v13  ;;  %4917 = vmatpush3.msra.mxu0 %v3483_v14 }
0x19c9   :  { %4926 = vmatprep.subr.bf16.mxu0 %v5259_v21 }
0x19cb   :  { %v5030_v47 = vpop.permute.xlu1 %5029 }
0x19cc   :  { %v5032_v43 = vunpack.i.h.bf16 %v5030_v47  ;;  %v5031_v34 = vunpack.i.l.bf16 %v5030_v47 }
0x19ce   :  { %v3659_v48 = vsel %vm373_vm2, %v5853_v32, %v5032_v43  ;;  %v3658_v2 = vsel %vm373_vm2, %v5843_v30, %v5031_v34 }
0x19d2   :  { %v5181_v49 = vpop.eup %5180 }
0x19d3   :  { %v3472_v15 = vsel %vm526_vm3, %v5181_v49, 0.0 }
0x19d4   :  { %3473 = vadd.xlane.f32.xlu0 %v3472_v15 }
0x19e2   :  { %v5035_v39 = vpop.permute.xlu1 %5034 }
0x19e3   :  { %v5037_v40 = vunpack.i.h.bf16 %v5035_v39  ;;  %v5036_v0 = vunpack.i.l.bf16 %v5035_v39 }
0x19e5   :  { %v3660_v54 = vsel %vm1713_vm4, %v3658_v2, %v5036_v0  ;;  %v3661_v57 = vsel %vm1713_vm4, %v3659_v48, %v5037_v40  ;;  %v5093_v40 = vld [vmem:[#allocation4 + $0x50] sm:$0xff]   ;;  %v5094_v0 = vld [vmem:[#allocation4 + $0x58] sm:$0xff]   ;;  %v5096_v48 = vld [vmem:[#allocation4 + $0x68] sm:$0xff]  }
0x19e6   :  { %v5097_v2 = vld [vmem:[#allocation4 + $0x70] sm:$0xff]  }
0x1a02   :  { %v3465_v17 = vpop.xlane.xlu0 %3464 }
0x1a03   :  { %v3467_v19 = vsub.f32 %v3457_v9, %v3465_v17 }
0x1a05   :  { %v3470_v20 = vmul.f32 1.442695, %v3467_v19 }
0x1a07   :  { %5182 = vpow2.f32 %v3470_v20 }
0x1a11   :  { %v5183_v18 = vpop.eup %5182 }
0x1a12   :  { %v3475_v22 = vsel %vm526_vm3, %v5183_v18, 0.0 }
0x1a13   :  { %3476 = vadd.xlane.f32.xlu0 %v3475_v22  ;;  %v5088_v22 = vld [vmem:[#allocation2 + $0x28] sm:$0xff]  }
0x1a29   :  { %3558 = vrot.lane.b32.xlu0 %v5826_v58, %s5264_s18 }
0x1a2d   :  { %3699 = vrot.lane.b32.xlu0 %v5783_v45, %s5256_s15  ;;  %v5083_v45 = vld [vmem:[%s6077_s2 + $0xe0] sm:$0xff]  }
0x1a61   :  { %v3474_v56 = vpop.xlane.xlu0 %3473 }
0x1a62   :  { %5184 = vrcp.f32 %v3474_v56  ;;  %v5089_v56 = vld [vmem:[#allocation2 + $0x30] sm:$0xff]  }
0x1a6c   :  { %v5185_v24 = vpop.eup %5184 }
0x1a6d   :  { %v3480_v25 = vmul.f32 %v5185_v24, %v5181_v49  ;;  %v5090_v24 = vld [vmem:[#allocation2 + $0x38] sm:$0xff]  }
0x1a6f   :  { %4919 = vmatmul.mubr.msk.f32.vlgmr.msra.gmra.mrb[42].mxu0 %vm526_vm3, %v3480_v25  ;;  %v5091_v25 = vld [vmem:[#allocation4 + $0x40] sm:$0xff]  }
0x1a70   :  { %4934 = vmatprep.mubr.msk.bf16.mxu0 %vm5260_vm1, %v5259_v21  ;;  %4927 = vmatpush3.bf16.msra.mxu0 %v5083_v45 }
0x1a71   :  { %4928 = vmatprep.subr.bf16.mxu0 %v5259_v21 }
0x1a74   :  { %4929 = vmatpush3.bf16.msra.mxu0 %v5084_v42 }
0x1a75   :  { %4930 = vmatprep.subr.bf16.mxu0 %v5259_v21 }
0x1a78   :  { %4931 = vmatpush3.bf16.msra.mxu0 %v5085_v31 }
0x1a79   :  { %4932 = vmatprep.subr.bf16.mxu0 %v5259_v21 }
0x1a7c   :  { %4933 = vmatpush3.bf16.msra.mxu0 %v5086_v35 }
0x1a7d   :  { %4950 = vmatprep.subr.bf16.mxu0 %v5259_v21 }
0x1aa0   :  { %v3477_v26 = vpop.xlane.xlu0 %3476 }
0x1aa1   :  { %5186 = vrcp.f32 %v3477_v26  ;;  %v5092_v26 = vld [vmem:[#allocation4 + $0x48] sm:$0xff]  }
0x1aa4   :  { %v3559_v27 = vpop.permute.xlu0 %3558 }
0x1aa5   :  { %4922 = vmatpush3.msra.mxu1 %v3559_v27 }
0x1aa6   :  { %4938 = vmatprep.subr.bf16.mxu1 %v5259_v21 }
0x1aa8   :  { %v3700_v32 = vpop.permute.xlu0 %3699 }
0x1aab   :  { %v5187_v29 = vpop.eup %5186 }
0x1aac   :  { %v3481_v58 = vmul.f32 %v5187_v29, %v5183_v18  ;;  %v5087_v18 = vld [vmem:[#allocation2 + $0x20] sm:$0xff]  }
0x1aae   :  { %4924 = vmatmul.mubr.msk.f32.vlgmr.msra.gmra.mrb[54].mxu1 %vm526_vm3, %v3481_v58 }
0x1aaf   :  { %4946 = vmatprep.mubr.msk.bf16.mxu1 %vm5260_vm1, %v5259_v21  ;;  %4939 = vmatpush3.bf16.msra.mxu1 %v5087_v18 }
0x1ab0   :  { %4940 = vmatprep.subr.bf16.mxu1 %v5259_v21 }
0x1ab3   :  { %4941 = vmatpush3.bf16.msra.mxu1 %v5088_v22  ;;  %v4020_v22 = vrot.slane %v5736_v5, %v5696_v55 }
0x1ab4   :  { %4942 = vmatprep.subr.bf16.mxu1 %v5259_v21 }
0x1ab7   :  { %4943 = vmatpush3.bf16.msra.mxu1 %v5089_v56 }
0x1ab8   :  { %4944 = vmatprep.subr.bf16.mxu1 %v5259_v21 }
0x1abb   :  { %4945 = vmatpush3.bf16.msra.mxu1 %v5090_v24 }
0x1abc   :  { %4970 = vmatprep.subr.bf16.mxu1 %v5259_v21 }
0x1b42   :  { %v3554_v41 = vpop.f32.mrb[42].mxu0 }
0x1b43   :  { %v4920_v46 = vpop.f32.mrb[43].mxu0 }
0x1b81   :  { %v3630_v36 = vpop.f32.mrb[54].mxu1 }
0x1b82   :  { %v5038_v37 = vpack.i.bf16 %v3630_v36, %v3554_v41  ;;  %v4925_v38 = vpop.f32.mrb[55].mxu1 }
0x1b84   :  { %5039 = vrot.lane.b32.xlu1 %v5038_v37, %s5267_s3 }
0x1bf6   :  { %v5040_v50 = vpop.permute.xlu1 %5039 }
0x1bf7   :  { %v5042_v51 = vunpack.i.h.bf16 %v5040_v50  ;;  %v5041_v52 = vunpack.i.l.bf16 %v5040_v50  ;;  %v5095_v50 = vld [vmem:[#allocation4 + $0x60] sm:$0xff]  }
0x1bf9   :  { %v3663_v59 = vsel %vm1716_vm5, %v3661_v57, %v5042_v51  ;;  %v3662_v53 = vsel %vm1716_vm5, %v3660_v54, %v5041_v52  ;;  %v5098_v51 = vld [vmem:[#allocation4 + $0x78] sm:$0xff]   ;;  %v3799_v52 = vrot.slane %v5736_v5, %v5680_v12 }
0x1bfa   :  { %v3664_v61 = vpack.c.bf16 %v3663_v59, %v3662_v53 }
0x1bfc   :  { %4935 = vmatmul.mubr.msk.bf16.vlgmr.msra.gmra.mrb[44].mxu0 %vm61_vm0, %v3664_v61 }
0x1bfd   :  { %4966 = vmatprep.mubr.msk.bf16.mxu0 %vm5260_vm1, %v5259_v21  ;;  %4951 = vmatpush3.bf16.msra.mxu0 %v5091_v25 }
0x1bfe   :  { %4952 = vmatprep.subr.bf16.mxu0 %v5259_v21 }
0x1c01   :  { %4953 = vmatpush3.bf16.msra.mxu0 %v5092_v26 }
0x1c02   :  { %4954 = vmatprep.subr.bf16.mxu0 %v5259_v21 }
0x1c05   :  { %4955 = vmatpush3.bf16.msra.mxu0 %v5093_v40 }
0x1c06   :  { %4956 = vmatprep.subr.bf16.mxu0 %v5259_v21 }
0x1c09   :  { %4957 = vmatpush3.bf16.msra.mxu0 %v5094_v0 }
0x1c0a   :  { %4958 = vmatprep.subr.bf16.mxu0 %v5259_v21 }
0x1c0d   :  { %4959 = vmatpush3.bf16.msra.mxu0 %v5095_v50 }
0x1c0e   :  { %4960 = vmatprep.subr.bf16.mxu0 %v5259_v21 }
0x1c11   :  { %4961 = vmatpush3.bf16.msra.mxu0 %v5096_v48 }
0x1c12   :  { %4962 = vmatprep.subr.bf16.mxu0 %v5259_v21 }
0x1c15   :  { %4963 = vmatpush3.bf16.msra.mxu0 %v5097_v2 }
0x1c16   :  { %4964 = vmatprep.subr.bf16.mxu0 %v5259_v21 }
0x1c19   :  { %4965 = vmatpush3.bf16.msra.mxu0 %v5098_v51 }
0x1ccf   :  { %v3739_v28 = vpop.f32.mrb[44].mxu0 }
0x1cd0   :  { %v3740_v62 = vadd.f32 %v3739_v28, %v3700_v32  ;;  %v4936_v30 = vpop.f32.mrb[45].mxu0 }
0x1cd1   :  { %v3742_v1 = vpop.f32.mrb[46].mxu0 }
0x1cd2   :  { %v3743_v3 = vadd.f32 %v3742_v1, %v3700_v32  ;;  %v4937_v4 = vpop.f32.mrb[47].mxu0  ;;  %v3746_v8 = vadd.f32 %v3740_v62, %v5741_v23 }
0x1cd4   :  { %v3748_v9 = vsel %vm61_vm0, %v3746_v8, 0.0  ;;  %v3747_v10 = vadd.f32 %v3743_v3, %v5743_v7 }
0x1cd5   :  { %3749 = vadd.xlane.f32.xlu1 %v3748_v9 }
0x1cd6   :  { %v3751_v16 = vsel %vm61_vm0, %v3747_v10, 0.0 }
0x1cd7   :  { %3752 = vadd.xlane.f32.xlu0 %v3751_v16 }
0x1ce6   :  { %3781 = vrot.lane.b32.xlu1 %v3777_v60, %s5256_s15 }
0x1cea   :  { %4024 = vrot.lane.b32.xlu1 %v4020_v22, %s5256_s15 }
0x1d62   :  { %v3750_v11 = vpop.xlane.xlu1 %3749 }
0x1d63   :  { %v3754_v13 = vmul.f32 0.015625, %v3750_v11  ;;  %v3899_v11 = vrot.slane %v5736_v5, %v5687_v33  ;;  %v5099_v5 = vld [vmem:[%s6082_s7] sm:$0xff]  }
0x1d64   :  { %v3753_v14 = vpop.xlane.xlu0 %3752 }
0x1d65   :  { %v3756_v49 = vsub.f32 %v3746_v8, %v3754_v13  ;;  %v3755_v15 = vmul.f32 0.015625, %v3753_v14 }
0x1d66   :  { %v3782_v38 = vpop.permute.xlu1 %3781 }
0x1d67   :  { %v3757_v17 = vsub.f32 %v3747_v10, %v3755_v15  ;;  %v3758_v23 = vmul.f32 %v3756_v49, %v3756_v49 }
0x1d69   :  { %v3760_v19 = vsel %vm61_vm0, %v3758_v23, 0.0  ;;  %v3759_v20 = vmul.f32 %v3757_v17, %v3757_v17 }
0x1d6a   :  { %3761 = vadd.xlane.f32.xlu0 %v3760_v19  ;;  %v4025_v0 = vpop.permute.xlu1 %4024 }
0x1d6b   :  { %v3763_v7 = vsel %vm61_vm0, %v3759_v20, 0.0 }
0x1d6e   :  { %3764 = vadd.xlane.f32.xlu0 %v3763_v7 }
0x1df7   :  { %v3762_v27 = vpop.xlane.xlu0 %3761 }
0x1df8   :  { %v3766_v29 = vmul.f32 0.015625, %v3762_v27 }
0x1dfa   :  { %v3768_v58 = vadd.f32 1e-12, %v3766_v29 }
0x1dfb   :  { %v3765_v45 = vpop.xlane.xlu0 %3764 }
0x1dfc   :  { %5188 = vrsqrt.f32 %v3768_v58  ;;  %v3767_v42 = vmul.f32 0.015625, %v3765_v45 }
0x1dfe   :  { %v3769_v31 = vadd.f32 1e-12, %v3767_v42 }
0x1e00   :  { %5190 = vrsqrt.f32 %v3769_v31 }
0x1e06   :  { %v5189_v41 = vpop.eup %5188 }
0x1e07   :  { %v3772_v46 = vmul.f32 %v5189_v41, %v3756_v49  ;;  %v5100_v41 = vld [vmem:[%s6082_s7 + $0x8] sm:$0xff]  }
0x1e09   :  { %v3778_v37 = vmul.f32 %v3777_v60, %v3772_v46  ;;  %v5101_v46 = vld [vmem:[%s6082_s7 + $0x10] sm:$0xff]  }
0x1e0a   :  { %v5191_v35 = vpop.eup %5190 }
0x1e0b   :  { %v3773_v36 = vmul.f32 %v5191_v35, %v3757_v17  ;;  %v3784_v39 = vadd.f32 %v3782_v38, %v3778_v37  ;;  %v5102_v35 = vld [vmem:[%s6082_s7 + $0x18] sm:$0xff]  }
0x1e0d   :  { %v3779_v47 = vmul.f32 %v3777_v60, %v3773_v36 }
0x1e0f   :  { %v3785_v43 = vadd.f32 %v3782_v38, %v3779_v47 }
0x1e11   :  { %v3786_v34 = vpack.c.bf16 %v3785_v43, %v3784_v39 }
0x1e13   :  { %4947 = vmatmul.mubr.msk.bf16.vlgmr.msra.gmra.mrb[56].mxu1 %vm61_vm0, %v3786_v34 }
0x1e14   :  { %4978 = vmatprep.mubr.msk.bf16.mxu1 %vm5260_vm1, %v5259_v21  ;;  %4971 = vmatpush3.bf16.msra.mxu1 %v5099_v5 }
0x1e15   :  { %4972 = vmatprep.subr.bf16.mxu1 %v5259_v21 }
0x1e18   :  { %4973 = vmatpush3.bf16.msra.mxu1 %v5100_v41 }
0x1e19   :  { %4974 = vmatprep.subr.bf16.mxu1 %v5259_v21 }
0x1e1c   :  { %4975 = vmatpush3.bf16.msra.mxu1 %v5101_v46 }
0x1e1d   :  { %4976 = vmatprep.subr.bf16.mxu1 %v5259_v21 }
0x1e20   :  { %4977 = vmatpush3.bf16.msra.mxu1 %v5102_v35 }
0x1e21   :  { %4982 = vmatprep.subr.bf16.mxu1 %v5259_v21 }
0x1ee6   :  { %v3861_v54 = vpop.f32.mrb[56].mxu1 }
0x1ee7   :  { %v3862_v57 = vadd.f32 %v3861_v54, %v3799_v52  ;;  %v4948_v59 = vpop.f32.mrb[57].mxu1 }
0x1ee8   :  { %v3864_v53 = vpop.f32.mrb[58].mxu1 }
0x1ee9   :  { %v3870_v61 = vmul.f32 0.70710677, %v3862_v57  ;;  %v3865_v32 = vadd.f32 %v3864_v53, %v3799_v52  ;;  %v4949_v28 = vpop.f32.mrb[59].mxu1  ;;  %v3868_v4 = vmul.f32 0.5, %v3862_v57 }
0x1eeb   :  { %5192 = verf.f32 %v3870_v61  ;;  %v3871_v62 = vmul.f32 0.70710677, %v3865_v32  ;;  %v3869_v8 = vmul.f32 0.5, %v3865_v32 }
0x1eed   :  { %5194 = verf.f32 %v3871_v62 }
0x1ef5   :  { %v5193_v30 = vpop.eup %5192 }
0x1ef6   :  { %v3874_v1 = vadd.f32 1.0, %v5193_v30  ;;  %v6026_v30 = vld [vmem:[%s6081_s6] sm:$0xff] }
0x1ef7   :  { %v5195_v3 = vpop.eup %5194 }
0x1ef8   :  { %v3875_v9 = vadd.f32 1.0, %v5195_v3  ;;  %v3876_v10 = vmul.f32 %v3874_v1, %v3868_v4  ;;  %v4052_v1 = vrot.slane %v6026_v30, %v5457_v63  ;;  %v5103_v63 = vld [vmem:[%s6082_s7 + $0x20] sm:$0xff]  }
0x1efa   :  { %v3877_v16 = vmul.f32 %v3875_v9, %v3869_v8 }
0x1efc   :  { %v3878_v60 = vpack.c.bf16 %v3877_v16, %v3876_v10 }
0x1efe   :  { %4967 = vmatmul.mubr.bf16.vlgmr.msra.gmra.mrb[48].mxu0 %v3878_v60 }
0x1fd1   :  { %v3982_v13 = vpop.f32.mrb[48].mxu0 }
0x1fd2   :  { %v4968_v14 = vpop.f32.mrb[49].mxu0  ;;  %v3983_v15 = vadd.f32 %v3982_v13, %v3899_v11 }
0x1fd3   :  { %v3985_v49 = vpop.f32.mrb[50].mxu0 }
0x1fd4   :  { %v3986_v17 = vadd.f32 %v3985_v49, %v3899_v11  ;;  %v4969_v23 = vpop.f32.mrb[51].mxu0  ;;  %v3989_v20 = vadd.f32 %v3983_v15, %v3784_v39 }
0x1fd6   :  { %v3990_v19 = vadd.f32 %v3986_v17, %v3785_v43  ;;  %v3991_v18 = vsel %vm61_vm0, %v3989_v20, 0.0 }
0x1fd8   :  { %v3994_v7 = vsel %vm61_vm0, %v3990_v19, 0.0 }
0x1fd9   :  { %3995 = vadd.xlane.f32.xlu0 %v3994_v7  ;;  %v5104_v7 = vld [vmem:[%s6082_s7 + $0x28] sm:$0xff]  }
0x1fdd   :  { %3992 = vadd.xlane.f32.xlu0 %v3991_v18  ;;  %v5105_v18 = vld [vmem:[%s6082_s7 + $0x30] sm:$0xff]  }
0x2066   :  { %v3996_v56 = vpop.xlane.xlu0 %3995 }
0x2067   :  { %v3998_v24 = vmul.f32 0.015625, %v3996_v56 }
0x2069   :  { %v4000_v25 = vsub.f32 %v3990_v19, %v3998_v24 }
0x206a   :  { %v3993_v26 = vpop.xlane.xlu0 %3992 }
0x206b   :  { %v3997_v27 = vmul.f32 0.015625, %v3993_v26  ;;  %v4002_v29 = vmul.f32 %v4000_v25, %v4000_v25 }
0x206d   :  { %v3999_v58 = vsub.f32 %v3989_v20, %v3997_v27  ;;  %v4006_v45 = vsel %vm61_vm0, %v4002_v29, 0.0  ;;  %v4156_v27 = vrot.slane %v6026_v30, %v5696_v55 }
0x206e   :  { %4007 = vadd.xlane.f32.xlu0 %v4006_v45 }
0x206f   :  { %v4001_v42 = vmul.f32 %v3999_v58, %v3999_v58 }
0x2071   :  { %v4003_v31 = vsel %vm61_vm0, %v4001_v42, 0.0 }
0x2072   :  { %4004 = vadd.xlane.f32.xlu0 %v4003_v31  ;;  %v4162_v31 = vrot.slane %v6026_v30, %v5680_v12  ;;  %v5106_v12 = vld [vmem:[%s6082_s7 + $0x40] sm:$0xff]  }
0x20fb   :  { %v4008_v36 = vpop.xlane.xlu0 %4007 }
0x20fc   :  { %v4010_v37 = vmul.f32 0.015625, %v4008_v36 }
0x20fe   :  { %v4012_v38 = vadd.f32 1e-12, %v4010_v37 }
0x20ff   :  { %v4005_v47 = vpop.xlane.xlu0 %4004 }
0x2100   :  { %5196 = vrsqrt.f32 %v4012_v38  ;;  %v4009_v39 = vmul.f32 0.015625, %v4005_v47 }
0x2102   :  { %v4011_v43 = vadd.f32 1e-12, %v4009_v39 }
0x2104   :  { %5198 = vrsqrt.f32 %v4011_v43  ;;  %v5107_v43 = vld [vmem:[%s6082_s7 + $0x48] sm:$0xff]  }
0x210a   :  { %v5197_v34 = vpop.eup %5196 }
0x210b   :  { %v4016_v40 = vmul.f32 %v5197_v34, %v4000_v25  ;;  %v4151_v25 = vrot.slane %v6026_v30, %v5659_v44 }
0x210d   :  { %v4022_v50 = vmul.f32 %v4020_v22, %v4016_v40 }
0x210e   :  { %v5199_v48 = vpop.eup %5198 }
0x210f   :  { %v4015_v2 = vmul.f32 %v5199_v48, %v3999_v58  ;;  %v4028_v51 = vadd.f32 %v4025_v0, %v4022_v50  ;;  %v4246_v50 = vsub.s32 6, %v5352_v6  ;;  %v4242_v48 = vrot.slane %v6026_v30, %v5687_v33 }
0x2111   :  { %v4021_v52 = vmul.f32 %v4020_v22, %v4015_v2  ;;  %v4048_v54 = vpack.c.bf16 %v4028_v51, %v4028_v51 }
0x2113   :  { %v4027_v57 = vadd.f32 %v4025_v0, %v4021_v52  ;;  %v4056_v59 = vunpack.c.l.b16 %v4048_v54  ;;  %v4247_v52 = vrot.slane %v6026_v30, %v4246_v50 }
0x2115   :  { %v4047_v53 = vpack.c.bf16 %v4027_v57, %v4027_v57  ;;  %v4057_v32 = vrot.slane %v4056_v59, 7 }
0x2117   :  { %v4055_v61 = vunpack.c.l.b16 %v4047_v53 }
0x2119   :  { %v4059_v28 = vsel %vm4058_vm6, %v4057_v32, %v4055_v61 }
0x211a   :  { %v4060_v62 = vpack.c.b16 %v4059_v28, %v4059_v28 }
0x211c   :  { %4979 = vmatmul.mubr.msk.bf16.vlgmr.msra.gmra.mrb[60].mxu1 %vm61_vm0, %v4060_v62 }
0x211d   :  { %4988 = vmatprep.mubr.msk.bf16.mxu1 %vm5260_vm1, %v5259_v21  ;;  %4983 = vmatpush3.bf16.msra.mxu1 %v5103_v63 }
0x211e   :  { %4984 = vmatprep.subr.bf16.mxu1 %v5259_v21 }
0x2121   :  { %4985 = vmatpush3.bf16.msra.mxu1 %v5104_v7 }
0x2122   :  { %4986 = vmatprep.subr.bf16.mxu1 %v5259_v21 }
0x2125   :  { %4987 = vmatpush3.bf16.msra.mxu1 %v5105_v18 }
0x2126   :  { %4992 = vmatprep.subr.bf16.mxu1 %v5259_v21 }
0x21ef   :  { %v4122_v3 = vpop.f32.mrb[60].mxu1 }
0x21f0   :  { %v4123_v4 = vadd.f32 %v4122_v3, %v4052_v1  ;;  %v4980_v8 = vpop.f32.mrb[61].mxu1 }
0x21f1   :  { %v4125_v9 = vpop.f32.mrb[62].mxu1 }
0x21f2   :  { %v4129_v10 = vmul.f32 0.70710677, %v4123_v4  ;;  %v4981_v16 = vpop.f32.mrb[63].mxu1  ;;  %v4128_v11 = vmul.f32 0.5, %v4123_v4 }
0x21f4   :  { %5200 = verf.f32 %v4129_v10 }
0x21fe   :  { %v5201_v60 = vpop.eup %5200 }
0x21ff   :  { %v4131_v13 = vadd.f32 1.0, %v5201_v60 }
0x2201   :  { %v4132_v14 = vmul.f32 %v4131_v13, %v4128_v11 }
0x2203   :  { %v4134_v49 = vsel %vm4133_vm7, %v4132_v14, 0.0 }
0x2204   :  { %4135 = vadd.xlane.f32.xlu0 %v4134_v49 }
0x2291   :  { %v4136_v15 = vpop.xlane.xlu0 %4135 }
0x2292   :  { %v4138_v17 = vmul.f32 0.020833334, %v4136_v15 }
0x2294   :  { %v4139_v23 = vsub.f32 %v4132_v14, %v4138_v17 }
0x2296   :  { %v4140_v19 = vmul.f32 %v4139_v23, %v4139_v23 }
0x2298   :  { %v4141_v20 = vsel %vm4133_vm7, %v4140_v19, 0.0 }
0x2299   :  { %4142 = vadd.xlane.f32.xlu1 %v4141_v20 }
0x2326   :  { %v4143_v22 = vpop.xlane.xlu1 %4142 }
0x2327   :  { %v4144_v56 = vmul.f32 0.020833334, %v4143_v22 }
0x2329   :  { %v4145_v24 = vadd.f32 1e-05, %v4144_v56 }
0x232b   :  { %5202 = vrsqrt.f32 %v4145_v24 }
0x2335   :  { %v5203_v26 = vpop.eup %5202 }
0x2336   :  { %v4147_v29 = vmul.f32 %v5203_v26, %v4139_v23 }
0x2338   :  { %v4152_v58 = vmul.f32 %v4151_v25, %v4147_v29 }
0x233a   :  { %v4157_v45 = vadd.f32 %v4156_v27, %v4152_v58 }
0x233c   :  { %v4158_v42 = vpack.c.bf16 %v4157_v45, %v4157_v45 }
0x233e   :  { %4989 = vmatmul.mubr.msk.bf16.vlgmr.msra.gmra.mrb[64].mxu1 %vm1716_vm5, %v4158_v42 }
0x233f   :  { %4996 = vmatprep.mubr.msk.bf16.mxu1 %vm5260_vm1, %v5259_v21  ;;  %4993 = vmatpush3.bf16.msra.mxu1 %v5106_v12 }
0x2340   :  { %4994 = vmatprep.subr.bf16.mxu1 %v5259_v21  ;;  %v4252_v21 = vsub.s32 7, %v5352_v6 }
0x2342   :  { %v4253_v53 = vrot.slane %v6026_v30, %v4252_v21 }
0x2343   :  { %4995 = vmatpush3.bf16.msra.mxu1 %v5107_v43 }
0x2411   :  { %v4218_v5 = vpop.f32.mrb[64].mxu1 }
0x2412   :  { %v4219_v41 = vadd.f32 %v4218_v5, %v4162_v31  ;;  %v4990_v44 = vpop.f32.mrb[65].mxu1 }
0x2413   :  { %v4221_v46 = vpop.f32.mrb[66].mxu1 }
0x2414   :  { %v4991_v35 = vpop.f32.mrb[67].mxu1  ;;  %v4225_v55 = vsel %vm4224_vm8, %v4219_v41, 0.0 }
0x2415   :  { %4226 = vadd.xlane.f32.xlu0 %v4225_v55 }
0x24a2   :  { %v4227_v36 = vpop.xlane.xlu0 %4226 }
0x24a3   :  { %v4229_v37 = vmul.f32 0.03125, %v4227_v36 }
0x24a5   :  { %v4230_v38 = vsub.f32 %v4219_v41, %v4229_v37 }
0x24a7   :  { %v4231_v47 = vmul.f32 %v4230_v38, %v4230_v38 }
0x24a9   :  { %v4232_v39 = vsel %vm4224_vm8, %v4231_v47, 0.0 }
0x24aa   :  { %4233 = vadd.xlane.f32.xlu0 %v4232_v39 }
0x2537   :  { %v4234_v34 = vpop.xlane.xlu0 %4233 }
0x2538   :  { %v4235_v40 = vmul.f32 0.03125, %v4234_v34 }
0x253a   :  { %v4236_v0 = vadd.f32 1e-05, %v4235_v40 }
0x253c   :  { %5204 = vrsqrt.f32 %v4236_v0 }
0x2546   :  { %v5205_v2 = vpop.eup %5204 }
0x2547   :  { %v4238_v51 = vmul.f32 %v5205_v2, %v4230_v38 }
0x2549   :  { %v4243_v54 = vmul.f32 %v4242_v48, %v4238_v51 }
0x254b   :  { %v4248_v57 = vadd.f32 %v4247_v52, %v4243_v54 }
0x254d   :  { %v4249_v59 = vpack.c.bf16 %v4248_v57, %v4248_v57  ;;  %4309 = vst.msk [vmem:[%s6083_s8] sm:$0x3] %vm4224_vm8, %v4248_v57 }
0x254f   :  { %4997 = vmatmul.mubr.msk.bf16.vlgmr.msra.gmra.mrb[68].mxu1 %vm1713_vm4, %v4249_v59 }
0x2622   :  { %v4303_v61 = vpop.f32.mrb[68].mxu1 }
0x2623   :  { %v4304_v33 = vadd.f32 %v4303_v61, %v4253_v53  ;;  %v4998_v32 = vpop.f32.mrb[69].mxu1 }
0x2624   :  { %v4306_v28 = vpop.f32.mrb[70].mxu1 }
0x2625   :  { %4311 = vrot.lane.b32.xlu0 %v4304_v33, %s5266_s20  ;;  %v4999_v62 = vpop.f32.mrb[71].mxu1 }
0x2697   :  { %v4312_v1 = vpop.permute.xlu0 %4311 }
0x2698   :  { %4315 = vst.msk [vmem:[%s6083_s8] sm:$0x3] %vm4314_vm9, %v4312_v1 }
0x2699   :  { %4320 = vsyncpa [#allocation3], 1 }
0x269a   :  { %4321 = vsyncpa [#allocation5], 1 }

</bundles_post_ra>
